<compile_context>
chip_gen: v7x
topology: tpu7x:2x2x1
jax: 0.10.0
libtpu: 0.0.40
codegen_flags: <defaults>
</compile_context>

<pallas_src>
import functools

import jax
import jax.numpy as jnp
from jax.experimental import pallas as pl
from jax.experimental.pallas import tpu as pltpu

D = 1024  # fixed feature width of Network2


def _mlp_kernel(x_ref, w1_ref, b1_ref, w2_ref, b2_ref, o_ref):
    # matmul -> bias -> relu -> matmul -> bias on the current batch tile.
    # The f32->bf16 cast of x happens here (VPU, hidden under MXU/DMA time);
    # matmuls run in bf16 on the MXU with f32 accumulation.
    x = x_ref[...].astype(jnp.bfloat16)                           # (tb, D)
    h = jnp.dot(x, w1_ref[...], preferred_element_type=jnp.float32)
    h = jnp.maximum(h + b1_ref[...], 0.0)                         # (tb,D)+(1,D)
    y = jnp.dot(h.astype(w2_ref.dtype), w2_ref[...],
                preferred_element_type=jnp.float32)
    o_ref[...] = (y + b2_ref[...]).astype(o_ref.dtype)


def _round_down8(n):
    return max(8, (n // 8) * 8)


def _multi_tensorcore():
    # Only chips with >1 TensorCore per device (v7x, and v4/v5p megacore)
    # benefit from splitting the batch to feed the 'parallel' grid axis.
    try:
        kind = jax.devices()[0].device_kind.lower()
    except Exception:
        return False
    return any(tag in kind for tag in ("v7", "7x", "v4", "v5p"))


def _choose_block_b(batch, multi_tc):
    if batch <= 8:
        return batch                       # block == full array dim (legal)
    b = min(512, _round_down8(batch))      # big tiles: amortize step overhead
    if multi_tc:
        # Ensure >=2 grid steps so the 'parallel' axis can shard across both
        # TensorCores; never do this downgrade on single-TC v5e/v6e.
        while b > 8 and -(-batch // b) < 2:
            b = _round_down8((b + 1) // 2)
    return b


@functools.partial(jax.jit, static_argnames=("block_b",))
def _forward_impl(x, w1_t, b1, w2_t, b2, *, block_b):
    batch, din = x.shape
    assert din == D
    out_dtype = x.dtype
    x_itemsize = jnp.dtype(x.dtype).itemsize
    out_itemsize = jnp.dtype(out_dtype).itemsize

    # bf16 weights for the MXU; biases stay f32 and fold into the f32 acc path.
    w1_bf = w1_t.astype(jnp.bfloat16)
    w2_bf = w2_t.astype(jnp.bfloat16)
    b1_2d = b1.reshape(1, D).astype(jnp.float32)
    b2_2d = b2.reshape(1, D).astype(jnp.float32)

    grid = (pl.cdiv(batch, block_b),)      # partial last block is masked

    # Right-sized VMEM request with headroom; clamp so it stays safe on
    # v7x's 64 MiB-per-TensorCore VMEM (v5e/v6e have 128 MiB).
    vmem_need = (
        2 * block_b * D * x_itemsize        # x tile, double-buffered
        + 2 * block_b * D * out_itemsize    # out tile, double-buffered
        + 2 * (D * D * 2)                   # W1^T + W2^T (bf16), single-buffered
        + 2 * (D * 4)                       # biases (f32)
        + 2 * block_b * D * 4               # f32 intermediates h / y
        + 2 * block_b * D * 2               # bf16 copies of x / h for the MXU
    )
    vmem_limit = int(min(max(vmem_need + (12 << 20), 32 << 20), 48 << 20))

    cost = pl.CostEstimate(
        flops=4 * batch * D * D,                          # two [tb,D]x[D,D] matmuls
        transcendentals=0,
        bytes_accessed=(batch * D * x_itemsize            # x in (original dtype)
                        + batch * D * out_itemsize        # out
                        + 2 * D * D * 2                   # weights (bf16)
                        + 2 * D * 4),                     # biases
    )

    # Grid-invariant operands: fetched once, no double buffering needed.
    resident = dict(pipeline_mode=pl.Buffered(1))

    out = pl.pallas_call(
        _mlp_kernel,
        out_shape=jax.ShapeDtypeStruct((batch, D), out_dtype),
        grid_spec=pltpu.PrefetchScalarGridSpec(
            num_scalar_prefetch=0,
            grid=grid,
            in_specs=[
                pl.BlockSpec((block_b, D), lambda i: (i, 0)),        # x tile
                pl.BlockSpec((D, D), lambda i: (0, 0), **resident),  # W1^T
                pl.BlockSpec((1, D), lambda i: (0, 0), **resident),  # b1
                pl.BlockSpec((D, D), lambda i: (0, 0), **resident),  # W2^T
                pl.BlockSpec((1, D), lambda i: (0, 0), **resident),  # b2
            ],
            out_specs=pl.BlockSpec((block_b, D), lambda i: (i, 0)),
        ),
        compiler_params=pltpu.CompilerParams(
            dimension_semantics=("parallel",),
            vmem_limit_bytes=vmem_limit,
        ),
        cost_estimate=cost,
    )(x, w1_bf, b1_2d, w2_bf, b2_2d)
    return out


def network2_forward(x, w1_t, b1, w2_t, b2, *, block_b=None):
    """x: [B, 1024]; w*_t: [1024, 1024] pre-transposed ([in, out]); b*: [1024]."""
    if block_b is None:
        block_b = _choose_block_b(x.shape[0], _multi_tensorcore())
    return _forward_impl(x, w1_t, b1, w2_t, b2, block_b=block_b)


def init_params(key):
    """Deterministic synthetic parameters with PyTorch nn.Linear-like scaling.

    Weights are stored as [in, out] == W.T (relative to PyTorch's [out, in])
    and kept in bf16, matching what the kernel feeds to the MXU.
    """
    k1, k2, k3, k4 = jax.random.split(key, 4)
    bound = 1.0 / jnp.sqrt(jnp.float32(D))  # U(-1/sqrt(fan_in), 1/sqrt(fan_in))
    w1_t = jax.random.uniform(k1, (D, D), jnp.float32, -bound, bound).astype(jnp.bfloat16)
    b1 = jax.random.uniform(k2, (D,), jnp.float32, -bound, bound)
    w2_t = jax.random.uniform(k3, (D, D), jnp.float32, -bound, bound).astype(jnp.bfloat16)
    b2 = jax.random.uniform(k4, (D,), jnp.float32, -bound, bound)
    return w1_t, b1, w2_t, b2


if __name__ == "__main__":
    key = jax.random.PRNGKey(0)
    kx, kp = jax.random.split(key)
    w1_t, b1, w2_t, b2 = init_params(kp)

    def reference(x):
        # Same numerics as the kernel: bf16 operands, f32 accumulation.
        xr = x.astype(jnp.bfloat16).astype(jnp.float32)
        w1r = w1_t.astype(jnp.float32)
        w2r = w2_t.astype(jnp.float32)
        h = jnp.maximum(xr @ w1r + b1, 0.0)
        h = h.astype(jnp.bfloat16).astype(jnp.float32)
        return h @ w2r + b2

    # B=64: single full block.  B=100: 2 grid steps with a masked partial
    # last block (non-multiple-of-8 batch, no wrapper-side pad/slice).
    # B=4: tiny batch, block == full array dim.
    for B in (64, 100, 4):
        x = jax.random.normal(jax.random.fold_in(kx, B), (B, D), jnp.float32)
        out = jax.block_until_ready(network2_forward(x, w1_t, b1, w2_t, b2))
        assert out.shape == (B, D) and out.dtype == x.dtype
        assert jnp.allclose(out, reference(x), atol=2e-2, rtol=2e-2)

    print("KERNEL_OK")
</pallas_src>

<mosaic_0001>
module attributes {stable_mosaic.version = 11 : i64} {
  func.func @_mlp_kernel(%arg0: i32, %arg1: memref<64x1024xf32, #tpu.memory_space<vmem>>, %arg2: memref<1024x1024xbf16, #tpu.memory_space<vmem>>, %arg3: memref<1x1024xf32, #tpu.memory_space<vmem>>, %arg4: memref<1024x1024xbf16, #tpu.memory_space<vmem>>, %arg5: memref<1x1024xf32, #tpu.memory_space<vmem>>, %arg6: memref<64x1024xf32, #tpu.memory_space<vmem>>) attributes {dimension_semantics = [#tpu.dimension_semantics<parallel>], iteration_bounds = array<i64: 1>, scalar_prefetch = 0 : i64, scratch_operands = 0 : i64, tpu.core_type = #tpu.core_type<tc>, window_params = [{transform_indices = @transform_0, window_bounds = array<i64: 64, 1024>}, {pipeline_mode = #tpu.pipeline_mode<synchronous>, transform_indices = @transform_1, window_bounds = array<i64: 1024, 1024>}, {pipeline_mode = #tpu.pipeline_mode<synchronous>, transform_indices = @transform_2, window_bounds = array<i64: 1, 1024>}, {pipeline_mode = #tpu.pipeline_mode<synchronous>, transform_indices = @transform_3, window_bounds = array<i64: 1024, 1024>}, {pipeline_mode = #tpu.pipeline_mode<synchronous>, transform_indices = @transform_4, window_bounds = array<i64: 1, 1024>}, {transform_indices = @transform_5, window_bounds = array<i64: 64, 1024>}]} {
    %c0 = arith.constant 0 : index
    %c0_0 = arith.constant 0 : index
    %0 = vector.load %arg1[%c0, %c0_0] : memref<64x1024xf32, #tpu.memory_space<vmem>>, vector<64x1024xf32>
    %1 = arith.truncf %0 : vector<64x1024xf32> to vector<64x1024xbf16>
    %c0_1 = arith.constant 0 : index
    %c0_2 = arith.constant 0 : index
    %2 = vector.load %arg2[%c0_1, %c0_2] : memref<1024x1024xbf16, #tpu.memory_space<vmem>>, vector<1024x1024xbf16>
    %cst = arith.constant dense<0.000000e+00> : vector<64x1024xf32>
    %3 = tpu.matmul %1, %2, %cst {dimension_numbers = #tpu.dot_dimension_numbers<[1], [0], [0], [1], [0, 0, 1, 1], [], []>} : vector<64x1024xbf16>, vector<1024x1024xbf16>, vector<64x1024xf32> -> vector<64x1024xf32>
    %c0_3 = arith.constant 0 : index
    %c0_4 = arith.constant 0 : index
    %4 = vector.load %arg3[%c0_3, %c0_4] : memref<1x1024xf32, #tpu.memory_space<vmem>>, vector<1x1024xf32>
    %5 = vector.broadcast %4 : vector<1x1024xf32> to vector<64x1024xf32>
    %6 = arith.addf %3, %5 : vector<64x1024xf32>
    %cst_5 = arith.constant 0.000000e+00 : f32
    %7 = vector.broadcast %cst_5 : f32 to vector<64x1024xf32>
    %8 = arith.maximumf %6, %7 : vector<64x1024xf32>
    %9 = arith.truncf %8 : vector<64x1024xf32> to vector<64x1024xbf16>
    %c0_6 = arith.constant 0 : index
    %c0_7 = arith.constant 0 : index
    %10 = vector.load %arg4[%c0_6, %c0_7] : memref<1024x1024xbf16, #tpu.memory_space<vmem>>, vector<1024x1024xbf16>
    %cst_8 = arith.constant dense<0.000000e+00> : vector<64x1024xf32>
    %11 = tpu.matmul %9, %10, %cst_8 {dimension_numbers = #tpu.dot_dimension_numbers<[1], [0], [0], [1], [0, 0, 1, 1], [], []>} : vector<64x1024xbf16>, vector<1024x1024xbf16>, vector<64x1024xf32> -> vector<64x1024xf32>
    %c0_9 = arith.constant 0 : index
    %c0_10 = arith.constant 0 : index
    %12 = vector.load %arg5[%c0_9, %c0_10] : memref<1x1024xf32, #tpu.memory_space<vmem>>, vector<1x1024xf32>
    %13 = vector.broadcast %12 : vector<1x1024xf32> to vector<64x1024xf32>
    %14 = arith.addf %11, %13 : vector<64x1024xf32>
    %c0_11 = arith.constant 0 : index
    %c0_12 = arith.constant 0 : index
    %15 = vector.load %arg6[%c0_11, %c0_12] : memref<64x1024xf32, #tpu.memory_space<vmem>>, vector<64x1024xf32>
    tpu.vector_store %arg6[%c0_11, %c0_12], %14 {strides = array<i32>} : memref<64x1024xf32, #tpu.memory_space<vmem>>, vector<64x1024xf32>,
    return
  }
  func.func @transform_0(%arg0: i32) -> (i32, i32) {
    %c0_i32 = arith.constant 0 : i32
    %c0_i32_0 = arith.constant 0 : i32
    return %arg0, %c0_i32 : i32, i32
  }
  func.func @transform_1(%arg0: i32) -> (i32, i32) {
    %c0_i32 = arith.constant 0 : i32
    %c0_i32_0 = arith.constant 0 : i32
    %c0_i32_1 = arith.constant 0 : i32
    return %c0_i32, %c0_i32_0 : i32, i32
  }
  func.func @transform_2(%arg0: i32) -> (i32, i32) {
    %c0_i32 = arith.constant 0 : i32
    %c0_i32_0 = arith.constant 0 : i32
    %c0_i32_1 = arith.constant 0 : i32
    return %c0_i32, %c0_i32_0 : i32, i32
  }
  func.func @transform_3(%arg0: i32) -> (i32, i32) {
    %c0_i32 = arith.constant 0 : i32
    %c0_i32_0 = arith.constant 0 : i32
    %c0_i32_1 = arith.constant 0 : i32
    return %c0_i32, %c0_i32_0 : i32, i32
  }
  func.func @transform_4(%arg0: i32) -> (i32, i32) {
    %c0_i32 = arith.constant 0 : i32
    %c0_i32_0 = arith.constant 0 : i32
    %c0_i32_1 = arith.constant 0 : i32
    return %c0_i32, %c0_i32_0 : i32, i32
  }
  func.func @transform_5(%arg0: i32) -> (i32, i32) {
    %c0_i32 = arith.constant 0 : i32
    %c0_i32_0 = arith.constant 0 : i32
    return %arg0, %c0_i32 : i32, i32
  }
}

</mosaic_0001>

<bundles_post_ra>
// kernel: _forward_impl.1
= control target key start
LH: loop header
LB: loop body
LE: loop exit
PB: predicated region body
PF: predicated region fallthrough
CT: control target
= control target key end

     0   :  { %10 = vsyncpa [#allocation3], 0  ;;  %s11497_s0 = inlined_call_operand.hbm [shape: f32[64,1024], index: 0, kind: input, shape index: {}]   ;;  %s11498_s1 = inlined_call_operand.hbm [shape: bf16[1024,1024], index: 1, kind: input, shape index: {}]   ;;  %s11499_s2 = inlined_call_operand.hbm [shape: f32[1,1024], index: 2, kind: input, shape index: {}]   ;;  %s11500_s3 = inlined_call_operand.hbm [shape: bf16[1024,1024], index: 3, kind: input, shape index: {}]   ;;  %s11501_s4 = inlined_call_operand.hbm [shape: f32[1,1024], index: 4, kind: input, shape index: {}]   ;;  %s11502_s5 = inlined_call_operand.hbm [shape: f32[64,1024], index: 5, kind: output, shape index: {}]  }
   0x1   :  { %11 = vsyncpa [#allocation6], 0 }
   0x2   :  { %12 = vsyncpa [#allocation9], 0 }
   0x3   :  { %13 = vsyncpa [#allocation4], 0  ;;  %s10611_s18 = smov [#allocation5]   ;;  %s10471_s22 = scalar_lea.hbm %s11498_s1, 65536 }
   0x4   :  { %s31_s19 = sshll.u32 %s10611_s18, 4  ;;  %p10472_p0 = scmp.ne.s32.totalorder %s11498_s1, %s10471_s22  ;;  %s32_s19 = int_to_ptr.vmem [resolvable:$true] %s31_s19 }
   0x5   :  { %p10475_p1 = scmp.lt.u32.totalorder %s10471_s22, %s11498_s1 }
   0x7   :  { %p10477_p2 = pnand %p10475_p1, %p10472_p0 }
   0x9   :  { %10480 = shalt.err (!%p10477_p2)
}
   0xa   :  { %s10481_s27 = scalar_lea.vmem %s32_s19, 65536  ;;  %p10486_p4 = scmp.lt.s32.totalorder %s32_s19, %s32_s19 }
   0xb   :  { %p10482_p3 = scmp.ne.s32.totalorder %s32_s19, %s10481_s27  ;;  %p10487_p5 = scmp.lt.s32.totalorder %s10481_s27, %s10481_s27 }
   0xd   :  { %p10488_p6 = por %p10487_p5, %p10486_p4 }
   0xf   :  { %p10489_p7 = pnand %p10488_p6, %p10482_p3 }
  0x11   :  { %10492 = shalt.err (!%p10489_p7)
}
  0x12   :  { %s10612_s28 = smov 512   ;;  %s10613_s29 = smov 32  }
  0x13   :  { %37 = dma.hbm_to_vmem [thread:$0]  %s11498_s1, 65536, %s32_s19, [#allocation6], %s10612_s28, %s10612_s28, %s10613_s29  }
  0x14   :  { %s10614_s7 = smov [#allocation8]   ;;  %s10615_s9 = smov [#allocation2]  }
  0x15   :  { %s53_s8 = sshll.u32 %s10614_s7, 4  ;;  %s19_s10 = sshll.u32 %s10615_s9, 4  ;;  %s54_s8 = int_to_ptr.vmem [resolvable:$true] %s53_s8  ;;  %s20_s10 = int_to_ptr.vmem [resolvable:$true] %s19_s10 }
  0x16   :  { %s10493_s13 = scalar_lea.hbm %s11500_s3, 65536 }
  0x17   :  { %p10494_p8 = scmp.ne.s32.totalorder %s11500_s3, %s10493_s13  ;;  %p10497_p9 = scmp.lt.u32.totalorder %s10493_s13, %s11500_s3 }
  0x19   :  { %p10499_p10 = pnand %p10497_p9, %p10494_p8 }
  0x1b   :  { %10502 = shalt.err (!%p10499_p10)
}
  0x1c   :  { %s10503_s1 = scalar_lea.vmem %s54_s8, 65536  ;;  %p10508_p12 = scmp.lt.s32.totalorder %s54_s8, %s54_s8 }
  0x1d   :  { %p10504_p11 = scmp.ne.s32.totalorder %s54_s8, %s10503_s1  ;;  %p10509_p13 = scmp.lt.s32.totalorder %s10503_s1, %s10503_s1 }
  0x1f   :  { %p10510_p0 = por %p10509_p13, %p10508_p12 }
  0x21   :  { %p10511_p1 = pnand %p10510_p0, %p10504_p11 }
  0x23   :  { %10514 = shalt.err (!%p10511_p1)
}
  0x24   :  { %59 = dma.hbm_to_vmem [thread:$0]  %s11500_s3, 65536, %s54_s8, [#allocation9], %s10612_s28, %s10612_s28, %s10613_s29  }
  0x25   :  { %s10515_s22 = scalar_lea.hbm %s11497_s0, 8192 }
  0x26   :  { %p10516_p2 = scmp.ne.s32.totalorder %s11497_s0, %s10515_s22  ;;  %p10519_p3 = scmp.lt.u32.totalorder %s10515_s22, %s11497_s0 }
  0x28   :  { %p10521_p4 = pnand %p10519_p3, %p10516_p2 }
  0x2a   :  { %10524 = shalt.err (!%p10521_p4)
}
  0x2b   :  { %s10525_s27 = scalar_lea.vmem %s20_s10, 8192  ;;  %p10530_p6 = scmp.lt.s32.totalorder %s20_s10, %s20_s10 }
  0x2c   :  { %p10526_p5 = scmp.ne.s32.totalorder %s20_s10, %s10525_s27  ;;  %p10531_p7 = scmp.lt.s32.totalorder %s10525_s27, %s10525_s27 }
  0x2e   :  { %p10532_p8 = por %p10531_p7, %p10530_p6 }
  0x30   :  { %p10533_p9 = pnand %p10532_p8, %p10526_p5 }
  0x32   :  { %10536 = shalt.err (!%p10533_p9)
}
  0x33   :  { %s10616_s3 = smov 1024   ;;  %s10617_s28 = smov 64  }
  0x34   :  { %25 = dma.hbm_to_vmem [thread:$0]  %s11497_s0, 8192, %s20_s10, [#allocation3], %s10616_s3, %s10616_s3, %s10617_s28  }
  0x35   :  { %s10618_s6 = smov [#allocation7]   ;;  %s10619_s8 = smov [#allocation10]  }
  0x36   :  { %s44_s7 = sshll.u32 %s10618_s6, 4  ;;  %s66_s9 = sshll.u32 %s10619_s8, 4  ;;  %s45_s7 = int_to_ptr.vmem [resolvable:$true] %s44_s7  ;;  %s67_s9 = int_to_ptr.vmem [resolvable:$true] %s66_s9 }
  0x37   :  { %s10537_s13 = scalar_lea.hbm %s11499_s2, 128 }
  0x38   :  { %p10538_p10 = scmp.ne.s32.totalorder %s11499_s2, %s10537_s13  ;;  %p10541_p11 = scmp.lt.u32.totalorder %s10537_s13, %s11499_s2 }
  0x3a   :  { %p10543_p12 = pnand %p10541_p11, %p10538_p10 }
  0x3c   :  { %10546 = shalt.err (!%p10543_p12)
}
  0x3d   :  { %s10547_s0 = scalar_lea.vmem %s45_s7, 128  ;;  %p10552_p0 = scmp.lt.s32.totalorder %s45_s7, %s45_s7 }
  0x3e   :  { %p10548_p13 = scmp.ne.s32.totalorder %s45_s7, %s10547_s0  ;;  %p10553_p1 = scmp.lt.s32.totalorder %s10547_s0, %s10547_s0 }
  0x40   :  { %p10554_p2 = por %p10553_p1, %p10552_p0 }
  0x42   :  { %p10555_p3 = pnand %p10554_p2, %p10548_p13 }
  0x44   :  { %10558 = shalt.err (!%p10555_p3)
}
  0x45   :  { %47 = dma.hbm_to_vmem [thread:$0]  %s11499_s2, 128, %s45_s7, [#allocation6]  }
  0x46   :  { %s10559_s20 = scalar_lea.hbm %s11501_s4, 128 }
  0x47   :  { %p10560_p4 = scmp.ne.s32.totalorder %s11501_s4, %s10559_s20  ;;  %p10563_p5 = scmp.lt.u32.totalorder %s10559_s20, %s11501_s4 }
  0x49   :  { %p10565_p6 = pnand %p10563_p5, %p10560_p4 }
  0x4b   :  { %10568 = shalt.err (!%p10565_p6)
}
  0x4c   :  { %s10569_s25 = scalar_lea.vmem %s67_s9, 128  ;;  %p10574_p8 = scmp.lt.s32.totalorder %s67_s9, %s67_s9 }
  0x4d   :  { %p10570_p7 = scmp.ne.s32.totalorder %s67_s9, %s10569_s25  ;;  %p10575_p9 = scmp.lt.s32.totalorder %s10569_s25, %s10569_s25 }
  0x4f   :  { %p10576_p10 = por %p10575_p9, %p10574_p8 }
  0x51   :  { %p10577_p11 = pnand %p10576_p10, %p10570_p7 }
  0x53   :  { %10580 = shalt.err (!%p10577_p11)
}
  0x54   :  { %69 = dma.hbm_to_vmem [thread:$0]  %s11501_s4, 128, %s67_s9, [#allocation9]  }
  0x55   :  { %10603 = dma.done.wait [#allocation3], 8192  }
  0x56   :  { %10604 = vsyncadd [#allocation3], 4294959104 }
  0x57   :  { %10605 = dma.done.wait [#allocation6], 65664  }
  0x58   :  { %10606 = vsyncadd [#allocation6], 4294901632 }
  0x59   :  { %10607 = dma.done.wait [#allocation9], 65664  }
  0x5a   :  { %10608 = vsyncadd [#allocation9], 4294901632  ;;  %v181_v0 = vld [vmem:[#allocation5] sm:$0xff]  ;;  %v182_v2 = vld [vmem:[#allocation5 + $0x8] sm:$0xff]  ;;  %s10620_s4 = smov [#allocation11]  }
  0x5b   :  { %v185_v1 = vld [vmem:[#allocation5 + $0x20] sm:$0xff]  ;;  %v186_v4 = vld [vmem:[#allocation5 + $0x28] sm:$0xff]  ;;  %s8910_s27 = sshll.u32 %s10620_s4, 4  ;;  %s8911_s27 = int_to_ptr.vmem [resolvable:$true] %s8910_s27 }
  0x5c   :  { %v8925_v3 = vcombine.high %v181_v0, %v185_v1  ;;  %v8924_v5 = vcombine.low %v181_v0, %v185_v1  ;;  %v189_v6 = vld [vmem:[#allocation5 + $0x40] sm:$0xff]  ;;  %v8927_v8 = vcombine.high %v182_v2, %v186_v4  ;;  %v8926_v9 = vcombine.low %v182_v2, %v186_v4  ;;  %v190_v11 = vld [vmem:[#allocation5 + $0x48] sm:$0xff]  ;;  %s10581_s29 = scalar_lea.vmem %s8911_s27, 8192  ;;  %p10586_p13 = scmp.lt.s32.totalorder %s8911_s27, %s8911_s27 }
  0x5d   :  { %v193_v7 = vld [vmem:[#allocation5 + $0x60] sm:$0xff]  ;;  %v194_v12 = vld [vmem:[#allocation5 + $0x68] sm:$0xff]  ;;  %p10582_p12 = scmp.ne.s32.totalorder %s8911_s27, %s10581_s29  ;;  %p10587_p0 = scmp.lt.s32.totalorder %s10581_s29, %s10581_s29 }
  0x5e   :  { %v8933_v10 = vcombine.high %v189_v6, %v193_v7  ;;  %v197_v13 = vld [vmem:[#allocation5 + $0x80] sm:$0xff]  ;;  %3295 = vmatprep.subr.bf16.mxu0 %v8925_v3  ;;  %v8935_v14 = vcombine.high %v190_v11, %v194_v12  ;;  %v198_v16 = vld [vmem:[#allocation5 + $0x88] sm:$0xff]  ;;  %3587 = vmatprep.subr.bf16.mxu1 %v8927_v8  ;;  %v8932_v18 = vcombine.low %v189_v6, %v193_v7 }
  0x5f   :  { %v201_v15 = vld [vmem:[#allocation5 + $0xa0] sm:$0xff]  ;;  %v202_v17 = vld [vmem:[#allocation5 + $0xa8] sm:$0xff]  ;;  %3296 = vmatpush1.bf16.msra.mxu0 %v8924_v5  ;;  %3588 = vmatpush1.bf16.msra.mxu1 %v8926_v9  ;;  %v8934_v19 = vcombine.low %v190_v11, %v194_v12  ;;  %p10588_p1 = por %p10587_p0, %p10586_p13 }
  0x60   :  { %3297 = vmatprep.subr.bf16.mxu0 %v8933_v10  ;;  %v8941_v20 = vcombine.high %v197_v13, %v201_v15  ;;  %3589 = vmatprep.subr.bf16.mxu1 %v8935_v14  ;;  %v8943_v21 = vcombine.high %v198_v16, %v202_v17  ;;  %v205_v22 = vld [vmem:[#allocation5 + $0xc0] sm:$0xff]  ;;  %v206_v24 = vld [vmem:[#allocation5 + $0xc8] sm:$0xff]  ;;  %v8940_v26 = vcombine.low %v197_v13, %v201_v15 }
  0x61   :  { %v209_v23 = vld [vmem:[#allocation5 + $0xe0] sm:$0xff]  ;;  %v210_v25 = vld [vmem:[#allocation5 + $0xe8] sm:$0xff]  ;;  %v8942_v27 = vcombine.low %v198_v16, %v202_v17  ;;  %p10589_p2 = pnand %p10588_p1, %p10582_p12 }
  0x62   :  { %v8949_v28 = vcombine.high %v205_v22, %v209_v23  ;;  %v8951_v29 = vcombine.high %v206_v24, %v210_v25  ;;  %v213_v30 = vld [vmem:[#allocation5 + $0x100] sm:$0xff]  ;;  %v214_v32 = vld [vmem:[#allocation5 + $0x108] sm:$0xff]  ;;  %v8948_v34 = vcombine.low %v205_v22, %v209_v23  ;;  %v8950_v35 = vcombine.low %v206_v24, %v210_v25 }
  0x63   :  { %3298 = vmatpush1.bf16.msra.mxu0 %v8932_v18  ;;  %3590 = vmatpush1.bf16.msra.mxu1 %v8934_v19  ;;  %v217_v31 = vld [vmem:[#allocation5 + $0x120] sm:$0xff]  ;;  %v218_v33 = vld [vmem:[#allocation5 + $0x128] sm:$0xff] }
  0x64   :  { %3299 = vmatprep.subr.bf16.mxu0 %v8941_v20  ;;  %3591 = vmatprep.subr.bf16.mxu1 %v8943_v21  ;;  %v8957_v36 = vcombine.high %v213_v30, %v217_v31  ;;  %v8959_v37 = vcombine.high %v214_v32, %v218_v33  ;;  %v221_v38 = vld [vmem:[#allocation5 + $0x140] sm:$0xff]  ;;  %v222_v40 = vld [vmem:[#allocation5 + $0x148] sm:$0xff]  ;;  %v8956_v42 = vcombine.low %v213_v30, %v217_v31 }
  0x65   :  { %v225_v39 = vld [vmem:[#allocation5 + $0x160] sm:$0xff]  ;;  %v226_v41 = vld [vmem:[#allocation5 + $0x168] sm:$0xff]  ;;  %v8958_v43 = vcombine.low %v214_v32, %v218_v33 }
  0x66   :  { %v8965_v44 = vcombine.high %v221_v38, %v225_v39  ;;  %v8967_v45 = vcombine.high %v222_v40, %v226_v41  ;;  %v229_v46 = vld [vmem:[#allocation5 + $0x180] sm:$0xff]  ;;  %v230_v48 = vld [vmem:[#allocation5 + $0x188] sm:$0xff]  ;;  %v8964_v50 = vcombine.low %v221_v38, %v225_v39  ;;  %v8966_v51 = vcombine.low %v222_v40, %v226_v41 }
  0x67   :  { %3300 = vmatpush1.bf16.msra.mxu0 %v8940_v26  ;;  %3592 = vmatpush1.bf16.msra.mxu1 %v8942_v27  ;;  %v233_v47 = vld [vmem:[#allocation5 + $0x1a0] sm:$0xff]  ;;  %v234_v49 = vld [vmem:[#allocation5 + $0x1a8] sm:$0xff] }
  0x68   :  { %3301 = vmatprep.subr.bf16.mxu0 %v8949_v28  ;;  %3593 = vmatprep.subr.bf16.mxu1 %v8951_v29  ;;  %v8973_v52 = vcombine.high %v229_v46, %v233_v47  ;;  %v86_v53 = vld [vmem:[#allocation2 + $0x8] sm:$0xff]  ;;  %v8975_v55 = vcombine.high %v230_v48, %v234_v49  ;;  %v237_v56 = vld [vmem:[#allocation5 + $0x1c0] sm:$0xff]  ;;  %v8972_v61 = vcombine.low %v229_v46, %v233_v47 }
  0x69   :  { %v94_v54 = vld [vmem:[#allocation2 + $0x48] sm:$0xff]  ;;  %v241_v57 = vld [vmem:[#allocation5 + $0x1e0] sm:$0xff]  ;;  %v8974_v62 = vcombine.low %v230_v48, %v234_v49 }
  0x6a   :  { %v10714_v58 = vpack.c.bf16 %v94_v54, %v86_v53  ;;  %v238_v59 = vld [vmem:[#allocation5 + $0x1c8] sm:$0xff]  ;;  %v8981_v63 = vcombine.high %v237_v56, %v241_v57  ;;  %v245_v1 = vld [vmem:[#allocation5 + $0x200] sm:$0xff]  ;;  %v8980_v5 = vcombine.low %v237_v56, %v241_v57 }
  0x6b   :  { %3302 = vmatpush1.bf16.msra.mxu0 %v8948_v34  ;;  %3594 = vmatpush1.bf16.msra.mxu1 %v8950_v35  ;;  %v242_v60 = vld [vmem:[#allocation5 + $0x1e8] sm:$0xff]  ;;  %v249_v2 = vld [vmem:[#allocation5 + $0x220] sm:$0xff] }
  0x6c   :  { %3303 = vmatprep.subr.bf16.mxu0 %v8957_v36  ;;  %3595 = vmatprep.subr.bf16.mxu1 %v8959_v37  ;;  %v8983_v0 = vcombine.high %v238_v59, %v242_v60  ;;  %v246_v3 = vld [vmem:[#allocation5 + $0x208] sm:$0xff]  ;;  %v8982_v6 = vcombine.low %v238_v59, %v242_v60  ;;  %v8989_v7 = vcombine.high %v245_v1, %v249_v2  ;;  %v253_v9 = vld [vmem:[#allocation5 + $0x240] sm:$0xff] }
  0x6d   :  { %3327 = vmatprep.mubr.bf16.mxu0 %v10714_v58  ;;  %3619 = vmatprep.mubr.bf16.mxu1 %v10714_v58  ;;  %v250_v4 = vld [vmem:[#allocation5 + $0x228] sm:$0xff]  ;;  %v257_v10 = vld [vmem:[#allocation5 + $0x260] sm:$0xff]  ;;  %v8988_v13 = vcombine.low %v245_v1, %v249_v2 }
  0x6e   :  { %v8991_v8 = vcombine.high %v246_v3, %v250_v4  ;;  %v254_v11 = vld [vmem:[#allocation5 + $0x248] sm:$0xff]  ;;  %v8990_v14 = vcombine.low %v246_v3, %v250_v4  ;;  %v8997_v15 = vcombine.high %v253_v9, %v257_v10  ;;  %v261_v17 = vld [vmem:[#allocation5 + $0x280] sm:$0xff]  ;;  %v8996_v21 = vcombine.low %v253_v9, %v257_v10 }
  0x6f   :  { %3304 = vmatpush1.bf16.msra.mxu0 %v8956_v42  ;;  %3596 = vmatpush1.bf16.msra.mxu1 %v8958_v43  ;;  %v258_v12 = vld [vmem:[#allocation5 + $0x268] sm:$0xff]  ;;  %v265_v18 = vld [vmem:[#allocation5 + $0x2a0] sm:$0xff] }
  0x70   :  { %3305 = vmatprep.subr.bf16.mxu0 %v8965_v44  ;;  %3597 = vmatprep.subr.bf16.mxu1 %v8967_v45  ;;  %v8999_v16 = vcombine.high %v254_v11, %v258_v12  ;;  %v262_v19 = vld [vmem:[#allocation5 + $0x288] sm:$0xff]  ;;  %v8998_v22 = vcombine.low %v254_v11, %v258_v12  ;;  %v9005_v23 = vcombine.high %v261_v17, %v265_v18  ;;  %v269_v25 = vld [vmem:[#allocation5 + $0x2c0] sm:$0xff] }
  0x71   :  { %v266_v20 = vld [vmem:[#allocation5 + $0x2a8] sm:$0xff]  ;;  %v273_v26 = vld [vmem:[#allocation5 + $0x2e0] sm:$0xff]  ;;  %v9004_v29 = vcombine.low %v261_v17, %v265_v18 }
  0x72   :  { %v9007_v24 = vcombine.high %v262_v19, %v266_v20  ;;  %v270_v27 = vld [vmem:[#allocation5 + $0x2c8] sm:$0xff]  ;;  %v9006_v30 = vcombine.low %v262_v19, %v266_v20  ;;  %v9013_v31 = vcombine.high %v269_v25, %v273_v26  ;;  %v277_v33 = vld [vmem:[#allocation5 + $0x300] sm:$0xff]  ;;  %v9012_v37 = vcombine.low %v269_v25, %v273_v26 }
  0x73   :  { %3306 = vmatpush1.bf16.msra.mxu0 %v8964_v50  ;;  %3598 = vmatpush1.bf16.msra.mxu1 %v8966_v51  ;;  %v274_v28 = vld [vmem:[#allocation5 + $0x2e8] sm:$0xff]  ;;  %v281_v34 = vld [vmem:[#allocation5 + $0x320] sm:$0xff] }
  0x74   :  { %3307 = vmatprep.subr.bf16.mxu0 %v8973_v52  ;;  %3599 = vmatprep.subr.bf16.mxu1 %v8975_v55  ;;  %v9015_v32 = vcombine.high %v270_v27, %v274_v28  ;;  %v278_v35 = vld [vmem:[#allocation5 + $0x308] sm:$0xff]  ;;  %v9014_v38 = vcombine.low %v270_v27, %v274_v28  ;;  %v9021_v39 = vcombine.high %v277_v33, %v281_v34  ;;  %v285_v41 = vld [vmem:[#allocation5 + $0x340] sm:$0xff] }
  0x75   :  { %v282_v36 = vld [vmem:[#allocation5 + $0x328] sm:$0xff]  ;;  %v289_v42 = vld [vmem:[#allocation5 + $0x360] sm:$0xff]  ;;  %v9020_v45 = vcombine.low %v277_v33, %v281_v34 }
  0x76   :  { %v9023_v40 = vcombine.high %v278_v35, %v282_v36  ;;  %v286_v43 = vld [vmem:[#allocation5 + $0x348] sm:$0xff]  ;;  %v9022_v46 = vcombine.low %v278_v35, %v282_v36  ;;  %v9029_v47 = vcombine.high %v285_v41, %v289_v42  ;;  %v293_v49 = vld [vmem:[#allocation5 + $0x380] sm:$0xff]  ;;  %v9028_v53 = vcombine.low %v285_v41, %v289_v42 }
  0x77   :  { %3308 = vmatpush1.bf16.msra.mxu0 %v8972_v61  ;;  %3600 = vmatpush1.bf16.msra.mxu1 %v8974_v62  ;;  %v290_v44 = vld [vmem:[#allocation5 + $0x368] sm:$0xff]  ;;  %v297_v50 = vld [vmem:[#allocation5 + $0x3a0] sm:$0xff] }
  0x78   :  { %3309 = vmatprep.subr.bf16.mxu0 %v8981_v63  ;;  %3601 = vmatprep.subr.bf16.mxu1 %v8983_v0  ;;  %v9031_v48 = vcombine.high %v286_v43, %v290_v44  ;;  %v294_v51 = vld [vmem:[#allocation5 + $0x388] sm:$0xff]  ;;  %v9030_v54 = vcombine.low %v286_v43, %v290_v44  ;;  %v9037_v55 = vcombine.high %v293_v49, %v297_v50  ;;  %v301_v57 = vld [vmem:[#allocation5 + $0x3c0] sm:$0xff] }
  0x79   :  { %v298_v52 = vld [vmem:[#allocation5 + $0x3a8] sm:$0xff]  ;;  %v305_v59 = vld [vmem:[#allocation5 + $0x3e0] sm:$0xff]  ;;  %v9036_v62 = vcombine.low %v293_v49, %v297_v50 }
  0x7a   :  { %v9039_v56 = vcombine.high %v294_v51, %v298_v52  ;;  %v302_v60 = vld [vmem:[#allocation5 + $0x3c8] sm:$0xff]  ;;  %v9038_v63 = vcombine.low %v294_v51, %v298_v52  ;;  %v9045_v0 = vcombine.high %v301_v57, %v305_v59  ;;  %v309_v2 = vld [vmem:[#allocation5 + $0x400] sm:$0xff] }
  0x7b   :  { %3310 = vmatpush1.bf16.msra.mxu0 %v8980_v5  ;;  %3602 = vmatpush1.bf16.msra.mxu1 %v8982_v6  ;;  %v306_v61 = vld [vmem:[#allocation5 + $0x3e8] sm:$0xff]  ;;  %v313_v3 = vld [vmem:[#allocation5 + $0x420] sm:$0xff]  ;;  %v9044_v6 = vcombine.low %v301_v57, %v305_v59 }
  0x7c   :  { %3311 = vmatprep.subr.bf16.mxu0 %v8989_v7  ;;  %3603 = vmatprep.subr.bf16.mxu1 %v8991_v8  ;;  %v9047_v1 = vcombine.high %v302_v60, %v306_v61  ;;  %v310_v4 = vld [vmem:[#allocation5 + $0x408] sm:$0xff]  ;;  %v85_v7 = vld [vmem:[#allocation2] sm:$0xff]  ;;  %v9046_v9 = vcombine.low %v302_v60, %v306_v61  ;;  %v9053_v10 = vcombine.high %v309_v2, %v313_v3 }
  0x7d   :  { %v314_v5 = vld [vmem:[#allocation5 + $0x428] sm:$0xff]  ;;  %v93_v8 = vld [vmem:[#allocation2 + $0x40] sm:$0xff]  ;;  %v9052_v19 = vcombine.low %v309_v2, %v313_v3 }
  0x7e   :  { %v9055_v11 = vcombine.high %v310_v4, %v314_v5  ;;  %v317_v12 = vld [vmem:[#allocation5 + $0x440] sm:$0xff]  ;;  %v102_v17 = vld [vmem:[#allocation2 + $0x88] sm:$0xff]  ;;  %v9054_v20 = vcombine.low %v310_v4, %v314_v5 }
  0x7f   :  { %3312 = vmatpush1.bf16.msra.mxu0 %v8988_v13  ;;  %3604 = vmatpush1.bf16.msra.mxu1 %v8990_v14  ;;  %v321_v13 = vld [vmem:[#allocation5 + $0x460] sm:$0xff]  ;;  %v318_v14 = vld [vmem:[#allocation5 + $0x448] sm:$0xff] }
  0x80   :  { %3313 = vmatprep.subr.bf16.mxu0 %v8997_v15  ;;  %3605 = vmatprep.subr.bf16.mxu1 %v8999_v16  ;;  %v10718_v15 = vpack.c.bf16 %v93_v8, %v85_v7  ;;  %v322_v16 = vld [vmem:[#allocation5 + $0x468] sm:$0xff]  ;;  %v9060_v28 = vcombine.low %v317_v12, %v321_v13  ;;  %v333_v34 = vld [vmem:[#allocation5 + $0x4c0] sm:$0xff] }
  0x81   :  { %v110_v18 = vld [vmem:[#allocation2 + $0xc8] sm:$0xff]  ;;  %v337_v35 = vld [vmem:[#allocation5 + $0x4e0] sm:$0xff] }
  0x82   :  { %v10720_v25 = vpack.c.bf16 %v110_v18, %v102_v17  ;;  %v326_v26 = vld [vmem:[#allocation5 + $0x488] sm:$0xff]  ;;  %v9077_v43 = vcombine.high %v333_v34, %v337_v35  ;;  %v9076_v50 = vcombine.low %v333_v34, %v337_v35  ;;  %v117_v51 = vld [vmem:[#allocation2 + $0x100] sm:$0xff] }
  0x83   :  { %3314 = vmatpush1.bf16.msra.mxu0 %v8996_v21  ;;  %3606 = vmatpush1.bf16.msra.mxu1 %v8998_v22  ;;  %v9061_v21 = vcombine.high %v317_v12, %v321_v13  ;;  %v9063_v22 = vcombine.high %v318_v14, %v322_v16  ;;  %v330_v27 = vld [vmem:[#allocation5 + $0x4a8] sm:$0xff]  ;;  %v125_v52 = vld [vmem:[#allocation2 + $0x140] sm:$0xff] }
  0x84   :  { %3315 = vmatprep.subr.bf16.mxu0 %v9005_v23  ;;  %3607 = vmatprep.subr.bf16.mxu1 %v9007_v24  ;;  %v325_v23 = vld [vmem:[#allocation5 + $0x480] sm:$0xff]  ;;  %v9071_v33 = vcombine.high %v326_v26, %v330_v27  ;;  %v334_v36 = vld [vmem:[#allocation5 + $0x4c8] sm:$0xff]  ;;  %v9070_v42 = vcombine.low %v326_v26, %v330_v27  ;;  %v10734_v61 = vpack.c.bf16 %v125_v52, %v117_v51 }
  0x85   :  { %v329_v24 = vld [vmem:[#allocation5 + $0x4a0] sm:$0xff]  ;;  %v346_v49 = vld [vmem:[#allocation5 + $0x528] sm:$0xff] }
  0x86   :  { %v9068_v41 = vcombine.low %v325_v23, %v329_v24  ;;  %v353_v57 = vld [vmem:[#allocation5 + $0x560] sm:$0xff]  ;;  %v350_v59 = vld [vmem:[#allocation5 + $0x548] sm:$0xff] }
  0x87   :  { %3316 = vmatpush1.bf16.msra.mxu0 %v9004_v29  ;;  %3608 = vmatpush1.bf16.msra.mxu1 %v9006_v30  ;;  %v101_v29 = vld [vmem:[#allocation2 + $0x80] sm:$0xff]  ;;  %v354_v60 = vld [vmem:[#allocation5 + $0x568] sm:$0xff] }
  0x88   :  { %3317 = vmatprep.subr.bf16.mxu0 %v9013_v31  ;;  %3609 = vmatprep.subr.bf16.mxu1 %v9015_v32  ;;  %v109_v30 = vld [vmem:[#allocation2 + $0xc0] sm:$0xff]  ;;  %v9062_v31 = vcombine.low %v318_v14, %v322_v16  ;;  %v9069_v32 = vcombine.high %v325_v23, %v329_v24  ;;  %v9095_v3 = vcombine.high %v350_v59, %v354_v60  ;;  %v358_v7 = vld [vmem:[#allocation5 + $0x588] sm:$0xff] }
  0x89   :  { %v357_v4 = vld [vmem:[#allocation5 + $0x580] sm:$0xff]  ;;  %v362_v8 = vld [vmem:[#allocation5 + $0x5a8] sm:$0xff]  ;;  %v9094_v12 = vcombine.low %v350_v59, %v354_v60 }
  0x8a   :  { %v361_v5 = vld [vmem:[#allocation5 + $0x5a0] sm:$0xff]  ;;  %v9103_v14 = vcombine.high %v358_v7, %v362_v8  ;;  %v366_v18 = vld [vmem:[#allocation5 + $0x5c8] sm:$0xff]  ;;  %v9102_v24 = vcombine.low %v358_v7, %v362_v8 }
  0x8b   :  { %3318 = vmatpush1.bf16.msra.mxu0 %v9012_v37  ;;  %3610 = vmatpush1.bf16.msra.mxu1 %v9014_v38  ;;  %v338_v37 = vld [vmem:[#allocation5 + $0x4e8] sm:$0xff]  ;;  %v10726_v38 = vpack.c.bf16 %v109_v30, %v101_v29  ;;  %v9101_v13 = vcombine.high %v357_v4, %v361_v5  ;;  %v365_v16 = vld [vmem:[#allocation5 + $0x5c0] sm:$0xff]  ;;  %v9100_v23 = vcombine.low %v357_v4, %v361_v5 }
  0x8c   :  { %3319 = vmatprep.subr.bf16.mxu0 %v9021_v39  ;;  %3611 = vmatprep.subr.bf16.mxu1 %v9023_v40  ;;  %v118_v39 = vld [vmem:[#allocation2 + $0x108] sm:$0xff]  ;;  %v9079_v44 = vcombine.high %v334_v36, %v338_v37  ;;  %v369_v17 = vld [vmem:[#allocation5 + $0x5e0] sm:$0xff] }
  0x8d   :  { %v126_v40 = vld [vmem:[#allocation2 + $0x148] sm:$0xff]  ;;  %v9109_v26 = vcombine.high %v365_v16, %v369_v17  ;;  %v377_v29 = vld [vmem:[#allocation5 + $0x620] sm:$0xff] }
  0x8e   :  { %v402_v59 = vld [vmem:[#allocation5 + $0x6e8] sm:$0xff] }
  0x8f   :  { %3320 = vmatpush1.bf16.msra.mxu0 %v9020_v45  ;;  %3612 = vmatpush1.bf16.msra.mxu1 %v9022_v46  ;;  %v341_v45 = vld [vmem:[#allocation5 + $0x500] sm:$0xff]  ;;  %v410_v4 = vld [vmem:[#allocation5 + $0x728] sm:$0xff] }
  0x90   :  { %3321 = vmatprep.subr.bf16.mxu0 %v9029_v47  ;;  %3613 = vmatprep.subr.bf16.mxu1 %v9031_v48  ;;  %v345_v46 = vld [vmem:[#allocation5 + $0x520] sm:$0xff]  ;;  %v10728_v47 = vpack.c.bf16 %v126_v40, %v118_v39  ;;  %v342_v48 = vld [vmem:[#allocation5 + $0x508] sm:$0xff] }
  0x91   :  { %v385_v39 = vld [vmem:[#allocation5 + $0x660] sm:$0xff]  ;;  %v382_v40 = vld [vmem:[#allocation5 + $0x648] sm:$0xff] }
  0x93   :  { %3322 = vmatpush1.bf16.msra.mxu0 %v9028_v53  ;;  %3614 = vmatpush1.bf16.msra.mxu1 %v9030_v54  ;;  %v9078_v53 = vcombine.low %v334_v36, %v338_v37  ;;  %v9085_v54 = vcombine.high %v341_v45, %v345_v46  ;;  %v381_v37 = vld [vmem:[#allocation5 + $0x640] sm:$0xff] }
  0x94   :  { %3323 = vmatprep.subr.bf16.mxu0 %v9037_v55  ;;  %3615 = vmatprep.subr.bf16.mxu1 %v9039_v56  ;;  %v9087_v55 = vcombine.high %v342_v48, %v346_v49  ;;  %v349_v56 = vld [vmem:[#allocation5 + $0x540] sm:$0xff]  ;;  %v9124_v51 = vcombine.low %v381_v37, %v385_v39 }
  0x95   :  { %v9093_v2 = vcombine.high %v349_v56, %v353_v57 }
  0x97   :  { %3324 = vmatpush1.bf16.msra.mxu0 %v9036_v62  ;;  %3616 = vmatpush1.bf16.msra.mxu1 %v9038_v63  ;;  %v134_v62 = vld [vmem:[#allocation2 + $0x188] sm:$0xff] }
  0x98   :  { %3325 = vmatprep.subr.bf16.mxu0 %v9045_v0  ;;  %3617 = vmatprep.subr.bf16.mxu1 %v9047_v1  ;;  %v142_v63 = vld [vmem:[#allocation2 + $0x1c8] sm:$0xff]  ;;  %v9084_v0 = vcombine.low %v341_v45, %v345_v46  ;;  %v9086_v1 = vcombine.low %v342_v48, %v346_v49  ;;  %v389_v46 = vld [vmem:[#allocation5 + $0x680] sm:$0xff] }
  0x99   :  { %v393_v48 = vld [vmem:[#allocation5 + $0x6a0] sm:$0xff]  ;;  %v390_v49 = vld [vmem:[#allocation5 + $0x688] sm:$0xff] }
  0x9a   :  { %v9132_v60 = vcombine.low %v389_v46, %v393_v48 }
  0x9b   :  { %3326 = vmatpush1.bf16.msra.mxu0 %v9044_v6  ;;  %3618 = vmatpush1.bf16.msra.mxu1 %v9046_v9  ;;  %v10736_v6 = vpack.c.bf16 %v142_v63, %v134_v62  ;;  %v9092_v9 = vcombine.low %v349_v56, %v353_v57  ;;  %v401_v56 = vld [vmem:[#allocation5 + $0x6e0] sm:$0xff]  ;;  %v398_v57 = vld [vmem:[#allocation5 + $0x6c8] sm:$0xff] }
  0x9c   :  { %3368 = vmatprep.subr.bf16.mxu0 %v9053_v10  ;;  %3660 = vmatprep.subr.bf16.mxu1 %v9055_v11  ;;  %v133_v10 = vld [vmem:[#allocation2 + $0x180] sm:$0xff]  ;;  %v9142_v7 = vcombine.low %v398_v57, %v402_v59 }
  0x9d   :  { %v141_v11 = vld [vmem:[#allocation2 + $0x1c0] sm:$0xff] }
  0x9e   :  { %3328 = vmatmul.mubr.bf16.vlgmr.msra.gmra.mrb[0].mxu0 %v10718_v15  ;;  %3620 = vmatmul.mubr.bf16.vlgmr.msra.gmra.mrb[0].mxu1 %v10718_v15 }
  0x9f   :  { %3369 = vmatpush1.bf16.msra.mxu0 %v9052_v19  ;;  %3661 = vmatpush1.bf16.msra.mxu1 %v9054_v20  ;;  %v370_v19 = vld [vmem:[#allocation5 + $0x5e8] sm:$0xff]  ;;  %v10742_v20 = vpack.c.bf16 %v141_v11, %v133_v10  ;;  %v413_v10 = vld [vmem:[#allocation5 + $0x740] sm:$0xff] }
  0xa0   :  { %3370 = vmatprep.subr.bf16.mxu0 %v9061_v21  ;;  %3662 = vmatprep.subr.bf16.mxu1 %v9063_v22  ;;  %v88_v21 = vld [vmem:[#allocation2 + $0x18] sm:$0xff]  ;;  %v9111_v27 = vcombine.high %v366_v18, %v370_v19  ;;  %v9110_v34 = vcombine.low %v366_v18, %v370_v19  ;;  %v417_v11 = vld [vmem:[#allocation5 + $0x760] sm:$0xff] }
  0xa1   :  { %3337 = vmatprep.mubr.bf16.mxu0 %v10720_v25  ;;  %3629 = vmatprep.mubr.bf16.mxu1 %v10720_v25  ;;  %v96_v22 = vld [vmem:[#allocation2 + $0x58] sm:$0xff]  ;;  %v421_v19 = vld [vmem:[#allocation5 + $0x780] sm:$0xff] }
  0xa2   :  { %v10744_v30 = vpack.c.bf16 %v96_v22, %v88_v21  ;;  %v425_v21 = vld [vmem:[#allocation5 + $0x7a0] sm:$0xff]  ;;  %v422_v22 = vld [vmem:[#allocation5 + $0x788] sm:$0xff] }
  0xa3   :  { %3371 = vmatpush1.bf16.msra.mxu0 %v9060_v28  ;;  %3663 = vmatpush1.bf16.msra.mxu1 %v9062_v31  ;;  %v373_v28 = vld [vmem:[#allocation5 + $0x600] sm:$0xff]  ;;  %v374_v31 = vld [vmem:[#allocation5 + $0x608] sm:$0xff] }
  0xa4   :  { %3372 = vmatprep.subr.bf16.mxu0 %v9069_v32  ;;  %3664 = vmatprep.subr.bf16.mxu1 %v9071_v33  ;;  %v378_v32 = vld [vmem:[#allocation5 + $0x628] sm:$0xff]  ;;  %v9108_v33 = vcombine.low %v365_v16, %v369_v17  ;;  %v9117_v35 = vcombine.high %v373_v28, %v377_v29  ;;  %v9157_v17 = vcombine.high %v413_v10, %v417_v11 }
  0xa5   :  { %v9119_v36 = vcombine.high %v374_v31, %v378_v32 }
  0xa6   :  { %3338 = vmatmul.mubr.bf16.gmra.mrb[4].mxu0 %v10726_v38  ;;  %3630 = vmatmul.mubr.bf16.gmra.mrb[4].mxu1 %v10726_v38 }
  0xa7   :  { %3373 = vmatpush1.bf16.msra.mxu0 %v9068_v41  ;;  %3665 = vmatpush1.bf16.msra.mxu1 %v9070_v42  ;;  %v386_v41 = vld [vmem:[#allocation5 + $0x668] sm:$0xff]  ;;  %v9116_v42 = vcombine.low %v373_v28, %v377_v29  ;;  %v429_v29 = vld [vmem:[#allocation5 + $0x7c0] sm:$0xff] }
  0xa8   :  { %3374 = vmatprep.subr.bf16.mxu0 %v9077_v43  ;;  %3666 = vmatprep.subr.bf16.mxu1 %v9079_v44  ;;  %v9118_v43 = vcombine.low %v374_v31, %v378_v32  ;;  %v9125_v44 = vcombine.high %v381_v37, %v385_v39  ;;  %v9127_v45 = vcombine.high %v382_v40, %v386_v41  ;;  %v433_v31 = vld [vmem:[#allocation5 + $0x7e0] sm:$0xff]  ;;  %v430_v32 = vld [vmem:[#allocation5 + $0x7c8] sm:$0xff] }
  0xa9   :  { %3347 = vmatprep.mubr.bf16.mxu0 %v10728_v47  ;;  %3639 = vmatprep.mubr.bf16.mxu1 %v10728_v47  ;;  %v9126_v52 = vcombine.low %v382_v40, %v386_v41  ;;  %v437_v39 = vld [vmem:[#allocation5 + $0x800] sm:$0xff]  ;;  %v438_v41 = vld [vmem:[#allocation5 + $0x808] sm:$0xff] }
  0xaa   :  { %v441_v40 = vld [vmem:[#allocation5 + $0x820] sm:$0xff] }
  0xab   :  { %3375 = vmatpush1.bf16.msra.mxu0 %v9076_v50  ;;  %3667 = vmatpush1.bf16.msra.mxu1 %v9078_v53  ;;  %v394_v50 = vld [vmem:[#allocation5 + $0x6a8] sm:$0xff]  ;;  %v9133_v53 = vcombine.high %v389_v46, %v393_v48  ;;  %v9181_v48 = vcombine.high %v437_v39, %v441_v40 }
  0xac   :  { %3376 = vmatprep.subr.bf16.mxu0 %v9085_v54  ;;  %3668 = vmatprep.subr.bf16.mxu1 %v9087_v55  ;;  %v9135_v54 = vcombine.high %v390_v49, %v394_v50  ;;  %v397_v55 = vld [vmem:[#allocation5 + $0x6c0] sm:$0xff]  ;;  %v9134_v62 = vcombine.low %v390_v49, %v394_v50 }
  0xad   :  { %v9141_v63 = vcombine.high %v397_v55, %v401_v56  ;;  %v9140_v5 = vcombine.low %v397_v55, %v401_v56  ;;  %v445_v50 = vld [vmem:[#allocation5 + $0x840] sm:$0xff]  ;;  %v104_v55 = vld [vmem:[#allocation2 + $0x98] sm:$0xff] }
  0xae   :  { %3348 = vmatmul.mubr.bf16.gmra.mrb[8].mxu0 %v10734_v61  ;;  %3640 = vmatmul.mubr.bf16.gmra.mrb[8].mxu1 %v10734_v61  ;;  %v112_v56 = vld [vmem:[#allocation2 + $0xd8] sm:$0xff] }
  0xaf   :  { %3377 = vmatpush1.bf16.msra.mxu0 %v9084_v0  ;;  %3669 = vmatpush1.bf16.msra.mxu1 %v9086_v1  ;;  %v9143_v0 = vcombine.high %v398_v57, %v402_v59  ;;  %v405_v1 = vld [vmem:[#allocation5 + $0x700] sm:$0xff]  ;;  %v9180_v57 = vcombine.low %v437_v39, %v441_v40  ;;  %v478_v40 = vld [vmem:[#allocation5 + $0x948] sm:$0xff] }
  0xb0   :  { %3378 = vmatprep.subr.bf16.mxu0 %v9093_v2  ;;  %3670 = vmatprep.subr.bf16.mxu1 %v9095_v3  ;;  %v409_v2 = vld [vmem:[#allocation5 + $0x720] sm:$0xff]  ;;  %v406_v3 = vld [vmem:[#allocation5 + $0x708] sm:$0xff] }
  0xb1   :  { %3357 = vmatprep.mubr.bf16.mxu0 %v10736_v6  ;;  %3649 = vmatprep.mubr.bf16.mxu1 %v10736_v6  ;;  %v9149_v8 = vcombine.high %v405_v1, %v409_v2  ;;  %v9150_v16 = vcombine.low %v406_v3, %v410_v4  ;;  %v481_v39 = vld [vmem:[#allocation5 + $0x960] sm:$0xff] }
  0xb3   :  { %3379 = vmatpush1.bf16.msra.mxu0 %v9092_v9  ;;  %3671 = vmatpush1.bf16.msra.mxu1 %v9094_v12  ;;  %v9151_v9 = vcombine.high %v406_v3, %v410_v4  ;;  %v414_v12 = vld [vmem:[#allocation5 + $0x748] sm:$0xff] }
  0xb4   :  { %3380 = vmatprep.subr.bf16.mxu0 %v9101_v13  ;;  %3672 = vmatprep.subr.bf16.mxu1 %v9103_v14  ;;  %v418_v13 = vld [vmem:[#allocation5 + $0x768] sm:$0xff]  ;;  %v9148_v14 = vcombine.low %v405_v1, %v409_v2  ;;  %v10752_v1 = vpack.c.bf16 %v112_v56, %v104_v55 }
  0xb5   :  { %v9159_v18 = vcombine.high %v414_v12, %v418_v13  ;;  %v454_v2 = vld [vmem:[#allocation5 + $0x888] sm:$0xff] }
  0xb6   :  { %3358 = vmatmul.mubr.bf16.gmra.mrb[12].mxu0 %v10742_v20  ;;  %3650 = vmatmul.mubr.bf16.gmra.mrb[12].mxu1 %v10742_v20  ;;  %v458_v3 = vld [vmem:[#allocation5 + $0x8a8] sm:$0xff] }
  0xb7   :  { %3381 = vmatpush1.bf16.msra.mxu0 %v9100_v23  ;;  %3673 = vmatpush1.bf16.msra.mxu1 %v9102_v24  ;;  %v426_v23 = vld [vmem:[#allocation5 + $0x7a8] sm:$0xff]  ;;  %v9156_v24 = vcombine.low %v413_v10, %v417_v11  ;;  %v9199_v10 = vcombine.high %v454_v2, %v458_v3  ;;  %v461_v11 = vld [vmem:[#allocation5 + $0x8c0] sm:$0xff] }
  0xb8   :  { %3382 = vmatprep.subr.bf16.mxu0 %v9109_v26  ;;  %3674 = vmatprep.subr.bf16.mxu1 %v9111_v27  ;;  %v9158_v26 = vcombine.low %v414_v12, %v418_v13  ;;  %v9165_v27 = vcombine.high %v421_v19, %v425_v21  ;;  %v9167_v28 = vcombine.high %v422_v22, %v426_v23  ;;  %v465_v12 = vld [vmem:[#allocation5 + $0x8e0] sm:$0xff]  ;;  %v462_v13 = vld [vmem:[#allocation5 + $0x8c8] sm:$0xff] }
  0xb9   :  { %3400 = vmatprep.mubr.bf16.mxu0 %v10744_v30  ;;  %3692 = vmatprep.mubr.bf16.mxu1 %v10744_v30  ;;  %v490_v55 = vld [vmem:[#allocation5 + $0x9a8] sm:$0xff] }
  0xbb   :  { %3383 = vmatpush1.bf16.msra.mxu0 %v9108_v33  ;;  %3675 = vmatpush1.bf16.msra.mxu1 %v9110_v34  ;;  %v434_v33 = vld [vmem:[#allocation5 + $0x7e8] sm:$0xff]  ;;  %v9164_v34 = vcombine.low %v421_v19, %v425_v21  ;;  %v9198_v21 = vcombine.low %v454_v2, %v458_v3  ;;  %v497_v2 = vld [vmem:[#allocation5 + $0x9e0] sm:$0xff] }
  0xbc   :  { %3384 = vmatprep.subr.bf16.mxu0 %v9117_v35  ;;  %3676 = vmatprep.subr.bf16.mxu1 %v9119_v36  ;;  %v9166_v35 = vcombine.low %v422_v22, %v426_v23  ;;  %v9173_v36 = vcombine.high %v429_v29, %v433_v31  ;;  %v9175_v37 = vcombine.high %v430_v32, %v434_v33  ;;  %v494_v3 = vld [vmem:[#allocation5 + $0x9c8] sm:$0xff] }
  0xbd   :  { %v9174_v46 = vcombine.low %v430_v32, %v434_v33  ;;  %v9205_v22 = vcombine.high %v461_v11, %v465_v12  ;;  %v119_v32 = vld [vmem:[#allocation2 + $0x110] sm:$0xff] }
  0xbe   :  { %v127_v33 = vld [vmem:[#allocation2 + $0x150] sm:$0xff] }
  0xbf   :  { %3385 = vmatpush1.bf16.msra.mxu0 %v9116_v42  ;;  %3677 = vmatpush1.bf16.msra.mxu1 %v9118_v43  ;;  %v442_v42 = vld [vmem:[#allocation5 + $0x828] sm:$0xff]  ;;  %v9172_v43 = vcombine.low %v429_v29, %v433_v31  ;;  %v9204_v31 = vcombine.low %v461_v11, %v465_v12 }
  0xc0   :  { %3386 = vmatprep.subr.bf16.mxu0 %v9125_v44  ;;  %3678 = vmatprep.subr.bf16.mxu1 %v9127_v45  ;;  %v87_v44 = vld [vmem:[#allocation2 + $0x10] sm:$0xff]  ;;  %v9183_v49 = vcombine.high %v438_v41, %v442_v42  ;;  %v9182_v59 = vcombine.low %v438_v41, %v442_v42  ;;  %v474_v29 = vld [vmem:[#allocation5 + $0x928] sm:$0xff]  ;;  %v10766_v42 = vpack.c.bf16 %v127_v33, %v119_v32 }
  0xc1   :  { %v95_v45 = vld [vmem:[#allocation2 + $0x50] sm:$0xff]  ;;  %v482_v41 = vld [vmem:[#allocation5 + $0x968] sm:$0xff] }
  0xc3   :  { %3387 = vmatpush1.bf16.msra.mxu0 %v9124_v51  ;;  %3679 = vmatpush1.bf16.msra.mxu1 %v9126_v52  ;;  %v449_v51 = vld [vmem:[#allocation5 + $0x860] sm:$0xff]  ;;  %v446_v52 = vld [vmem:[#allocation5 + $0x848] sm:$0xff] }
  0xc4   :  { %3388 = vmatprep.subr.bf16.mxu0 %v9133_v53  ;;  %3680 = vmatprep.subr.bf16.mxu1 %v9135_v54  ;;  %v10750_v53 = vpack.c.bf16 %v95_v45, %v87_v44  ;;  %v450_v54 = vld [vmem:[#allocation5 + $0x868] sm:$0xff]  ;;  %v9188_v4 = vcombine.low %v445_v50, %v449_v51  ;;  %v144_v44 = vld [vmem:[#allocation2 + $0x1d8] sm:$0xff] }
  0xc7   :  { %3389 = vmatpush1.bf16.msra.mxu0 %v9132_v60  ;;  %3681 = vmatpush1.bf16.msra.mxu1 %v9134_v62  ;;  %v9189_v60 = vcombine.high %v445_v50, %v449_v51  ;;  %v9191_v62 = vcombine.high %v446_v52, %v450_v54  ;;  %v485_v50 = vld [vmem:[#allocation5 + $0x980] sm:$0xff] }
  0xc8   :  { %3390 = vmatprep.subr.bf16.mxu0 %v9141_v63  ;;  %3682 = vmatprep.subr.bf16.mxu1 %v9143_v0  ;;  %v453_v63 = vld [vmem:[#allocation5 + $0x880] sm:$0xff] }
  0xc9   :  { %v457_v0 = vld [vmem:[#allocation5 + $0x8a0] sm:$0xff] }
  0xca   :  { %v9196_v19 = vcombine.low %v453_v63, %v457_v0  ;;  %v489_v51 = vld [vmem:[#allocation5 + $0x9a0] sm:$0xff] }
  0xcb   :  { %3391 = vmatpush1.bf16.msra.mxu0 %v9140_v5  ;;  %3683 = vmatpush1.bf16.msra.mxu1 %v9142_v7  ;;  %v103_v5 = vld [vmem:[#allocation2 + $0x90] sm:$0xff] }
  0xcc   :  { %3392 = vmatprep.subr.bf16.mxu0 %v9149_v8  ;;  %3684 = vmatprep.subr.bf16.mxu1 %v9151_v9  ;;  %v111_v7 = vld [vmem:[#allocation2 + $0xd0] sm:$0xff]  ;;  %v9190_v8 = vcombine.low %v446_v52, %v450_v54  ;;  %v9197_v9 = vcombine.high %v453_v63, %v457_v0  ;;  %v486_v54 = vld [vmem:[#allocation5 + $0x988] sm:$0xff]  ;;  %v493_v0 = vld [vmem:[#allocation5 + $0x9c0] sm:$0xff] }
  0xcd   :  { %v9231_v63 = vcombine.high %v486_v54, %v490_v55  ;;  %v9237_v11 = vcombine.high %v493_v0, %v497_v2 }
  0xcf   :  { %3393 = vmatpush1.bf16.msra.mxu0 %v9148_v14  ;;  %3685 = vmatpush1.bf16.msra.mxu1 %v9150_v16  ;;  %v466_v14 = vld [vmem:[#allocation5 + $0x8e8] sm:$0xff]  ;;  %v10758_v16 = vpack.c.bf16 %v111_v7, %v103_v5 }
  0xd0   :  { %3394 = vmatprep.subr.bf16.mxu0 %v9157_v17  ;;  %3686 = vmatprep.subr.bf16.mxu1 %v9159_v18  ;;  %v120_v17 = vld [vmem:[#allocation2 + $0x118] sm:$0xff]  ;;  %v9207_v23 = vcombine.high %v462_v13, %v466_v14  ;;  %v90_v7 = vld [vmem:[#allocation2 + $0x28] sm:$0xff] }
  0xd1   :  { %v128_v18 = vld [vmem:[#allocation2 + $0x158] sm:$0xff] }
  0xd3   :  { %3395 = vmatpush1.bf16.msra.mxu0 %v9156_v24  ;;  %3687 = vmatpush1.bf16.msra.mxu1 %v9158_v26  ;;  %v469_v24 = vld [vmem:[#allocation5 + $0x900] sm:$0xff] }
  0xd4   :  { %3396 = vmatprep.subr.bf16.mxu0 %v9165_v27  ;;  %3688 = vmatprep.subr.bf16.mxu1 %v9167_v28  ;;  %v473_v26 = vld [vmem:[#allocation5 + $0x920] sm:$0xff]  ;;  %v10760_v27 = vpack.c.bf16 %v128_v18, %v120_v17  ;;  %v470_v28 = vld [vmem:[#allocation5 + $0x908] sm:$0xff] }
  0xd5   :  { %v9212_v45 = vcombine.low %v469_v24, %v473_v26  ;;  %v502_v18 = vld [vmem:[#allocation5 + $0xa08] sm:$0xff] }
  0xd7   :  { %3397 = vmatpush1.bf16.msra.mxu0 %v9164_v34  ;;  %3689 = vmatpush1.bf16.msra.mxu1 %v9166_v35  ;;  %v9206_v34 = vcombine.low %v462_v13, %v466_v14  ;;  %v9213_v35 = vcombine.high %v469_v24, %v473_v26  ;;  %v501_v13 = vld [vmem:[#allocation5 + $0xa00] sm:$0xff] }
  0xd8   :  { %3398 = vmatprep.subr.bf16.mxu0 %v9173_v36  ;;  %3690 = vmatprep.subr.bf16.mxu1 %v9175_v37  ;;  %v9215_v36 = vcombine.high %v470_v28, %v474_v29  ;;  %v477_v37 = vld [vmem:[#allocation5 + $0x940] sm:$0xff] }
  0xd9   :  { %v9220_v56 = vcombine.low %v477_v37, %v481_v39  ;;  %v505_v14 = vld [vmem:[#allocation5 + $0xa20] sm:$0xff] }
  0xda   :  { %v509_v26 = vld [vmem:[#allocation5 + $0xa40] sm:$0xff]  ;;  %v9244_v32 = vcombine.low %v501_v13, %v505_v14 }
  0xdb   :  { %3399 = vmatpush1.bf16.msra.mxu0 %v9172_v43  ;;  %3691 = vmatpush1.bf16.msra.mxu1 %v9174_v46  ;;  %v136_v43 = vld [vmem:[#allocation2 + $0x198] sm:$0xff]  ;;  %v9214_v46 = vcombine.low %v470_v28, %v474_v29  ;;  %v513_v28 = vld [vmem:[#allocation5 + $0xa60] sm:$0xff]  ;;  %v510_v29 = vld [vmem:[#allocation5 + $0xa48] sm:$0xff] }
  0xdc   :  { %3441 = vmatprep.subr.bf16.mxu0 %v9181_v48  ;;  %3733 = vmatprep.subr.bf16.mxu1 %v9183_v49  ;;  %v9221_v48 = vcombine.high %v477_v37, %v481_v39  ;;  %v9223_v49 = vcombine.high %v478_v40, %v482_v41  ;;  %v10768_v52 = vpack.c.bf16 %v144_v44, %v136_v43  ;;  %v521_v37 = vld [vmem:[#allocation5 + $0xaa0] sm:$0xff]  ;;  %v518_v39 = vld [vmem:[#allocation5 + $0xa88] sm:$0xff] }
  0xde   :  { %3401 = vmatmul.mubr.bf16.vlgmr.msra.gmra.mrb[0].mxu0 %v10750_v53  ;;  %3693 = vmatmul.mubr.bf16.vlgmr.msra.gmra.mrb[0].mxu1 %v10750_v53 }
  0xdf   :  { %3442 = vmatpush1.bf16.msra.mxu0 %v9180_v57  ;;  %3734 = vmatpush1.bf16.msra.mxu1 %v9182_v59  ;;  %v135_v57 = vld [vmem:[#allocation2 + $0x190] sm:$0xff] }
  0xe0   :  { %3443 = vmatprep.subr.bf16.mxu0 %v9189_v60  ;;  %3735 = vmatprep.subr.bf16.mxu1 %v9191_v62  ;;  %v143_v59 = vld [vmem:[#allocation2 + $0x1d0] sm:$0xff]  ;;  %v9222_v60 = vcombine.low %v478_v40, %v482_v41  ;;  %v9229_v62 = vcombine.high %v485_v50, %v489_v51  ;;  %v522_v40 = vld [vmem:[#allocation5 + $0xaa8] sm:$0xff]  ;;  %v9252_v41 = vcombine.low %v509_v26, %v513_v28 }
  0xe1   :  { %3410 = vmatprep.mubr.bf16.mxu0 %v10752_v1  ;;  %3702 = vmatprep.mubr.bf16.mxu1 %v10752_v1  ;;  %v10774_v5 = vpack.c.bf16 %v143_v59, %v135_v57  ;;  %v533_v57 = vld [vmem:[#allocation5 + $0xb00] sm:$0xff] }
  0xe2   :  { %v537_v59 = vld [vmem:[#allocation5 + $0xb20] sm:$0xff] }
  0xe3   :  { %3444 = vmatpush1.bf16.msra.mxu0 %v9188_v4  ;;  %3736 = vmatpush1.bf16.msra.mxu1 %v9190_v8  ;;  %v498_v4 = vld [vmem:[#allocation5 + $0x9e8] sm:$0xff] }
  0xe4   :  { %3445 = vmatprep.subr.bf16.mxu0 %v9197_v9  ;;  %3737 = vmatprep.subr.bf16.mxu1 %v9199_v10  ;;  %v98_v8 = vld [vmem:[#allocation2 + $0x68] sm:$0xff]  ;;  %v9228_v9 = vcombine.low %v485_v50, %v489_v51  ;;  %v9230_v10 = vcombine.low %v486_v54, %v490_v55  ;;  %v9239_v12 = vcombine.high %v494_v3, %v498_v4 }
  0xe5   :  { %v10776_v17 = vpack.c.bf16 %v98_v8, %v90_v7  ;;  %v530_v50 = vld [vmem:[#allocation5 + $0xae8] sm:$0xff]  ;;  %v9262_v54 = vcombine.low %v518_v39, %v522_v40  ;;  %v545_v7 = vld [vmem:[#allocation5 + $0xb60] sm:$0xff] }
  0xe6   :  { %3411 = vmatmul.mubr.bf16.gmra.mrb[4].mxu0 %v10758_v16  ;;  %3703 = vmatmul.mubr.bf16.gmra.mrb[4].mxu1 %v10758_v16  ;;  %v542_v8 = vld [vmem:[#allocation5 + $0xb48] sm:$0xff] }
  0xe7   :  { %3446 = vmatpush1.bf16.msra.mxu0 %v9196_v19  ;;  %3738 = vmatpush1.bf16.msra.mxu1 %v9198_v21  ;;  %v506_v19 = vld [vmem:[#allocation5 + $0xa28] sm:$0xff]  ;;  %v9236_v21 = vcombine.low %v493_v0, %v497_v2  ;;  %v9277_v2 = vcombine.high %v533_v57, %v537_v59 }
  0xe8   :  { %3447 = vmatprep.subr.bf16.mxu0 %v9205_v22  ;;  %3739 = vmatprep.subr.bf16.mxu1 %v9207_v23  ;;  %v9238_v22 = vcombine.low %v494_v3, %v498_v4  ;;  %v9245_v23 = vcombine.high %v501_v13, %v505_v14  ;;  %v9247_v24 = vcombine.high %v502_v18, %v506_v19  ;;  %v541_v4 = vld [vmem:[#allocation5 + $0xb40] sm:$0xff] }
  0xe9   :  { %3420 = vmatprep.mubr.bf16.mxu0 %v10760_v27  ;;  %3712 = vmatprep.mubr.bf16.mxu1 %v10760_v27  ;;  %v9246_v33 = vcombine.low %v502_v18, %v506_v19  ;;  %v549_v14 = vld [vmem:[#allocation5 + $0xb80] sm:$0xff]  ;;  %v550_v19 = vld [vmem:[#allocation5 + $0xb88] sm:$0xff] }
  0xea   :  { %v553_v18 = vld [vmem:[#allocation5 + $0xba0] sm:$0xff] }
  0xeb   :  { %3448 = vmatpush1.bf16.msra.mxu0 %v9204_v31  ;;  %3740 = vmatpush1.bf16.msra.mxu1 %v9206_v34  ;;  %v514_v31 = vld [vmem:[#allocation5 + $0xa68] sm:$0xff]  ;;  %v9253_v34 = vcombine.high %v509_v26, %v513_v28  ;;  %v557_v28 = vld [vmem:[#allocation5 + $0xbc0] sm:$0xff] }
  0xec   :  { %3449 = vmatprep.subr.bf16.mxu0 %v9213_v35  ;;  %3741 = vmatprep.subr.bf16.mxu1 %v9215_v36  ;;  %v9255_v35 = vcombine.high %v510_v29, %v514_v31  ;;  %v517_v36 = vld [vmem:[#allocation5 + $0xa80] sm:$0xff]  ;;  %v9254_v43 = vcombine.low %v510_v29, %v514_v31  ;;  %v558_v31 = vld [vmem:[#allocation5 + $0xbc8] sm:$0xff] }
  0xed   :  { %v9261_v44 = vcombine.high %v517_v36, %v521_v37  ;;  %v9260_v51 = vcombine.low %v517_v36, %v521_v37  ;;  %v561_v29 = vld [vmem:[#allocation5 + $0xbe0] sm:$0xff] }
  0xee   :  { %3421 = vmatmul.mubr.bf16.gmra.mrb[8].mxu0 %v10766_v42  ;;  %3713 = vmatmul.mubr.bf16.gmra.mrb[8].mxu1 %v10766_v42  ;;  %v565_v37 = vld [vmem:[#allocation5 + $0xc00] sm:$0xff] }
  0xef   :  { %3450 = vmatpush1.bf16.msra.mxu0 %v9212_v45  ;;  %3742 = vmatpush1.bf16.msra.mxu1 %v9214_v46  ;;  %v9263_v45 = vcombine.high %v518_v39, %v522_v40  ;;  %v525_v46 = vld [vmem:[#allocation5 + $0xac0] sm:$0xff]  ;;  %v566_v40 = vld [vmem:[#allocation5 + $0xc08] sm:$0xff] }
  0xf0   :  { %3451 = vmatprep.subr.bf16.mxu0 %v9221_v48  ;;  %3743 = vmatprep.subr.bf16.mxu1 %v9223_v49  ;;  %v529_v48 = vld [vmem:[#allocation5 + $0xae0] sm:$0xff]  ;;  %v526_v49 = vld [vmem:[#allocation5 + $0xac8] sm:$0xff] }
  0xf1   :  { %3430 = vmatprep.mubr.bf16.mxu0 %v10768_v52  ;;  %3722 = vmatprep.mubr.bf16.mxu1 %v10768_v52  ;;  %v9269_v55 = vcombine.high %v525_v46, %v529_v48  ;;  %v9270_v0 = vcombine.low %v526_v49, %v530_v50  ;;  %v569_v39 = vld [vmem:[#allocation5 + $0xc20] sm:$0xff] }
  0xf3   :  { %3452 = vmatpush1.bf16.msra.mxu0 %v9220_v56  ;;  %3744 = vmatpush1.bf16.msra.mxu1 %v9222_v60  ;;  %v9271_v56 = vcombine.high %v526_v49, %v530_v50  ;;  %v534_v60 = vld [vmem:[#allocation5 + $0xb08] sm:$0xff]  ;;  %v573_v50 = vld [vmem:[#allocation5 + $0xc40] sm:$0xff] }
  0xf4   :  { %3453 = vmatprep.subr.bf16.mxu0 %v9229_v62  ;;  %3745 = vmatprep.subr.bf16.mxu1 %v9231_v63  ;;  %v538_v62 = vld [vmem:[#allocation5 + $0xb28] sm:$0xff]  ;;  %v9268_v63 = vcombine.low %v525_v46, %v529_v48  ;;  %v9309_v48 = vcombine.high %v565_v37, %v569_v39 }
  0xf5   :  { %v9279_v3 = vcombine.high %v534_v60, %v538_v62 }
  0xf6   :  { %3431 = vmatmul.mubr.bf16.gmra.mrb[12].mxu0 %v10774_v5  ;;  %3723 = vmatmul.mubr.bf16.gmra.mrb[12].mxu1 %v10774_v5 }
  0xf7   :  { %3454 = vmatpush1.bf16.msra.mxu0 %v9228_v9  ;;  %3746 = vmatpush1.bf16.msra.mxu1 %v9230_v10  ;;  %v546_v9 = vld [vmem:[#allocation5 + $0xb68] sm:$0xff]  ;;  %v9276_v10 = vcombine.low %v533_v57, %v537_v59 }
  0xf8   :  { %3455 = vmatprep.subr.bf16.mxu0 %v9237_v11  ;;  %3747 = vmatprep.subr.bf16.mxu1 %v9239_v12  ;;  %v9278_v11 = vcombine.low %v534_v60, %v538_v62  ;;  %v9285_v12 = vcombine.high %v541_v4, %v545_v7  ;;  %v9287_v13 = vcombine.high %v542_v8, %v546_v9  ;;  %v106_v57 = vld [vmem:[#allocation2 + $0xa8] sm:$0xff] }
  0xf9   :  { %3473 = vmatprep.mubr.bf16.mxu0 %v10776_v17  ;;  %3765 = vmatprep.mubr.bf16.mxu1 %v10776_v17  ;;  %v114_v59 = vld [vmem:[#allocation2 + $0xe8] sm:$0xff]  ;;  %v9308_v60 = vcombine.low %v565_v37, %v569_v39 }
  0xfa   :  { %v602_v37 = vld [vmem:[#allocation5 + $0xd28] sm:$0xff] }
  0xfb   :  { %3456 = vmatpush1.bf16.msra.mxu0 %v9236_v21  ;;  %3748 = vmatpush1.bf16.msra.mxu1 %v9238_v22  ;;  %v554_v21 = vld [vmem:[#allocation5 + $0xba8] sm:$0xff]  ;;  %v9284_v22 = vcombine.low %v541_v4, %v545_v7  ;;  %v10784_v4 = vpack.c.bf16 %v114_v59, %v106_v57 }
  0xfc   :  { %3457 = vmatprep.subr.bf16.mxu0 %v9245_v23  ;;  %3749 = vmatprep.subr.bf16.mxu1 %v9247_v24  ;;  %v9286_v23 = vcombine.low %v542_v8, %v546_v9  ;;  %v9293_v24 = vcombine.high %v549_v14, %v553_v18  ;;  %v9295_v26 = vcombine.high %v550_v19, %v554_v21  ;;  %v582_v7 = vld [vmem:[#allocation5 + $0xc88] sm:$0xff] }
  0xfd   :  { %v586_v8 = vld [vmem:[#allocation5 + $0xca8] sm:$0xff] }
  0xff   :  { %3458 = vmatpush1.bf16.msra.mxu0 %v9244_v32  ;;  %3750 = vmatpush1.bf16.msra.mxu1 %v9246_v33  ;;  %v562_v32 = vld [vmem:[#allocation5 + $0xbe8] sm:$0xff]  ;;  %v9292_v33 = vcombine.low %v549_v14, %v553_v18  ;;  %v9327_v14 = vcombine.high %v582_v7, %v586_v8  ;;  %v589_v18 = vld [vmem:[#allocation5 + $0xcc0] sm:$0xff] }
 0x100   :  { %3459 = vmatprep.subr.bf16.mxu0 %v9253_v34  ;;  %3751 = vmatprep.subr.bf16.mxu1 %v9255_v35  ;;  %v9294_v34 = vcombine.low %v550_v19, %v554_v21  ;;  %v9301_v35 = vcombine.high %v557_v28, %v561_v29  ;;  %v9303_v36 = vcombine.high %v558_v31, %v562_v32  ;;  %v593_v19 = vld [vmem:[#allocation5 + $0xce0] sm:$0xff]  ;;  %v590_v21 = vld [vmem:[#allocation5 + $0xcc8] sm:$0xff] }
 0x101   :  { %v9302_v46 = vcombine.low %v558_v31, %v562_v32  ;;  %v9333_v31 = vcombine.high %v589_v18, %v593_v19  ;;  %v9332_v39 = vcombine.low %v589_v18, %v593_v19  ;;  %v625_v18 = vld [vmem:[#allocation5 + $0xde0] sm:$0xff]  ;;  %v622_v19 = vld [vmem:[#allocation5 + $0xdc8] sm:$0xff] }
 0x103   :  { %3460 = vmatpush1.bf16.msra.mxu0 %v9252_v41  ;;  %3752 = vmatpush1.bf16.msra.mxu1 %v9254_v43  ;;  %v570_v41 = vld [vmem:[#allocation5 + $0xc28] sm:$0xff]  ;;  %v9300_v43 = vcombine.low %v557_v28, %v561_v29  ;;  %v9326_v29 = vcombine.low %v582_v7, %v586_v8 }
 0x104   :  { %3461 = vmatprep.subr.bf16.mxu0 %v9261_v44  ;;  %3753 = vmatprep.subr.bf16.mxu1 %v9263_v45  ;;  %v89_v44 = vld [vmem:[#allocation2 + $0x20] sm:$0xff]  ;;  %v9311_v49 = vcombine.high %v566_v40, %v570_v41  ;;  %v9310_v62 = vcombine.low %v566_v40, %v570_v41  ;;  %v618_v7 = vld [vmem:[#allocation5 + $0xda8] sm:$0xff] }
 0x105   :  { %v97_v45 = vld [vmem:[#allocation2 + $0x60] sm:$0xff] }
 0x106   :  { %v121_v40 = vld [vmem:[#allocation2 + $0x120] sm:$0xff] }
 0x107   :  { %3462 = vmatpush1.bf16.msra.mxu0 %v9260_v51  ;;  %3754 = vmatpush1.bf16.msra.mxu1 %v9262_v54  ;;  %v577_v51 = vld [vmem:[#allocation5 + $0xc60] sm:$0xff]  ;;  %v574_v54 = vld [vmem:[#allocation5 + $0xc48] sm:$0xff] }
 0x108   :  { %3463 = vmatprep.subr.bf16.mxu0 %v9269_v55  ;;  %3755 = vmatprep.subr.bf16.mxu1 %v9271_v56  ;;  %v10782_v55 = vpack.c.bf16 %v97_v45, %v89_v44  ;;  %v578_v56 = vld [vmem:[#allocation5 + $0xc68] sm:$0xff]  ;;  %v9316_v9 = vcombine.low %v573_v50, %v577_v51  ;;  %v129_v41 = vld [vmem:[#allocation2 + $0x160] sm:$0xff] }
 0x10b   :  { %3464 = vmatpush1.bf16.msra.mxu0 %v9268_v63  ;;  %3756 = vmatpush1.bf16.msra.mxu1 %v9270_v0  ;;  %v9317_v63 = vcombine.high %v573_v50, %v577_v51  ;;  %v9319_v0 = vcombine.high %v574_v54, %v578_v56  ;;  %v610_v50 = vld [vmem:[#allocation5 + $0xd68] sm:$0xff]  ;;  %v10798_v51 = vpack.c.bf16 %v129_v41, %v121_v40 }
 0x10c   :  { %3465 = vmatprep.subr.bf16.mxu0 %v9277_v2  ;;  %3757 = vmatprep.subr.bf16.mxu1 %v9279_v3  ;;  %v581_v2 = vld [vmem:[#allocation5 + $0xc80] sm:$0xff] }
 0x10d   :  { %v585_v3 = vld [vmem:[#allocation5 + $0xca0] sm:$0xff] }
 0x10e   :  { %v9324_v28 = vcombine.low %v581_v2, %v585_v3 }
 0x10f   :  { %3466 = vmatpush1.bf16.msra.mxu0 %v9276_v10  ;;  %3758 = vmatpush1.bf16.msra.mxu1 %v9278_v11  ;;  %v105_v10 = vld [vmem:[#allocation2 + $0xa0] sm:$0xff] }
 0x110   :  { %3467 = vmatprep.subr.bf16.mxu0 %v9285_v12  ;;  %3759 = vmatprep.subr.bf16.mxu1 %v9287_v13  ;;  %v113_v11 = vld [vmem:[#allocation2 + $0xe0] sm:$0xff]  ;;  %v9318_v12 = vcombine.low %v574_v54, %v578_v56  ;;  %v9325_v13 = vcombine.high %v581_v2, %v585_v3  ;;  %v138_v54 = vld [vmem:[#allocation2 + $0x1a8] sm:$0xff] }
 0x111   :  { %v146_v56 = vld [vmem:[#allocation2 + $0x1e8] sm:$0xff] }
 0x112   :  { %v10800_v2 = vpack.c.bf16 %v146_v56, %v138_v54  ;;  %v614_v3 = vld [vmem:[#allocation5 + $0xd88] sm:$0xff] }
 0x113   :  { %3468 = vmatpush1.bf16.msra.mxu0 %v9284_v22  ;;  %3760 = vmatpush1.bf16.msra.mxu1 %v9286_v23  ;;  %v594_v22 = vld [vmem:[#allocation5 + $0xce8] sm:$0xff]  ;;  %v10790_v23 = vpack.c.bf16 %v113_v11, %v105_v10  ;;  %v145_v10 = vld [vmem:[#allocation2 + $0x1e0] sm:$0xff] }
 0x114   :  { %3469 = vmatprep.subr.bf16.mxu0 %v9293_v24  ;;  %3761 = vmatprep.subr.bf16.mxu1 %v9295_v26  ;;  %v122_v24 = vld [vmem:[#allocation2 + $0x128] sm:$0xff]  ;;  %v9335_v32 = vcombine.high %v590_v21, %v594_v22 }
 0x115   :  { %v130_v26 = vld [vmem:[#allocation2 + $0x168] sm:$0xff] }
 0x117   :  { %3470 = vmatpush1.bf16.msra.mxu0 %v9292_v33  ;;  %3762 = vmatpush1.bf16.msra.mxu1 %v9294_v34  ;;  %v597_v33 = vld [vmem:[#allocation5 + $0xd00] sm:$0xff] }
 0x118   :  { %3471 = vmatprep.subr.bf16.mxu0 %v9301_v35  ;;  %3763 = vmatprep.subr.bf16.mxu1 %v9303_v36  ;;  %v601_v34 = vld [vmem:[#allocation5 + $0xd20] sm:$0xff]  ;;  %v10792_v35 = vpack.c.bf16 %v130_v26, %v122_v24  ;;  %v598_v36 = vld [vmem:[#allocation5 + $0xd08] sm:$0xff]  ;;  %v92_v24 = vld [vmem:[#allocation2 + $0x38] sm:$0xff] }
 0x119   :  { %v9341_v44 = vcombine.high %v597_v33, %v601_v34  ;;  %v9343_v45 = vcombine.high %v598_v36, %v602_v37  ;;  %v9340_v57 = vcombine.low %v597_v33, %v601_v34  ;;  %v9342_v59 = vcombine.low %v598_v36, %v602_v37  ;;  %v100_v26 = vld [vmem:[#allocation2 + $0x78] sm:$0xff]  ;;  %v629_v33 = vld [vmem:[#allocation5 + $0xe00] sm:$0xff]  ;;  %v630_v37 = vld [vmem:[#allocation5 + $0xe08] sm:$0xff] }
 0x11a   :  { %v633_v34 = vld [vmem:[#allocation5 + $0xe20] sm:$0xff]  ;;  %v10808_v36 = vpack.c.bf16 %v100_v26, %v92_v24  ;;  %v662_v26 = vld [vmem:[#allocation5 + $0xf08] sm:$0xff] }
 0x11b   :  { %3472 = vmatpush1.bf16.msra.mxu0 %v9300_v43  ;;  %3764 = vmatpush1.bf16.msra.mxu1 %v9302_v46  ;;  %v9334_v43 = vcombine.low %v590_v21, %v594_v22  ;;  %v605_v46 = vld [vmem:[#allocation5 + $0xd40] sm:$0xff]  ;;  %v626_v21 = vld [vmem:[#allocation5 + $0xde8] sm:$0xff] }
 0x11c   :  { %3514 = vmatprep.subr.bf16.mxu0 %v9309_v48  ;;  %3806 = vmatprep.subr.bf16.mxu1 %v9311_v49  ;;  %v609_v48 = vld [vmem:[#allocation5 + $0xd60] sm:$0xff]  ;;  %v606_v49 = vld [vmem:[#allocation5 + $0xd48] sm:$0xff]  ;;  %v9366_v41 = vcombine.low %v622_v19, %v626_v21 }
 0x11d   :  { %v9348_v8 = vcombine.low %v605_v46, %v609_v48  ;;  %v9350_v11 = vcombine.low %v606_v49, %v610_v50  ;;  %v665_v24 = vld [vmem:[#allocation5 + $0xf20] sm:$0xff] }
 0x11e   :  { %3474 = vmatmul.mubr.bf16.vlgmr.msra.gmra.mrb[0].mxu0 %v10782_v55  ;;  %3766 = vmatmul.mubr.bf16.vlgmr.msra.gmra.mrb[0].mxu1 %v10782_v55 }
 0x11f   :  { %3515 = vmatpush1.bf16.msra.mxu0 %v9308_v60  ;;  %3807 = vmatpush1.bf16.msra.mxu1 %v9310_v62  ;;  %v9349_v60 = vcombine.high %v605_v46, %v609_v48  ;;  %v9351_v62 = vcombine.high %v606_v49, %v610_v50  ;;  %v641_v46 = vld [vmem:[#allocation5 + $0xe60] sm:$0xff]  ;;  %v638_v48 = vld [vmem:[#allocation5 + $0xe48] sm:$0xff]  ;;  %v9372_v50 = vcombine.low %v629_v33, %v633_v34 }
 0x120   :  { %3516 = vmatprep.subr.bf16.mxu0 %v9317_v63  ;;  %3808 = vmatprep.subr.bf16.mxu1 %v9319_v0  ;;  %v613_v63 = vld [vmem:[#allocation5 + $0xd80] sm:$0xff]  ;;  %v642_v49 = vld [vmem:[#allocation5 + $0xe68] sm:$0xff] }
 0x121   :  { %3483 = vmatprep.mubr.bf16.mxu0 %v10784_v4  ;;  %3775 = vmatprep.mubr.bf16.mxu1 %v10784_v4  ;;  %v617_v0 = vld [vmem:[#allocation5 + $0xda0] sm:$0xff] }
 0x123   :  { %3517 = vmatpush1.bf16.msra.mxu0 %v9316_v9  ;;  %3809 = vmatpush1.bf16.msra.mxu1 %v9318_v12  ;;  %v137_v9 = vld [vmem:[#allocation2 + $0x1a0] sm:$0xff]  ;;  %v9357_v12 = vcombine.high %v613_v63, %v617_v0 }
 0x124   :  { %3518 = vmatprep.subr.bf16.mxu0 %v9325_v13  ;;  %3810 = vmatprep.subr.bf16.mxu1 %v9327_v14  ;;  %v9359_v13 = vcombine.high %v614_v3, %v618_v7  ;;  %v621_v14 = vld [vmem:[#allocation5 + $0xdc0] sm:$0xff]  ;;  %v10806_v22 = vpack.c.bf16 %v145_v10, %v137_v9 }
 0x125   :  { %v9364_v40 = vcombine.low %v621_v14, %v625_v18  ;;  %v653_v9 = vld [vmem:[#allocation5 + $0xec0] sm:$0xff] }
 0x126   :  { %3484 = vmatmul.mubr.bf16.gmra.mrb[4].mxu0 %v10790_v23  ;;  %3776 = vmatmul.mubr.bf16.gmra.mrb[4].mxu1 %v10790_v23  ;;  %v657_v10 = vld [vmem:[#allocation5 + $0xee0] sm:$0xff] }
 0x127   :  { %3519 = vmatpush1.bf16.msra.mxu0 %v9324_v28  ;;  %3811 = vmatpush1.bf16.msra.mxu1 %v9326_v29  ;;  %v9356_v28 = vcombine.low %v613_v63, %v617_v0  ;;  %v9358_v29 = vcombine.low %v614_v3, %v618_v7  ;;  %v650_v63 = vld [vmem:[#allocation5 + $0xea8] sm:$0xff]  ;;  %v9382_v3 = vcombine.low %v638_v48, %v642_v49 }
 0x128   :  { %3520 = vmatprep.subr.bf16.mxu0 %v9333_v31  ;;  %3812 = vmatprep.subr.bf16.mxu1 %v9335_v32  ;;  %v9365_v31 = vcombine.high %v621_v14, %v625_v18  ;;  %v9367_v32 = vcombine.high %v622_v19, %v626_v21  ;;  %v9397_v18 = vcombine.high %v653_v9, %v657_v10  ;;  %v661_v21 = vld [vmem:[#allocation5 + $0xf00] sm:$0xff] }
 0x129   :  { %3493 = vmatprep.mubr.bf16.mxu0 %v10792_v35  ;;  %3785 = vmatprep.mubr.bf16.mxu1 %v10792_v35 }
 0x12b   :  { %3521 = vmatpush1.bf16.msra.mxu0 %v9332_v39  ;;  %3813 = vmatpush1.bf16.msra.mxu1 %v9334_v43  ;;  %v634_v39 = vld [vmem:[#allocation5 + $0xe28] sm:$0xff]  ;;  %v9373_v43 = vcombine.high %v629_v33, %v633_v34  ;;  %v669_v34 = vld [vmem:[#allocation5 + $0xf40] sm:$0xff] }
 0x12c   :  { %3522 = vmatprep.subr.bf16.mxu0 %v9341_v44  ;;  %3814 = vmatprep.subr.bf16.mxu1 %v9343_v45  ;;  %v9375_v44 = vcombine.high %v630_v37, %v634_v39  ;;  %v637_v45 = vld [vmem:[#allocation5 + $0xe40] sm:$0xff]  ;;  %v9374_v54 = vcombine.low %v630_v37, %v634_v39  ;;  %v670_v39 = vld [vmem:[#allocation5 + $0xf48] sm:$0xff] }
 0x12d   :  { %v9381_v56 = vcombine.high %v637_v45, %v641_v46  ;;  %v9380_v0 = vcombine.low %v637_v45, %v641_v46  ;;  %v673_v37 = vld [vmem:[#allocation5 + $0xf60] sm:$0xff] }
 0x12e   :  { %3494 = vmatmul.mubr.bf16.gmra.mrb[8].mxu0 %v10798_v51  ;;  %3786 = vmatmul.mubr.bf16.gmra.mrb[8].mxu1 %v10798_v51  ;;  %v677_v46 = vld [vmem:[#allocation5 + $0xf80] sm:$0xff] }
 0x12f   :  { %3523 = vmatpush1.bf16.msra.mxu0 %v9340_v57  ;;  %3815 = vmatpush1.bf16.msra.mxu1 %v9342_v59  ;;  %v9383_v57 = vcombine.high %v638_v48, %v642_v49  ;;  %v645_v59 = vld [vmem:[#allocation5 + $0xe80] sm:$0xff]  ;;  %v678_v49 = vld [vmem:[#allocation5 + $0xf88] sm:$0xff] }
 0x130   :  { %3524 = vmatprep.subr.bf16.mxu0 %v9349_v60  ;;  %3816 = vmatprep.subr.bf16.mxu1 %v9351_v62  ;;  %v649_v60 = vld [vmem:[#allocation5 + $0xea0] sm:$0xff]  ;;  %v646_v62 = vld [vmem:[#allocation5 + $0xe88] sm:$0xff] }
 0x131   :  { %3503 = vmatprep.mubr.bf16.mxu0 %v10800_v2  ;;  %3795 = vmatprep.mubr.bf16.mxu1 %v10800_v2  ;;  %v9389_v7 = vcombine.high %v645_v59, %v649_v60  ;;  %v9390_v14 = vcombine.low %v646_v62, %v650_v63  ;;  %v681_v48 = vld [vmem:[#allocation5 + $0xfa0] sm:$0xff] }
 0x133   :  { %3525 = vmatpush1.bf16.msra.mxu0 %v9348_v8  ;;  %3817 = vmatpush1.bf16.msra.mxu1 %v9350_v11  ;;  %v9391_v8 = vcombine.high %v646_v62, %v650_v63  ;;  %v654_v11 = vld [vmem:[#allocation5 + $0xec8] sm:$0xff]  ;;  %v689_v62 = vld [vmem:[#allocation5 + $0xfe0] sm:$0xff] }
 0x134   :  { %3526 = vmatprep.subr.bf16.mxu0 %v9357_v12  ;;  %3818 = vmatprep.subr.bf16.mxu1 %v9359_v13  ;;  %v658_v12 = vld [vmem:[#allocation5 + $0xee8] sm:$0xff]  ;;  %v9388_v13 = vcombine.low %v645_v59, %v649_v60  ;;  %v685_v60 = vld [vmem:[#allocation5 + $0xfc0] sm:$0xff] }
 0x135   :  { %v9399_v19 = vcombine.high %v654_v11, %v658_v12  ;;  %v686_v63 = vld [vmem:[#allocation5 + $0xfc8] sm:$0xff] }
 0x136   :  { %3504 = vmatmul.mubr.bf16.gmra.mrb[12].mxu0 %v10806_v22  ;;  %3796 = vmatmul.mubr.bf16.gmra.mrb[12].mxu1 %v10806_v22 }
 0x137   :  { %3527 = vmatpush1.bf16.msra.mxu0 %v9356_v28  ;;  %3819 = vmatpush1.bf16.msra.mxu1 %v9358_v29  ;;  %v666_v28 = vld [vmem:[#allocation5 + $0xf28] sm:$0xff]  ;;  %v9396_v29 = vcombine.low %v653_v9, %v657_v10  ;;  %v183_v10 = vld [vmem:[#allocation5 + $0x10] sm:$0xff] }
 0x138   :  { %3528 = vmatprep.subr.bf16.mxu0 %v9365_v31  ;;  %3820 = vmatprep.subr.bf16.mxu1 %v9367_v32  ;;  %v9398_v31 = vcombine.low %v654_v11, %v658_v12  ;;  %v9405_v32 = vcombine.high %v661_v21, %v665_v24  ;;  %v9407_v33 = vcombine.high %v662_v26, %v666_v28  ;;  %v187_v11 = vld [vmem:[#allocation5 + $0x30] sm:$0xff]  ;;  %v184_v12 = vld [vmem:[#allocation5 + $0x18] sm:$0xff] }
 0x139   :  { %3546 = vmatprep.mubr.bf16.mxu0 %v10808_v36  ;;  %3838 = vmatprep.mubr.bf16.mxu1 %v10808_v36 }
 0x13b   :  { %3529 = vmatpush1.bf16.msra.mxu0 %v9364_v40  ;;  %3821 = vmatpush1.bf16.msra.mxu1 %v9366_v41  ;;  %v674_v40 = vld [vmem:[#allocation5 + $0xf68] sm:$0xff]  ;;  %v9404_v41 = vcombine.low %v661_v21, %v665_v24  ;;  %v8929_v24 = vcombine.high %v183_v10, %v187_v11 }
 0x13c   :  { %3530 = vmatprep.subr.bf16.mxu0 %v9373_v43  ;;  %3822 = vmatprep.subr.bf16.mxu1 %v9375_v44  ;;  %v9406_v43 = vcombine.low %v662_v26, %v666_v28  ;;  %v9413_v44 = vcombine.high %v669_v34, %v673_v37  ;;  %v9415_v45 = vcombine.high %v670_v39, %v674_v40  ;;  %v191_v28 = vld [vmem:[#allocation5 + $0x50] sm:$0xff] }
 0x13f   :  { %3531 = vmatpush1.bf16.msra.mxu0 %v9372_v50  ;;  %3823 = vmatpush1.bf16.msra.mxu1 %v9374_v54  ;;  %v682_v50 = vld [vmem:[#allocation5 + $0xfa8] sm:$0xff]  ;;  %v9412_v54 = vcombine.low %v669_v34, %v673_v37  ;;  %v108_v34 = vld [vmem:[#allocation2 + $0xb8] sm:$0xff] }
 0x140   :  { %3532 = vmatprep.subr.bf16.mxu0 %v9381_v56  ;;  %3824 = vmatprep.subr.bf16.mxu1 %v9383_v57  ;;  %v9414_v56 = vcombine.low %v670_v39, %v674_v40  ;;  %v9421_v57 = vcombine.high %v677_v46, %v681_v48  ;;  %v9423_v59 = vcombine.high %v678_v49, %v682_v50  ;;  %v116_v37 = vld [vmem:[#allocation2 + $0xf8] sm:$0xff] }
 0x141   :  { %v8928_v39 = vcombine.low %v183_v10, %v187_v11 }
 0x143   :  { %3533 = vmatpush1.bf16.msra.mxu0 %v9380_v0  ;;  %3825 = vmatpush1.bf16.msra.mxu1 %v9382_v3  ;;  %v690_v0 = vld [vmem:[#allocation5 + $0xfe8] sm:$0xff]  ;;  %v9420_v3 = vcombine.low %v677_v46, %v681_v48  ;;  %v203_v46 = vld [vmem:[#allocation5 + $0xb0] sm:$0xff]  ;;  %v200_v48 = vld [vmem:[#allocation5 + $0x98] sm:$0xff] }
 0x144   :  { %3534 = vmatprep.subr.bf16.mxu0 %v9389_v7  ;;  %3826 = vmatprep.subr.bf16.mxu1 %v9391_v8  ;;  %v9422_v7 = vcombine.low %v678_v49, %v682_v50  ;;  %v9429_v8 = vcombine.high %v685_v60, %v689_v62  ;;  %v9431_v9 = vcombine.high %v686_v63, %v690_v0  ;;  %v204_v49 = vld [vmem:[#allocation5 + $0xb8] sm:$0xff] }
 0x145   :  { %v9430_v21 = vcombine.low %v686_v63, %v690_v0  ;;  %v211_v63 = vld [vmem:[#allocation5 + $0xf0] sm:$0xff]  ;;  %v208_v0 = vld [vmem:[#allocation5 + $0xd8] sm:$0xff]  ;;  %v8946_v11 = vcombine.low %v200_v48, %v204_v49 }
 0x147   :  { %3535 = vmatpush1.bf16.msra.mxu0 %v9388_v13  ;;  %3827 = vmatpush1.bf16.msra.mxu1 %v9390_v14  ;;  %v188_v13 = vld [vmem:[#allocation5 + $0x38] sm:$0xff]  ;;  %v9428_v14 = vcombine.low %v685_v60, %v689_v62  ;;  %v8947_v60 = vcombine.high %v200_v48, %v204_v49  ;;  %v207_v62 = vld [vmem:[#allocation5 + $0xd0] sm:$0xff] }
 0x148   :  { %3536 = vmatprep.subr.bf16.mxu0 %v9397_v18  ;;  %3828 = vmatprep.subr.bf16.mxu1 %v9399_v19  ;;  %v91_v18 = vld [vmem:[#allocation2 + $0x30] sm:$0xff]  ;;  %v8931_v26 = vcombine.high %v184_v12, %v188_v13  ;;  %v8930_v40 = vcombine.low %v184_v12, %v188_v13  ;;  %v8953_v12 = vcombine.high %v207_v62, %v211_v63 }
 0x149   :  { %v99_v19 = vld [vmem:[#allocation2 + $0x70] sm:$0xff] }
 0x14b   :  { %3537 = vmatpush1.bf16.msra.mxu0 %v9396_v29  ;;  %3829 = vmatpush1.bf16.msra.mxu1 %v9398_v31  ;;  %v195_v29 = vld [vmem:[#allocation5 + $0x70] sm:$0xff]  ;;  %v192_v31 = vld [vmem:[#allocation5 + $0x58] sm:$0xff] }
 0x14c   :  { %3538 = vmatprep.subr.bf16.mxu0 %v9405_v32  ;;  %3830 = vmatprep.subr.bf16.mxu1 %v9407_v33  ;;  %v10814_v32 = vpack.c.bf16 %v99_v19, %v91_v18  ;;  %v196_v33 = vld [vmem:[#allocation5 + $0x78] sm:$0xff]  ;;  %v8936_v50 = vcombine.low %v191_v28, %v195_v29  ;;  %v215_v18 = vld [vmem:[#allocation5 + $0x110] sm:$0xff] }
 0x14d   :  { %v219_v19 = vld [vmem:[#allocation5 + $0x130] sm:$0xff] }
 0x14e   :  { %v8960_v48 = vcombine.low %v215_v18, %v219_v19 }
 0x14f   :  { %3539 = vmatpush1.bf16.msra.mxu0 %v9404_v41  ;;  %3831 = vmatpush1.bf16.msra.mxu1 %v9406_v43  ;;  %v8937_v41 = vcombine.high %v191_v28, %v195_v29  ;;  %v8939_v43 = vcombine.high %v192_v31, %v196_v33  ;;  %v123_v28 = vld [vmem:[#allocation2 + $0x130] sm:$0xff] }
 0x150   :  { %3540 = vmatprep.subr.bf16.mxu0 %v9413_v44  ;;  %3832 = vmatprep.subr.bf16.mxu1 %v9415_v45  ;;  %v10816_v44 = vpack.c.bf16 %v116_v37, %v108_v34  ;;  %v199_v45 = vld [vmem:[#allocation5 + $0x90] sm:$0xff] }
 0x151   :  { %v8944_v10 = vcombine.low %v199_v45, %v203_v46  ;;  %v131_v29 = vld [vmem:[#allocation2 + $0x170] sm:$0xff] }
 0x152   :  { %v223_v37 = vld [vmem:[#allocation5 + $0x150] sm:$0xff] }
 0x153   :  { %3541 = vmatpush1.bf16.msra.mxu0 %v9412_v54  ;;  %3833 = vmatpush1.bf16.msra.mxu1 %v9414_v56  ;;  %v107_v54 = vld [vmem:[#allocation2 + $0xb0] sm:$0xff] }
 0x154   :  { %3542 = vmatprep.subr.bf16.mxu0 %v9421_v57  ;;  %3834 = vmatprep.subr.bf16.mxu1 %v9423_v59  ;;  %v115_v56 = vld [vmem:[#allocation2 + $0xf0] sm:$0xff]  ;;  %v8938_v57 = vcombine.low %v192_v31, %v196_v33  ;;  %v8945_v59 = vcombine.high %v199_v45, %v203_v46  ;;  %v8961_v33 = vcombine.high %v215_v18, %v219_v19  ;;  %v140_v45 = vld [vmem:[#allocation2 + $0x1b8] sm:$0xff] }
 0x155   :  { %v148_v46 = vld [vmem:[#allocation2 + $0x1f8] sm:$0xff] }
 0x156   :  { %v240_v18 = vld [vmem:[#allocation5 + $0x1d8] sm:$0xff] }
 0x157   :  { %3543 = vmatpush1.bf16.msra.mxu0 %v9420_v3  ;;  %3835 = vmatpush1.bf16.msra.mxu1 %v9422_v7  ;;  %v10822_v3 = vpack.c.bf16 %v115_v56, %v107_v54  ;;  %v212_v7 = vld [vmem:[#allocation5 + $0xf8] sm:$0xff]  ;;  %v10832_v56 = vpack.c.bf16 %v148_v46, %v140_v45  ;;  %v255_v45 = vld [vmem:[#allocation5 + $0x250] sm:$0xff] }
 0x158   :  { %3544 = vmatprep.subr.bf16.mxu0 %v9429_v8  ;;  %3836 = vmatprep.subr.bf16.mxu1 %v9431_v9  ;;  %v124_v8 = vld [vmem:[#allocation2 + $0x138] sm:$0xff]  ;;  %v8955_v13 = vcombine.high %v208_v0, %v212_v7  ;;  %v8954_v31 = vcombine.low %v208_v0, %v212_v7  ;;  %v139_v0 = vld [vmem:[#allocation2 + $0x1b0] sm:$0xff] }
 0x159   :  { %v132_v9 = vld [vmem:[#allocation2 + $0x178] sm:$0xff]  ;;  %v147_v7 = vld [vmem:[#allocation2 + $0x1f0] sm:$0xff] }
 0x15a   :  { %v244_v19 = vld [vmem:[#allocation5 + $0x1f8] sm:$0xff]  ;;  %v259_v46 = vld [vmem:[#allocation5 + $0x270] sm:$0xff] }
 0x15b   :  { %3545 = vmatpush1.bf16.msra.mxu0 %v9428_v14  ;;  %3837 = vmatpush1.bf16.msra.mxu1 %v9430_v21  ;;  %v10824_v14 = vpack.c.bf16 %v132_v9, %v124_v8  ;;  %v216_v21 = vld [vmem:[#allocation5 + $0x118] sm:$0xff] }
 0x15c   :  { %3879 = vmatprep.subr.bf16.mxu0 %v8929_v24  ;;  %4171 = vmatprep.subr.bf16.mxu1 %v8931_v26  ;;  %v220_v24 = vld [vmem:[#allocation5 + $0x138] sm:$0xff]  ;;  %v8952_v26 = vcombine.low %v207_v62, %v211_v63 }
 0x15d   :  { %v8963_v34 = vcombine.high %v216_v21, %v220_v24  ;;  %v8962_v49 = vcombine.low %v216_v21, %v220_v24  ;;  %v236_v62 = vld [vmem:[#allocation5 + $0x1b8] sm:$0xff] }
 0x15e   :  { %3547 = vmatmul.mubr.bf16.vlgmr.msra.gmra.mrb[0].mxu0 %v10814_v32  ;;  %3839 = vmatmul.mubr.bf16.vlgmr.msra.gmra.mrb[0].mxu1 %v10814_v32 }
 0x15f   :  { %3880 = vmatpush1.bf16.msra.mxu0 %v8928_v39  ;;  %4172 = vmatpush1.bf16.msra.mxu1 %v8930_v40  ;;  %v227_v39 = vld [vmem:[#allocation5 + $0x170] sm:$0xff]  ;;  %v224_v40 = vld [vmem:[#allocation5 + $0x158] sm:$0xff] }
 0x160   :  { %3881 = vmatprep.subr.bf16.mxu0 %v8937_v41  ;;  %4173 = vmatprep.subr.bf16.mxu1 %v8939_v43  ;;  %v10830_v41 = vpack.c.bf16 %v131_v29, %v123_v28  ;;  %v228_v43 = vld [vmem:[#allocation5 + $0x178] sm:$0xff]  ;;  %v8968_v63 = vcombine.low %v223_v37, %v227_v39  ;;  %v8987_v28 = vcombine.high %v240_v18, %v244_v19  ;;  %v247_v29 = vld [vmem:[#allocation5 + $0x210] sm:$0xff] }
 0x161   :  { %3556 = vmatprep.mubr.bf16.mxu0 %v10816_v44  ;;  %3848 = vmatprep.mubr.bf16.mxu1 %v10816_v44  ;;  %v8971_v54 = vcombine.high %v224_v40, %v228_v43  ;;  %v8970_v8 = vcombine.low %v224_v40, %v228_v43 }
 0x163   :  { %3882 = vmatpush1.bf16.msra.mxu0 %v8936_v50  ;;  %4174 = vmatpush1.bf16.msra.mxu1 %v8938_v57  ;;  %v8969_v50 = vcombine.high %v223_v37, %v227_v39  ;;  %v231_v57 = vld [vmem:[#allocation5 + $0x190] sm:$0xff]  ;;  %v8986_v39 = vcombine.low %v240_v18, %v244_v19  ;;  %v276_v18 = vld [vmem:[#allocation5 + $0x2f8] sm:$0xff] }
 0x164   :  { %3883 = vmatprep.subr.bf16.mxu0 %v8945_v59  ;;  %4175 = vmatprep.subr.bf16.mxu1 %v8947_v60  ;;  %v235_v59 = vld [vmem:[#allocation5 + $0x1b0] sm:$0xff]  ;;  %v232_v60 = vld [vmem:[#allocation5 + $0x198] sm:$0xff] }
 0x165   :  { %v8977_v9 = vcombine.high %v231_v57, %v235_v59  ;;  %v8976_v21 = vcombine.low %v231_v57, %v235_v59  ;;  %v8978_v24 = vcombine.low %v232_v60, %v236_v62  ;;  %v9001_v57 = vcombine.high %v255_v45, %v259_v46 }
 0x166   :  { %3557 = vmatmul.mubr.bf16.gmra.mrb[4].mxu0 %v10822_v3  ;;  %3849 = vmatmul.mubr.bf16.gmra.mrb[4].mxu1 %v10822_v3 }
 0x167   :  { %3884 = vmatpush1.bf16.msra.mxu0 %v8944_v10  ;;  %4176 = vmatpush1.bf16.msra.mxu1 %v8946_v11  ;;  %v8979_v10 = vcombine.high %v232_v60, %v236_v62  ;;  %v239_v11 = vld [vmem:[#allocation5 + $0x1d0] sm:$0xff] }
 0x168   :  { %3885 = vmatprep.subr.bf16.mxu0 %v8953_v12  ;;  %4177 = vmatprep.subr.bf16.mxu1 %v8955_v13  ;;  %v243_v12 = vld [vmem:[#allocation5 + $0x1f0] sm:$0xff]  ;;  %v10838_v13 = vpack.c.bf16 %v147_v7, %v139_v0  ;;  %v268_v0 = vld [vmem:[#allocation5 + $0x2b8] sm:$0xff]  ;;  %v9000_v7 = vcombine.low %v255_v45, %v259_v46 }
 0x169   :  { %3566 = vmatprep.mubr.bf16.mxu0 %v10824_v14  ;;  %3858 = vmatprep.mubr.bf16.mxu1 %v10824_v14  ;;  %v8984_v37 = vcombine.low %v239_v11, %v243_v12  ;;  %v263_v60 = vld [vmem:[#allocation5 + $0x290] sm:$0xff]  ;;  %v288_v46 = vld [vmem:[#allocation5 + $0x358] sm:$0xff] }
 0x16a   :  { %v267_v62 = vld [vmem:[#allocation5 + $0x2b0] sm:$0xff] }
 0x16b   :  { %3886 = vmatpush1.bf16.msra.mxu0 %v8952_v26  ;;  %4178 = vmatpush1.bf16.msra.mxu1 %v8954_v31  ;;  %v8985_v26 = vcombine.high %v239_v11, %v243_v12  ;;  %v251_v31 = vld [vmem:[#allocation5 + $0x230] sm:$0xff]  ;;  %v272_v12 = vld [vmem:[#allocation5 + $0x2d8] sm:$0xff]  ;;  %v9008_v19 = vcombine.low %v263_v60, %v267_v62 }
 0x16c   :  { %3887 = vmatprep.subr.bf16.mxu0 %v8961_v33  ;;  %4179 = vmatprep.subr.bf16.mxu1 %v8963_v34  ;;  %v248_v33 = vld [vmem:[#allocation5 + $0x218] sm:$0xff]  ;;  %v8993_v40 = vcombine.high %v247_v29, %v251_v31  ;;  %v275_v11 = vld [vmem:[#allocation5 + $0x2f0] sm:$0xff] }
 0x16d   :  { %v252_v34 = vld [vmem:[#allocation5 + $0x238] sm:$0xff]  ;;  %v291_v45 = vld [vmem:[#allocation5 + $0x370] sm:$0xff] }
 0x16e   :  { %3567 = vmatmul.mubr.bf16.gmra.mrb[8].mxu0 %v10830_v41  ;;  %3859 = vmatmul.mubr.bf16.gmra.mrb[8].mxu1 %v10830_v41  ;;  %v8995_v43 = vcombine.high %v248_v33, %v252_v34 }
 0x16f   :  { %3888 = vmatpush1.bf16.msra.mxu0 %v8960_v48  ;;  %4180 = vmatpush1.bf16.msra.mxu1 %v8962_v49  ;;  %v256_v48 = vld [vmem:[#allocation5 + $0x258] sm:$0xff] }
 0x170   :  { %3889 = vmatprep.subr.bf16.mxu0 %v8969_v50  ;;  %4181 = vmatprep.subr.bf16.mxu1 %v8971_v54  ;;  %v260_v49 = vld [vmem:[#allocation5 + $0x278] sm:$0xff]  ;;  %v8992_v50 = vcombine.low %v247_v29, %v251_v31  ;;  %v8994_v54 = vcombine.low %v248_v33, %v252_v34  ;;  %v283_v29 = vld [vmem:[#allocation5 + $0x330] sm:$0xff] }
 0x171   :  { %3576 = vmatprep.mubr.bf16.mxu0 %v10832_v56  ;;  %3868 = vmatprep.mubr.bf16.mxu1 %v10832_v56  ;;  %v9003_v59 = vcombine.high %v256_v48, %v260_v49  ;;  %v280_v31 = vld [vmem:[#allocation5 + $0x318] sm:$0xff] }
 0x172   :  { %v284_v33 = vld [vmem:[#allocation5 + $0x338] sm:$0xff] }
 0x173   :  { %3890 = vmatpush1.bf16.msra.mxu0 %v8968_v63  ;;  %4182 = vmatpush1.bf16.msra.mxu1 %v8970_v8  ;;  %v264_v63 = vld [vmem:[#allocation5 + $0x298] sm:$0xff]  ;;  %v9002_v8 = vcombine.low %v256_v48, %v260_v49 }
 0x174   :  { %3891 = vmatprep.subr.bf16.mxu0 %v8977_v9  ;;  %4183 = vmatprep.subr.bf16.mxu1 %v8979_v10  ;;  %v9009_v9 = vcombine.high %v263_v60, %v267_v62  ;;  %v271_v10 = vld [vmem:[#allocation5 + $0x2d0] sm:$0xff]  ;;  %v292_v48 = vld [vmem:[#allocation5 + $0x378] sm:$0xff] }
 0x175   :  { %v9016_v34 = vcombine.low %v271_v10, %v275_v11  ;;  %v299_v60 = vld [vmem:[#allocation5 + $0x3b0] sm:$0xff]  ;;  %v296_v62 = vld [vmem:[#allocation5 + $0x398] sm:$0xff] }
 0x176   :  { %3577 = vmatmul.mubr.bf16.gmra.mrb[12].mxu0 %v10838_v13  ;;  %3869 = vmatmul.mubr.bf16.gmra.mrb[12].mxu1 %v10838_v13 }
 0x177   :  { %3892 = vmatpush1.bf16.msra.mxu0 %v8976_v21  ;;  %4184 = vmatpush1.bf16.msra.mxu1 %v8978_v24  ;;  %v9010_v21 = vcombine.low %v264_v63, %v268_v0  ;;  %v9017_v24 = vcombine.high %v271_v10, %v275_v11  ;;  %v307_v10 = vld [vmem:[#allocation5 + $0x3f0] sm:$0xff]  ;;  %v304_v11 = vld [vmem:[#allocation5 + $0x3d8] sm:$0xff] }
 0x178   :  { %3893 = vmatprep.subr.bf16.mxu0 %v8985_v26  ;;  %4185 = vmatprep.subr.bf16.mxu1 %v8987_v28  ;;  %v9019_v26 = vcombine.high %v272_v12, %v276_v18  ;;  %v279_v28 = vld [vmem:[#allocation5 + $0x310] sm:$0xff] }
 0x179   :  { %3911 = vmatprep.mubr.bf16.mxu0 %v10714_v58  ;;  %4203 = vmatprep.mubr.bf16.mxu1 %v10714_v58  ;;  %v9011_v58 = vcombine.high %v264_v63, %v268_v0  ;;  %v9024_v49 = vcombine.low %v279_v28, %v283_v29  ;;  %v300_v63 = vld [vmem:[#allocation5 + $0x3b8] sm:$0xff] }
 0x17b   :  { %3894 = vmatpush1.bf16.msra.mxu0 %v8984_v37  ;;  %4186 = vmatpush1.bf16.msra.mxu1 %v8986_v39  ;;  %v9018_v37 = vcombine.low %v272_v12, %v276_v18  ;;  %v9025_v39 = vcombine.high %v279_v28, %v283_v29  ;;  %v308_v12 = vld [vmem:[#allocation5 + $0x3f8] sm:$0xff]  ;;  %v315_v28 = vld [vmem:[#allocation5 + $0x430] sm:$0xff] }
 0x17c   :  { %3895 = vmatprep.subr.bf16.mxu0 %v8993_v40  ;;  %4187 = vmatprep.subr.bf16.mxu1 %v8995_v43  ;;  %v9027_v40 = vcombine.high %v280_v31, %v284_v33  ;;  %v287_v43 = vld [vmem:[#allocation5 + $0x350] sm:$0xff]  ;;  %v312_v29 = vld [vmem:[#allocation5 + $0x418] sm:$0xff] }
 0x17d   :  { %v9032_v0 = vcombine.low %v287_v43, %v291_v45 }
 0x17f   :  { %3896 = vmatpush1.bf16.msra.mxu0 %v8992_v50  ;;  %4188 = vmatpush1.bf16.msra.mxu1 %v8994_v54  ;;  %v9026_v50 = vcombine.low %v280_v31, %v284_v33  ;;  %v9033_v54 = vcombine.high %v287_v43, %v291_v45  ;;  %v316_v31 = vld [vmem:[#allocation5 + $0x438] sm:$0xff]  ;;  %v323_v43 = vld [vmem:[#allocation5 + $0x470] sm:$0xff] }
 0x180   :  { %3897 = vmatprep.subr.bf16.mxu0 %v9001_v57  ;;  %4189 = vmatprep.subr.bf16.mxu1 %v9003_v59  ;;  %v9035_v57 = vcombine.high %v288_v46, %v292_v48  ;;  %v295_v59 = vld [vmem:[#allocation5 + $0x390] sm:$0xff]  ;;  %v320_v45 = vld [vmem:[#allocation5 + $0x458] sm:$0xff] }
 0x181   :  { %v9040_v18 = vcombine.low %v295_v59, %v299_v60 }
 0x183   :  { %3898 = vmatpush1.bf16.msra.mxu0 %v9000_v7  ;;  %4190 = vmatpush1.bf16.msra.mxu1 %v9002_v8  ;;  %v9034_v7 = vcombine.low %v288_v46, %v292_v48  ;;  %v9041_v8 = vcombine.high %v295_v59, %v299_v60  ;;  %v324_v46 = vld [vmem:[#allocation5 + $0x478] sm:$0xff]  ;;  %v331_v59 = vld [vmem:[#allocation5 + $0x4b0] sm:$0xff] }
 0x184   :  { %3899 = vmatprep.subr.bf16.mxu0 %v9009_v9  ;;  %4191 = vmatprep.subr.bf16.mxu1 %v9011_v58  ;;  %v9043_v9 = vcombine.high %v296_v62, %v300_v63  ;;  %v303_v58 = vld [vmem:[#allocation5 + $0x3d0] sm:$0xff]  ;;  %v328_v60 = vld [vmem:[#allocation5 + $0x498] sm:$0xff] }
 0x185   :  { %v9048_v33 = vcombine.low %v303_v58, %v307_v10 }
 0x187   :  { %3900 = vmatpush1.bf16.msra.mxu0 %v9008_v19  ;;  %4192 = vmatpush1.bf16.msra.mxu1 %v9010_v21  ;;  %v9042_v19 = vcombine.low %v296_v62, %v300_v63  ;;  %v9049_v21 = vcombine.high %v303_v58, %v307_v10  ;;  %v332_v62 = vld [vmem:[#allocation5 + $0x4b8] sm:$0xff]  ;;  %v339_v58 = vld [vmem:[#allocation5 + $0x4f0] sm:$0xff] }
 0x188   :  { %3901 = vmatprep.subr.bf16.mxu0 %v9017_v24  ;;  %4193 = vmatprep.subr.bf16.mxu1 %v9019_v26  ;;  %v9051_v24 = vcombine.high %v304_v11, %v308_v12  ;;  %v311_v26 = vld [vmem:[#allocation5 + $0x410] sm:$0xff]  ;;  %v336_v10 = vld [vmem:[#allocation5 + $0x4d8] sm:$0xff] }
 0x189   :  { %v9056_v48 = vcombine.low %v311_v26, %v315_v28 }
 0x18b   :  { %3902 = vmatpush1.bf16.msra.mxu0 %v9016_v34  ;;  %4194 = vmatpush1.bf16.msra.mxu1 %v9018_v37  ;;  %v9050_v34 = vcombine.low %v304_v11, %v308_v12  ;;  %v9057_v37 = vcombine.high %v311_v26, %v315_v28  ;;  %v340_v11 = vld [vmem:[#allocation5 + $0x4f8] sm:$0xff] }
 0x18c   :  { %3903 = vmatprep.subr.bf16.mxu0 %v9025_v39  ;;  %4195 = vmatprep.subr.bf16.mxu1 %v9027_v40  ;;  %v9059_v39 = vcombine.high %v312_v29, %v316_v31  ;;  %v319_v40 = vld [vmem:[#allocation5 + $0x450] sm:$0xff]  ;;  %v344_v26 = vld [vmem:[#allocation5 + $0x518] sm:$0xff] }
 0x18d   :  { %v9064_v63 = vcombine.low %v319_v40, %v323_v43  ;;  %v348_v28 = vld [vmem:[#allocation5 + $0x538] sm:$0xff] }
 0x18f   :  { %3904 = vmatpush1.bf16.msra.mxu0 %v9024_v49  ;;  %4196 = vmatpush1.bf16.msra.mxu1 %v9026_v50  ;;  %v9058_v49 = vcombine.low %v312_v29, %v316_v31  ;;  %v9065_v50 = vcombine.high %v319_v40, %v323_v43  ;;  %v356_v40 = vld [vmem:[#allocation5 + $0x578] sm:$0xff] }
 0x190   :  { %3905 = vmatprep.subr.bf16.mxu0 %v9033_v54  ;;  %4197 = vmatprep.subr.bf16.mxu1 %v9035_v57  ;;  %v9067_v54 = vcombine.high %v320_v45, %v324_v46  ;;  %v327_v57 = vld [vmem:[#allocation5 + $0x490] sm:$0xff] }
 0x191   :  { %v9072_v12 = vcombine.low %v327_v57, %v331_v59 }
 0x193   :  { %3906 = vmatpush1.bf16.msra.mxu0 %v9032_v0  ;;  %4198 = vmatpush1.bf16.msra.mxu1 %v9034_v7  ;;  %v9066_v0 = vcombine.low %v320_v45, %v324_v46  ;;  %v9073_v7 = vcombine.high %v327_v57, %v331_v59  ;;  %v9090_v45 = vcombine.low %v344_v26, %v348_v28 }
 0x194   :  { %3907 = vmatprep.subr.bf16.mxu0 %v9041_v8  ;;  %4199 = vmatprep.subr.bf16.mxu1 %v9043_v9  ;;  %v9075_v8 = vcombine.high %v328_v60, %v332_v62  ;;  %v335_v9 = vld [vmem:[#allocation5 + $0x4d0] sm:$0xff] }
 0x195   :  { %v9080_v29 = vcombine.low %v335_v9, %v339_v58 }
 0x197   :  { %3908 = vmatpush1.bf16.msra.mxu0 %v9040_v18  ;;  %4200 = vmatpush1.bf16.msra.mxu1 %v9042_v19  ;;  %v9081_v18 = vcombine.high %v335_v9, %v339_v58  ;;  %v9083_v19 = vcombine.high %v336_v10, %v340_v11 }
 0x198   :  { %3909 = vmatprep.subr.bf16.mxu0 %v9049_v21  ;;  %4201 = vmatprep.subr.bf16.mxu1 %v9051_v24  ;;  %v343_v21 = vld [vmem:[#allocation5 + $0x510] sm:$0xff] }
 0x199   :  { %v347_v24 = vld [vmem:[#allocation5 + $0x530] sm:$0xff] }
 0x19a   :  { %v9089_v31 = vcombine.high %v343_v21, %v347_v24  ;;  %v9088_v43 = vcombine.low %v343_v21, %v347_v24  ;;  %v383_v24 = vld [vmem:[#allocation5 + $0x650] sm:$0xff] }
 0x19b   :  { %3910 = vmatpush1.bf16.msra.mxu0 %v9048_v33  ;;  %4202 = vmatpush1.bf16.msra.mxu1 %v9050_v34  ;;  %v9091_v33 = vcombine.high %v344_v26, %v348_v28  ;;  %v351_v34 = vld [vmem:[#allocation5 + $0x550] sm:$0xff]  ;;  %v384_v28 = vld [vmem:[#allocation5 + $0x658] sm:$0xff] }
 0x19c   :  { %3952 = vmatprep.subr.bf16.mxu0 %v9057_v37  ;;  %4244 = vmatprep.subr.bf16.mxu1 %v9059_v39  ;;  %v355_v37 = vld [vmem:[#allocation5 + $0x570] sm:$0xff]  ;;  %v352_v39 = vld [vmem:[#allocation5 + $0x558] sm:$0xff] }
 0x19d   :  { %v9099_v46 = vcombine.high %v352_v39, %v356_v40  ;;  %v9096_v57 = vcombine.low %v351_v34, %v355_v37  ;;  %v387_v26 = vld [vmem:[#allocation5 + $0x670] sm:$0xff] }
 0x19e   :  { %3912 = vmatmul.mubr.bf16.vlgmr.msra.gmra.mrb[16].mxu0 %v10718_v15  ;;  %4204 = vmatmul.mubr.bf16.vlgmr.msra.gmra.mrb[16].mxu1 %v10718_v15  ;;  %v9074_v15 = vcombine.low %v328_v60, %v332_v62  ;;  %v367_v62 = vld [vmem:[#allocation5 + $0x5d0] sm:$0xff] }
 0x19f   :  { %3953 = vmatpush1.bf16.msra.mxu0 %v9056_v48  ;;  %4245 = vmatpush1.bf16.msra.mxu1 %v9058_v49  ;;  %v359_v48 = vld [vmem:[#allocation5 + $0x590] sm:$0xff] }
 0x1a0   :  { %3954 = vmatprep.subr.bf16.mxu0 %v9065_v50  ;;  %4246 = vmatprep.subr.bf16.mxu1 %v9067_v54  ;;  %v363_v49 = vld [vmem:[#allocation5 + $0x5b0] sm:$0xff]  ;;  %v360_v50 = vld [vmem:[#allocation5 + $0x598] sm:$0xff] }
 0x1a1   :  { %3921 = vmatprep.mubr.bf16.mxu0 %v10720_v25  ;;  %4213 = vmatprep.mubr.bf16.mxu1 %v10720_v25  ;;  %v9082_v25 = vcombine.low %v336_v10, %v340_v11  ;;  %v364_v54 = vld [vmem:[#allocation5 + $0x5b8] sm:$0xff]  ;;  %v9105_v59 = vcombine.high %v359_v48, %v363_v49  ;;  %v375_v10 = vld [vmem:[#allocation5 + $0x610] sm:$0xff] }
 0x1a2   :  { %v9107_v60 = vcombine.high %v360_v50, %v364_v54  ;;  %v9106_v9 = vcombine.low %v360_v50, %v364_v54  ;;  %v379_v11 = vld [vmem:[#allocation5 + $0x630] sm:$0xff]  ;;  %v404_v50 = vld [vmem:[#allocation5 + $0x6f8] sm:$0xff] }
 0x1a3   :  { %3955 = vmatpush1.bf16.msra.mxu0 %v9064_v63  ;;  %4247 = vmatpush1.bf16.msra.mxu1 %v9066_v0  ;;  %v371_v63 = vld [vmem:[#allocation5 + $0x5f0] sm:$0xff]  ;;  %v368_v0 = vld [vmem:[#allocation5 + $0x5d8] sm:$0xff] }
 0x1a4   :  { %3956 = vmatprep.subr.bf16.mxu0 %v9073_v7  ;;  %4248 = vmatprep.subr.bf16.mxu1 %v9075_v8  ;;  %v372_v7 = vld [vmem:[#allocation5 + $0x5f8] sm:$0xff]  ;;  %v9104_v8 = vcombine.low %v359_v48, %v363_v49  ;;  %v403_v48 = vld [vmem:[#allocation5 + $0x6f0] sm:$0xff] }
 0x1a5   :  { %v9115_v58 = vcombine.high %v368_v0, %v372_v7  ;;  %v400_v49 = vld [vmem:[#allocation5 + $0x6d8] sm:$0xff] }
 0x1a6   :  { %3922 = vmatmul.mubr.bf16.gmra.mrb[20].mxu0 %v10726_v38  ;;  %4214 = vmatmul.mubr.bf16.gmra.mrb[20].mxu1 %v10726_v38  ;;  %v9097_v38 = vcombine.high %v351_v34, %v355_v37  ;;  %v391_v34 = vld [vmem:[#allocation5 + $0x690] sm:$0xff] }
 0x1a7   :  { %3957 = vmatpush1.bf16.msra.mxu0 %v9072_v12  ;;  %4249 = vmatpush1.bf16.msra.mxu1 %v9074_v15  ;;  %v376_v12 = vld [vmem:[#allocation5 + $0x618] sm:$0xff]  ;;  %v395_v37 = vld [vmem:[#allocation5 + $0x6b0] sm:$0xff] }
 0x1a8   :  { %3958 = vmatprep.subr.bf16.mxu0 %v9081_v18  ;;  %4250 = vmatprep.subr.bf16.mxu1 %v9083_v19  ;;  %v380_v15 = vld [vmem:[#allocation5 + $0x638] sm:$0xff]  ;;  %v9112_v18 = vcombine.low %v367_v62, %v371_v63  ;;  %v9121_v19 = vcombine.high %v375_v10, %v379_v11  ;;  %v9136_v54 = vcombine.low %v391_v34, %v395_v37 }
 0x1a9   :  { %3931 = vmatprep.mubr.bf16.mxu0 %v10728_v47  ;;  %4223 = vmatprep.mubr.bf16.mxu1 %v10728_v47  ;;  %v9098_v47 = vcombine.low %v352_v39, %v356_v40  ;;  %v9123_v21 = vcombine.high %v376_v12, %v380_v15  ;;  %v392_v39 = vld [vmem:[#allocation5 + $0x698] sm:$0xff] }
 0x1aa   :  { %v396_v40 = vld [vmem:[#allocation5 + $0x6b8] sm:$0xff] }
 0x1ab   :  { %3959 = vmatpush1.bf16.msra.mxu0 %v9080_v29  ;;  %4251 = vmatpush1.bf16.msra.mxu1 %v9082_v25  ;;  %v388_v29 = vld [vmem:[#allocation5 + $0x678] sm:$0xff]  ;;  %v9120_v25 = vcombine.low %v375_v10, %v379_v11  ;;  %v419_v10 = vld [vmem:[#allocation5 + $0x770] sm:$0xff] }
 0x1ac   :  { %3960 = vmatprep.subr.bf16.mxu0 %v9089_v31  ;;  %4252 = vmatprep.subr.bf16.mxu1 %v9091_v33  ;;  %v9122_v31 = vcombine.low %v376_v12, %v380_v15  ;;  %v9131_v33 = vcombine.high %v384_v28, %v388_v29  ;;  %v416_v11 = vld [vmem:[#allocation5 + $0x758] sm:$0xff] }
 0x1ad   :  { %v420_v12 = vld [vmem:[#allocation5 + $0x778] sm:$0xff] }
 0x1ae   :  { %3932 = vmatmul.mubr.bf16.gmra.mrb[24].mxu0 %v10734_v61  ;;  %4224 = vmatmul.mubr.bf16.gmra.mrb[24].mxu1 %v10734_v61  ;;  %v9113_v61 = vcombine.high %v367_v62, %v371_v63  ;;  %v411_v62 = vld [vmem:[#allocation5 + $0x730] sm:$0xff]  ;;  %v408_v63 = vld [vmem:[#allocation5 + $0x718] sm:$0xff] }
 0x1af   :  { %3961 = vmatpush1.bf16.msra.mxu0 %v9088_v43  ;;  %4253 = vmatpush1.bf16.msra.mxu1 %v9090_v45  ;;  %v9128_v43 = vcombine.low %v383_v24, %v387_v26  ;;  %v9130_v45 = vcombine.low %v384_v28, %v388_v29  ;;  %v428_v28 = vld [vmem:[#allocation5 + $0x7b8] sm:$0xff] }
 0x1b0   :  { %3962 = vmatprep.subr.bf16.mxu0 %v9097_v38  ;;  %4254 = vmatprep.subr.bf16.mxu1 %v9099_v46  ;;  %v9137_v38 = vcombine.high %v391_v34, %v395_v37  ;;  %v399_v46 = vld [vmem:[#allocation5 + $0x6d0] sm:$0xff]  ;;  %v432_v37 = vld [vmem:[#allocation5 + $0x7d8] sm:$0xff] }
 0x1b1   :  { %3941 = vmatprep.mubr.bf16.mxu0 %v10736_v6  ;;  %4233 = vmatprep.mubr.bf16.mxu1 %v10736_v6  ;;  %v9114_v6 = vcombine.low %v368_v0, %v372_v7  ;;  %v412_v0 = vld [vmem:[#allocation5 + $0x738] sm:$0xff]  ;;  %v9144_v7 = vcombine.low %v399_v46, %v403_v48  ;;  %v435_v34 = vld [vmem:[#allocation5 + $0x7f0] sm:$0xff] }
 0x1b3   :  { %3963 = vmatpush1.bf16.msra.mxu0 %v9096_v57  ;;  %4255 = vmatpush1.bf16.msra.mxu1 %v9098_v47  ;;  %v9138_v57 = vcombine.low %v392_v39, %v396_v40  ;;  %v9145_v47 = vcombine.high %v399_v46, %v403_v48  ;;  %v443_v46 = vld [vmem:[#allocation5 + $0x830] sm:$0xff]  ;;  %v440_v48 = vld [vmem:[#allocation5 + $0x818] sm:$0xff] }
 0x1b4   :  { %3964 = vmatprep.subr.bf16.mxu0 %v9105_v59  ;;  %4256 = vmatprep.subr.bf16.mxu1 %v9107_v60  ;;  %v9147_v59 = vcombine.high %v400_v49, %v404_v50  ;;  %v407_v60 = vld [vmem:[#allocation5 + $0x710] sm:$0xff] }
 0x1b5   :  { %v9152_v15 = vcombine.low %v407_v60, %v411_v62 }
 0x1b6   :  { %3942 = vmatmul.mubr.bf16.gmra.mrb[28].mxu0 %v10742_v20  ;;  %4234 = vmatmul.mubr.bf16.gmra.mrb[28].mxu1 %v10742_v20  ;;  %v9129_v20 = vcombine.high %v383_v24, %v387_v26  ;;  %v427_v24 = vld [vmem:[#allocation5 + $0x7b0] sm:$0xff]  ;;  %v424_v26 = vld [vmem:[#allocation5 + $0x798] sm:$0xff] }
 0x1b7   :  { %3965 = vmatpush1.bf16.msra.mxu0 %v9104_v8  ;;  %4257 = vmatpush1.bf16.msra.mxu1 %v9106_v9  ;;  %v9146_v8 = vcombine.low %v400_v49, %v404_v50  ;;  %v9153_v9 = vcombine.high %v407_v60, %v411_v62  ;;  %v444_v49 = vld [vmem:[#allocation5 + $0x838] sm:$0xff]  ;;  %v451_v60 = vld [vmem:[#allocation5 + $0x870] sm:$0xff] }
 0x1b8   :  { %3966 = vmatprep.subr.bf16.mxu0 %v9113_v61  ;;  %4258 = vmatprep.subr.bf16.mxu1 %v9115_v58  ;;  %v9155_v61 = vcombine.high %v408_v63, %v412_v0  ;;  %v415_v58 = vld [vmem:[#allocation5 + $0x750] sm:$0xff]  ;;  %v448_v62 = vld [vmem:[#allocation5 + $0x858] sm:$0xff] }
 0x1b9   :  { %3984 = vmatprep.mubr.bf16.mxu0 %v10744_v30  ;;  %4276 = vmatprep.mubr.bf16.mxu1 %v10744_v30  ;;  %v9139_v30 = vcombine.high %v392_v39, %v396_v40  ;;  %v9160_v29 = vcombine.low %v415_v58, %v419_v10  ;;  %v436_v39 = vld [vmem:[#allocation5 + $0x7f8] sm:$0xff] }
 0x1bb   :  { %3967 = vmatpush1.bf16.msra.mxu0 %v9112_v18  ;;  %4259 = vmatpush1.bf16.msra.mxu1 %v9114_v6  ;;  %v9154_v18 = vcombine.low %v408_v63, %v412_v0  ;;  %v9161_v6 = vcombine.high %v415_v58, %v419_v10  ;;  %v452_v63 = vld [vmem:[#allocation5 + $0x878] sm:$0xff]  ;;  %v459_v58 = vld [vmem:[#allocation5 + $0x8b0] sm:$0xff] }
 0x1bc   :  { %3968 = vmatprep.subr.bf16.mxu0 %v9121_v19  ;;  %4260 = vmatprep.subr.bf16.mxu1 %v9123_v21  ;;  %v9163_v19 = vcombine.high %v416_v11, %v420_v12  ;;  %v423_v21 = vld [vmem:[#allocation5 + $0x790] sm:$0xff]  ;;  %v456_v10 = vld [vmem:[#allocation5 + $0x898] sm:$0xff] }
 0x1bd   :  { %v9168_v40 = vcombine.low %v423_v21, %v427_v24 }
 0x1bf   :  { %3969 = vmatpush1.bf16.msra.mxu0 %v9120_v25  ;;  %4261 = vmatpush1.bf16.msra.mxu1 %v9122_v31  ;;  %v9162_v25 = vcombine.low %v416_v11, %v420_v12  ;;  %v9169_v31 = vcombine.high %v423_v21, %v427_v24  ;;  %v460_v11 = vld [vmem:[#allocation5 + $0x8b8] sm:$0xff]  ;;  %v467_v21 = vld [vmem:[#allocation5 + $0x8f0] sm:$0xff] }
 0x1c0   :  { %3970 = vmatprep.subr.bf16.mxu0 %v9129_v20  ;;  %4262 = vmatprep.subr.bf16.mxu1 %v9131_v33  ;;  %v9171_v20 = vcombine.high %v424_v26, %v428_v28  ;;  %v431_v33 = vld [vmem:[#allocation5 + $0x7d0] sm:$0xff]  ;;  %v464_v24 = vld [vmem:[#allocation5 + $0x8d8] sm:$0xff] }
 0x1c1   :  { %v9176_v50 = vcombine.low %v431_v33, %v435_v34 }
 0x1c3   :  { %3971 = vmatpush1.bf16.msra.mxu0 %v9128_v43  ;;  %4263 = vmatpush1.bf16.msra.mxu1 %v9130_v45  ;;  %v9170_v43 = vcombine.low %v424_v26, %v428_v28  ;;  %v9177_v45 = vcombine.high %v431_v33, %v435_v34  ;;  %v468_v26 = vld [vmem:[#allocation5 + $0x8f8] sm:$0xff] }
 0x1c4   :  { %3972 = vmatprep.subr.bf16.mxu0 %v9137_v38  ;;  %4264 = vmatprep.subr.bf16.mxu1 %v9139_v30  ;;  %v9179_v38 = vcombine.high %v432_v37, %v436_v39  ;;  %v439_v30 = vld [vmem:[#allocation5 + $0x810] sm:$0xff]  ;;  %v472_v33 = vld [vmem:[#allocation5 + $0x918] sm:$0xff] }
 0x1c5   :  { %v9184_v0 = vcombine.low %v439_v30, %v443_v46  ;;  %v476_v34 = vld [vmem:[#allocation5 + $0x938] sm:$0xff] }
 0x1c7   :  { %3973 = vmatpush1.bf16.msra.mxu0 %v9136_v54  ;;  %4265 = vmatpush1.bf16.msra.mxu1 %v9138_v57  ;;  %v9178_v54 = vcombine.low %v432_v37, %v436_v39  ;;  %v9185_v57 = vcombine.high %v439_v30, %v443_v46  ;;  %v484_v30 = vld [vmem:[#allocation5 + $0x978] sm:$0xff] }
 0x1c8   :  { %3974 = vmatprep.subr.bf16.mxu0 %v9145_v47  ;;  %4266 = vmatprep.subr.bf16.mxu1 %v9147_v59  ;;  %v9187_v47 = vcombine.high %v440_v48, %v444_v49  ;;  %v447_v59 = vld [vmem:[#allocation5 + $0x850] sm:$0xff] }
 0x1c9   :  { %v9192_v12 = vcombine.low %v447_v59, %v451_v60 }
 0x1cb   :  { %3975 = vmatpush1.bf16.msra.mxu0 %v9144_v7  ;;  %4267 = vmatpush1.bf16.msra.mxu1 %v9146_v8  ;;  %v9186_v7 = vcombine.low %v440_v48, %v444_v49  ;;  %v9193_v8 = vcombine.high %v447_v59, %v451_v60  ;;  %v9218_v48 = vcombine.low %v472_v33, %v476_v34 }
 0x1cc   :  { %3976 = vmatprep.subr.bf16.mxu0 %v9153_v9  ;;  %4268 = vmatprep.subr.bf16.mxu1 %v9155_v61  ;;  %v9195_v9 = vcombine.high %v448_v62, %v452_v63  ;;  %v455_v61 = vld [vmem:[#allocation5 + $0x890] sm:$0xff] }
 0x1cd   :  { %v9200_v28 = vcombine.low %v455_v61, %v459_v58 }
 0x1cf   :  { %3977 = vmatpush1.bf16.msra.mxu0 %v9152_v15  ;;  %4269 = vmatpush1.bf16.msra.mxu1 %v9154_v18  ;;  %v9194_v15 = vcombine.low %v448_v62, %v452_v63  ;;  %v9201_v18 = vcombine.high %v455_v61, %v459_v58  ;;  %v495_v63 = vld [vmem:[#allocation5 + $0x9d0] sm:$0xff] }
 0x1d0   :  { %3978 = vmatprep.subr.bf16.mxu0 %v9161_v6  ;;  %4270 = vmatprep.subr.bf16.mxu1 %v9163_v19  ;;  %v9203_v6 = vcombine.high %v456_v10, %v460_v11  ;;  %v463_v19 = vld [vmem:[#allocation5 + $0x8d0] sm:$0xff] }
 0x1d1   :  { %v9208_v37 = vcombine.low %v463_v19, %v467_v21 }
 0x1d3   :  { %3979 = vmatpush1.bf16.msra.mxu0 %v9160_v29  ;;  %4271 = vmatpush1.bf16.msra.mxu1 %v9162_v25  ;;  %v9209_v29 = vcombine.high %v463_v19, %v467_v21  ;;  %v9211_v25 = vcombine.high %v464_v24, %v468_v26  ;;  %v511_v21 = vld [vmem:[#allocation5 + $0xa50] sm:$0xff] }
 0x1d4   :  { %3980 = vmatprep.subr.bf16.mxu0 %v9169_v31  ;;  %4272 = vmatprep.subr.bf16.mxu1 %v9171_v20  ;;  %v471_v31 = vld [vmem:[#allocation5 + $0x910] sm:$0xff] }
 0x1d5   :  { %v475_v20 = vld [vmem:[#allocation5 + $0x930] sm:$0xff] }
 0x1d6   :  { %v9217_v39 = vcombine.high %v471_v31, %v475_v20  ;;  %v9216_v46 = vcombine.low %v471_v31, %v475_v20  ;;  %v519_v31 = vld [vmem:[#allocation5 + $0xa90] sm:$0xff] }
 0x1d7   :  { %3981 = vmatpush1.bf16.msra.mxu0 %v9168_v40  ;;  %4273 = vmatpush1.bf16.msra.mxu1 %v9170_v43  ;;  %v9219_v40 = vcombine.high %v472_v33, %v476_v34  ;;  %v479_v43 = vld [vmem:[#allocation5 + $0x950] sm:$0xff]  ;;  %v520_v33 = vld [vmem:[#allocation5 + $0xa98] sm:$0xff] }
 0x1d8   :  { %3982 = vmatprep.subr.bf16.mxu0 %v9177_v45  ;;  %4274 = vmatprep.subr.bf16.mxu1 %v9179_v38  ;;  %v483_v45 = vld [vmem:[#allocation5 + $0x970] sm:$0xff]  ;;  %v480_v38 = vld [vmem:[#allocation5 + $0x958] sm:$0xff] }
 0x1d9   :  { %v9227_v49 = vcombine.high %v480_v38, %v484_v30  ;;  %v9224_v59 = vcombine.low %v479_v43, %v483_v45  ;;  %v523_v20 = vld [vmem:[#allocation5 + $0xab0] sm:$0xff]  ;;  %v524_v34 = vld [vmem:[#allocation5 + $0xab8] sm:$0xff] }
 0x1db   :  { %3983 = vmatpush1.bf16.msra.mxu0 %v9176_v50  ;;  %4275 = vmatpush1.bf16.msra.mxu1 %v9178_v54  ;;  %v487_v50 = vld [vmem:[#allocation5 + $0x990] sm:$0xff] }
 0x1dc   :  { %4025 = vmatprep.subr.bf16.mxu0 %v9185_v57  ;;  %4317 = vmatprep.subr.bf16.mxu1 %v9187_v47  ;;  %v491_v54 = vld [vmem:[#allocation5 + $0x9b0] sm:$0xff]  ;;  %v488_v57 = vld [vmem:[#allocation5 + $0x998] sm:$0xff] }
 0x1dd   :  { %v492_v47 = vld [vmem:[#allocation5 + $0x9b8] sm:$0xff]  ;;  %v9233_v60 = vcombine.high %v487_v50, %v491_v54 }
 0x1de   :  { %3985 = vmatmul.mubr.bf16.vlgmr.msra.gmra.mrb[16].mxu0 %v10750_v53  ;;  %4277 = vmatmul.mubr.bf16.vlgmr.msra.gmra.mrb[16].mxu1 %v10750_v53  ;;  %v9202_v53 = vcombine.low %v456_v10, %v460_v11  ;;  %v9235_v62 = vcombine.high %v488_v57, %v492_v47  ;;  %v9234_v61 = vcombine.low %v488_v57, %v492_v47  ;;  %v503_v10 = vld [vmem:[#allocation5 + $0xa10] sm:$0xff]  ;;  %v540_v57 = vld [vmem:[#allocation5 + $0xb38] sm:$0xff] }
 0x1df   :  { %4026 = vmatpush1.bf16.msra.mxu0 %v9184_v0  ;;  %4318 = vmatpush1.bf16.msra.mxu1 %v9186_v7  ;;  %v499_v0 = vld [vmem:[#allocation5 + $0x9f0] sm:$0xff]  ;;  %v496_v7 = vld [vmem:[#allocation5 + $0x9d8] sm:$0xff] }
 0x1e0   :  { %4027 = vmatprep.subr.bf16.mxu0 %v9193_v8  ;;  %4319 = vmatprep.subr.bf16.mxu1 %v9195_v9  ;;  %v500_v8 = vld [vmem:[#allocation5 + $0x9f8] sm:$0xff]  ;;  %v9232_v9 = vcombine.low %v487_v50, %v491_v54  ;;  %v507_v11 = vld [vmem:[#allocation5 + $0xa30] sm:$0xff] }
 0x1e1   :  { %3994 = vmatprep.mubr.bf16.mxu0 %v10752_v1  ;;  %4286 = vmatprep.mubr.bf16.mxu1 %v10752_v1  ;;  %v9210_v1 = vcombine.low %v464_v24, %v468_v26  ;;  %v9243_v58 = vcombine.high %v496_v7, %v500_v8  ;;  %v515_v24 = vld [vmem:[#allocation5 + $0xa70] sm:$0xff]  ;;  %v512_v26 = vld [vmem:[#allocation5 + $0xa58] sm:$0xff] }
 0x1e2   :  { %v539_v50 = vld [vmem:[#allocation5 + $0xb30] sm:$0xff]  ;;  %v536_v54 = vld [vmem:[#allocation5 + $0xb18] sm:$0xff] }
 0x1e3   :  { %4028 = vmatpush1.bf16.msra.mxu0 %v9192_v12  ;;  %4320 = vmatpush1.bf16.msra.mxu1 %v9194_v15  ;;  %v504_v12 = vld [vmem:[#allocation5 + $0xa18] sm:$0xff] }
 0x1e4   :  { %4029 = vmatprep.subr.bf16.mxu0 %v9201_v18  ;;  %4321 = vmatprep.subr.bf16.mxu1 %v9203_v6  ;;  %v508_v15 = vld [vmem:[#allocation5 + $0xa38] sm:$0xff]  ;;  %v9240_v18 = vcombine.low %v495_v63, %v499_v0  ;;  %v9249_v6 = vcombine.high %v503_v10, %v507_v11 }
 0x1e5   :  { %v9251_v19 = vcombine.high %v504_v12, %v508_v15 }
 0x1e6   :  { %3995 = vmatmul.mubr.bf16.gmra.mrb[20].mxu0 %v10758_v16  ;;  %4287 = vmatmul.mubr.bf16.gmra.mrb[20].mxu1 %v10758_v16  ;;  %v9225_v16 = vcombine.high %v479_v43, %v483_v45  ;;  %v531_v43 = vld [vmem:[#allocation5 + $0xaf0] sm:$0xff]  ;;  %v528_v45 = vld [vmem:[#allocation5 + $0xad8] sm:$0xff] }
 0x1e7   :  { %4030 = vmatpush1.bf16.msra.mxu0 %v9200_v28  ;;  %4322 = vmatpush1.bf16.msra.mxu1 %v9202_v53  ;;  %v516_v28 = vld [vmem:[#allocation5 + $0xa78] sm:$0xff]  ;;  %v9248_v53 = vcombine.low %v503_v10, %v507_v11  ;;  %v555_v10 = vld [vmem:[#allocation5 + $0xbb0] sm:$0xff] }
 0x1e8   :  { %4031 = vmatprep.subr.bf16.mxu0 %v9209_v29  ;;  %4323 = vmatprep.subr.bf16.mxu1 %v9211_v25  ;;  %v9250_v29 = vcombine.low %v504_v12, %v508_v15  ;;  %v9259_v25 = vcombine.high %v512_v26, %v516_v28  ;;  %v552_v11 = vld [vmem:[#allocation5 + $0xb98] sm:$0xff] }
 0x1e9   :  { %4004 = vmatprep.mubr.bf16.mxu0 %v10760_v27  ;;  %4296 = vmatprep.mubr.bf16.mxu1 %v10760_v27  ;;  %v9226_v27 = vcombine.low %v480_v38, %v484_v30  ;;  %v532_v38 = vld [vmem:[#allocation5 + $0xaf8] sm:$0xff]  ;;  %v9264_v30 = vcombine.low %v519_v31, %v523_v20 }
 0x1ea   :  { %v556_v12 = vld [vmem:[#allocation5 + $0xbb8] sm:$0xff] }
 0x1eb   :  { %4032 = vmatpush1.bf16.msra.mxu0 %v9208_v37  ;;  %4324 = vmatpush1.bf16.msra.mxu1 %v9210_v1  ;;  %v9256_v37 = vcombine.low %v511_v21, %v515_v24  ;;  %v9258_v1 = vcombine.low %v512_v26, %v516_v28  ;;  %v564_v26 = vld [vmem:[#allocation5 + $0xbf8] sm:$0xff] }
 0x1ec   :  { %4033 = vmatprep.subr.bf16.mxu0 %v9217_v39  ;;  %4325 = vmatprep.subr.bf16.mxu1 %v9219_v40  ;;  %v9265_v39 = vcombine.high %v519_v31, %v523_v20  ;;  %v527_v40 = vld [vmem:[#allocation5 + $0xad0] sm:$0xff]  ;;  %v568_v20 = vld [vmem:[#allocation5 + $0xc18] sm:$0xff] }
 0x1ed   :  { %v9272_v47 = vcombine.low %v527_v40, %v531_v43  ;;  %v571_v31 = vld [vmem:[#allocation5 + $0xc30] sm:$0xff] }
 0x1ee   :  { %4005 = vmatmul.mubr.bf16.gmra.mrb[24].mxu0 %v10766_v42  ;;  %4297 = vmatmul.mubr.bf16.gmra.mrb[24].mxu1 %v10766_v42  ;;  %v9241_v42 = vcombine.high %v495_v63, %v499_v0  ;;  %v547_v63 = vld [vmem:[#allocation5 + $0xb70] sm:$0xff]  ;;  %v544_v0 = vld [vmem:[#allocation5 + $0xb58] sm:$0xff] }
 0x1ef   :  { %4034 = vmatpush1.bf16.msra.mxu0 %v9216_v46  ;;  %4326 = vmatpush1.bf16.msra.mxu1 %v9218_v48  ;;  %v9266_v46 = vcombine.low %v520_v33, %v524_v34  ;;  %v9273_v48 = vcombine.high %v527_v40, %v531_v43  ;;  %v579_v40 = vld [vmem:[#allocation5 + $0xc70] sm:$0xff]  ;;  %v576_v43 = vld [vmem:[#allocation5 + $0xc58] sm:$0xff] }
 0x1f0   :  { %4035 = vmatprep.subr.bf16.mxu0 %v9225_v16  ;;  %4327 = vmatprep.subr.bf16.mxu1 %v9227_v49  ;;  %v9275_v16 = vcombine.high %v528_v45, %v532_v38  ;;  %v535_v49 = vld [vmem:[#allocation5 + $0xb10] sm:$0xff] }
 0x1f1   :  { %4014 = vmatprep.mubr.bf16.mxu0 %v10768_v52  ;;  %4306 = vmatprep.mubr.bf16.mxu1 %v10768_v52  ;;  %v9242_v52 = vcombine.low %v496_v7, %v500_v8  ;;  %v548_v7 = vld [vmem:[#allocation5 + $0xb78] sm:$0xff]  ;;  %v9280_v8 = vcombine.low %v535_v49, %v539_v50 }
 0x1f3   :  { %4036 = vmatpush1.bf16.msra.mxu0 %v9224_v59  ;;  %4328 = vmatpush1.bf16.msra.mxu1 %v9226_v27  ;;  %v9274_v59 = vcombine.low %v528_v45, %v532_v38  ;;  %v9281_v27 = vcombine.high %v535_v49, %v539_v50  ;;  %v580_v45 = vld [vmem:[#allocation5 + $0xc78] sm:$0xff]  ;;  %v587_v49 = vld [vmem:[#allocation5 + $0xcb0] sm:$0xff] }
 0x1f4   :  { %4037 = vmatprep.subr.bf16.mxu0 %v9233_v60  ;;  %4329 = vmatprep.subr.bf16.mxu1 %v9235_v62  ;;  %v9283_v60 = vcombine.high %v536_v54, %v540_v57  ;;  %v543_v62 = vld [vmem:[#allocation5 + $0xb50] sm:$0xff]  ;;  %v584_v50 = vld [vmem:[#allocation5 + $0xc98] sm:$0xff] }
 0x1f5   :  { %v9288_v15 = vcombine.low %v543_v62, %v547_v63 }
 0x1f6   :  { %4015 = vmatmul.mubr.bf16.gmra.mrb[28].mxu0 %v10774_v5  ;;  %4307 = vmatmul.mubr.bf16.gmra.mrb[28].mxu1 %v10774_v5  ;;  %v9257_v5 = vcombine.high %v511_v21, %v515_v24  ;;  %v563_v21 = vld [vmem:[#allocation5 + $0xbf0] sm:$0xff]  ;;  %v560_v24 = vld [vmem:[#allocation5 + $0xbd8] sm:$0xff] }
 0x1f7   :  { %4038 = vmatpush1.bf16.msra.mxu0 %v9232_v9  ;;  %4330 = vmatpush1.bf16.msra.mxu1 %v9234_v61  ;;  %v9282_v9 = vcombine.low %v536_v54, %v540_v57  ;;  %v9289_v61 = vcombine.high %v543_v62, %v547_v63  ;;  %v588_v54 = vld [vmem:[#allocation5 + $0xcb8] sm:$0xff]  ;;  %v595_v62 = vld [vmem:[#allocation5 + $0xcf0] sm:$0xff] }
 0x1f8   :  { %4039 = vmatprep.subr.bf16.mxu0 %v9241_v42  ;;  %4331 = vmatprep.subr.bf16.mxu1 %v9243_v58  ;;  %v9291_v42 = vcombine.high %v544_v0, %v548_v7  ;;  %v551_v58 = vld [vmem:[#allocation5 + $0xb90] sm:$0xff]  ;;  %v592_v63 = vld [vmem:[#allocation5 + $0xcd8] sm:$0xff] }
 0x1f9   :  { %4057 = vmatprep.mubr.bf16.mxu0 %v10776_v17  ;;  %4349 = vmatprep.mubr.bf16.mxu1 %v10776_v17  ;;  %v9267_v17 = vcombine.high %v520_v33, %v524_v34  ;;  %v9296_v28 = vcombine.low %v551_v58, %v555_v10  ;;  %v572_v33 = vld [vmem:[#allocation5 + $0xc38] sm:$0xff] }
 0x1fb   :  { %4040 = vmatpush1.bf16.msra.mxu0 %v9240_v18  ;;  %4332 = vmatpush1.bf16.msra.mxu1 %v9242_v52  ;;  %v9290_v18 = vcombine.low %v544_v0, %v548_v7  ;;  %v9297_v52 = vcombine.high %v551_v58, %v555_v10  ;;  %v596_v0 = vld [vmem:[#allocation5 + $0xcf8] sm:$0xff]  ;;  %v695_v7 = vlaneseq  ;;  %v603_v58 = vld [vmem:[#allocation5 + $0xd30] sm:$0xff] }
 0x1fc   :  { %4041 = vmatprep.subr.bf16.mxu0 %v9249_v6  ;;  %4333 = vmatprep.subr.bf16.mxu1 %v9251_v19  ;;  %v9299_v6 = vcombine.high %v552_v11, %v556_v12  ;;  %v559_v19 = vld [vmem:[#allocation5 + $0xbd0] sm:$0xff]  ;;  %v600_v10 = vld [vmem:[#allocation5 + $0xd18] sm:$0xff] }
 0x1fd   :  { %v9304_v34 = vcombine.low %v559_v19, %v563_v21 }
 0x1ff   :  { %4042 = vmatpush1.bf16.msra.mxu0 %v9248_v53  ;;  %4334 = vmatpush1.bf16.msra.mxu1 %v9250_v29  ;;  %v9298_v53 = vcombine.low %v552_v11, %v556_v12  ;;  %v9305_v29 = vcombine.high %v559_v19, %v563_v21  ;;  %v604_v11 = vld [vmem:[#allocation5 + $0xd38] sm:$0xff]  ;;  %v10880_v12 = vshrl.u32 %v695_v7, 7  ;;  %v611_v19 = vld [vmem:[#allocation5 + $0xd70] sm:$0xff] }
 0x200   :  { %4043 = vmatprep.subr.bf16.mxu0 %v9257_v5  ;;  %4335 = vmatprep.subr.bf16.mxu1 %v9259_v25  ;;  %v9307_v5 = vcombine.high %v560_v24, %v564_v26  ;;  %v567_v25 = vld [vmem:[#allocation5 + $0xc10] sm:$0xff] }
 0x201   :  { %v9312_v38 = vcombine.low %v567_v25, %v571_v31  ;;  %v697_v21 = vsub.s32 0, %v10880_v12 }
 0x203   :  { %4044 = vmatpush1.bf16.msra.mxu0 %v9256_v37  ;;  %4336 = vmatpush1.bf16.msra.mxu1 %v9258_v1  ;;  %v9306_v37 = vcombine.low %v560_v24, %v564_v26  ;;  %v9313_v1 = vcombine.high %v567_v25, %v571_v31  ;;  %v608_v24 = vld [vmem:[#allocation5 + $0xd58] sm:$0xff]  ;;  %v11507_v25 = vsub.s32 3, %v10880_v12 }
 0x204   :  { %4045 = vmatprep.subr.bf16.mxu0 %v9265_v39  ;;  %4337 = vmatprep.subr.bf16.mxu1 %v9267_v17  ;;  %v9315_v39 = vcombine.high %v568_v20, %v572_v33  ;;  %v575_v17 = vld [vmem:[#allocation5 + $0xc50] sm:$0xff]  ;;  %v612_v26 = vld [vmem:[#allocation5 + $0xd78] sm:$0xff] }
 0x205   :  { %v9320_v57 = vcombine.low %v575_v17, %v579_v40 }
 0x207   :  { %4046 = vmatpush1.bf16.msra.mxu0 %v9264_v30  ;;  %4338 = vmatpush1.bf16.msra.mxu1 %v9266_v46  ;;  %v9314_v30 = vcombine.low %v568_v20, %v572_v33  ;;  %v9321_v46 = vcombine.high %v575_v17, %v579_v40  ;;  %v9355_v20 = vcombine.high %v608_v24, %v612_v26  ;;  %v615_v33 = vld [vmem:[#allocation5 + $0xd90] sm:$0xff] }
 0x208   :  { %4047 = vmatprep.subr.bf16.mxu0 %v9273_v48  ;;  %4339 = vmatprep.subr.bf16.mxu1 %v9275_v16  ;;  %v9323_v48 = vcombine.high %v576_v43, %v580_v45  ;;  %v583_v16 = vld [vmem:[#allocation5 + $0xc90] sm:$0xff] }
 0x20b   :  { %4048 = vmatpush1.bf16.msra.mxu0 %v9272_v47  ;;  %4340 = vmatpush1.bf16.msra.mxu1 %v9274_v59  ;;  %v9322_v47 = vcombine.low %v576_v43, %v580_v45  ;;  %v9329_v59 = vcombine.high %v583_v16, %v587_v49  ;;  %v9354_v45 = vcombine.low %v608_v24, %v612_v26  ;;  %v10944_v24 = vld [vmem:[#allocation5 + $0xe38] sm:$0xff] }
 0x20c   :  { %4049 = vmatprep.subr.bf16.mxu0 %v9281_v27  ;;  %4341 = vmatprep.subr.bf16.mxu1 %v9283_v60  ;;  %v9331_v27 = vcombine.high %v584_v50, %v588_v54  ;;  %v591_v60 = vld [vmem:[#allocation5 + $0xcd0] sm:$0xff] }
 0x20f   :  { %4050 = vmatpush1.bf16.msra.mxu0 %v9280_v8  ;;  %4342 = vmatpush1.bf16.msra.mxu1 %v9282_v9  ;;  %v9328_v8 = vcombine.low %v583_v16, %v587_v49  ;;  %v9337_v9 = vcombine.high %v591_v60, %v595_v62  ;;  %v10913_v16 = vld [vmem:[#allocation5 + $0xdf0] sm:$0xff] }
 0x210   :  { %4051 = vmatprep.subr.bf16.mxu0 %v9289_v61  ;;  %4343 = vmatprep.subr.bf16.mxu1 %v9291_v42  ;;  %v9339_v61 = vcombine.high %v592_v63, %v596_v0  ;;  %v599_v42 = vld [vmem:[#allocation5 + $0xd10] sm:$0xff] }
 0x213   :  { %4052 = vmatpush1.bf16.msra.mxu0 %v9288_v15  ;;  %4344 = vmatpush1.bf16.msra.mxu1 %v9290_v18  ;;  %v9336_v15 = vcombine.low %v591_v60, %v595_v62  ;;  %v9345_v18 = vcombine.high %v599_v42, %v603_v58 }
 0x214   :  { %4053 = vmatprep.subr.bf16.mxu0 %v9297_v52  ;;  %4345 = vmatprep.subr.bf16.mxu1 %v9299_v6  ;;  %v9347_v52 = vcombine.high %v600_v10, %v604_v11  ;;  %v607_v6 = vld [vmem:[#allocation5 + $0xd50] sm:$0xff] }
 0x215   :  { %v9353_v31 = vcombine.high %v607_v6, %v611_v19  ;;  %v9352_v40 = vcombine.low %v607_v6, %v611_v19  ;;  %v10942_v19 = vld [vmem:[#allocation5 + $0xe18] sm:$0xff] }
 0x217   :  { %4054 = vmatpush1.bf16.msra.mxu0 %v9296_v28  ;;  %4346 = vmatpush1.bf16.msra.mxu1 %v9298_v53  ;;  %v9344_v28 = vcombine.low %v599_v42, %v603_v58  ;;  %v693_v53 = vld [vmem:[#allocation7] sm:$0xff] }
 0x218   :  { %4055 = vmatprep.subr.bf16.mxu0 %v9305_v29  ;;  %4347 = vmatprep.subr.bf16.mxu1 %v9307_v5  ;;  %v11508_v29 = vsub.s32 1, %v10880_v12  ;;  %v9346_v5 = vcombine.low %v600_v10, %v604_v11  ;;  %v10908_v43 = vrot.slane %v693_v53, %v11507_v25  ;;  %v10935_v11 = vld [vmem:[#allocation5 + $0xe10] sm:$0xff] }
 0x21a   :  { %v10903_v17 = vrot.slane %v693_v53, %v11508_v29 }
 0x21b   :  { %4056 = vmatpush1.bf16.msra.mxu0 %v9304_v34  ;;  %4348 = vmatpush1.bf16.msra.mxu1 %v9306_v37  ;;  %v619_v34 = vld [vmem:[#allocation5 + $0xdb0] sm:$0xff]  ;;  %v10894_v37 = vld [vmem:[#allocation5 + $0xd98] sm:$0xff] }
 0x21c   :  { %4098 = vmatprep.subr.bf16.mxu0 %v9313_v1  ;;  %4390 = vmatprep.subr.bf16.mxu1 %v9315_v39  ;;  %v620_v1 = vld [vmem:[#allocation5 + $0xdb8] sm:$0xff]  ;;  %v9360_v62 = vcombine.low %v615_v33, %v619_v34 }
 0x21e   :  { %4058 = vmatmul.mubr.bf16.vlgmr.msra.gmra.mrb[16].mxu0 %v10782_v55  ;;  %4350 = vmatmul.mubr.bf16.vlgmr.msra.gmra.mrb[16].mxu1 %v10782_v55  ;;  %v9330_v55 = vcombine.low %v584_v50, %v588_v54  ;;  %v10917_v54 = vld [vmem:[#allocation5 + $0xdd8] sm:$0xff] }
 0x21f   :  { %4099 = vmatpush1.bf16.msra.mxu0 %v9312_v38  ;;  %4391 = vmatpush1.bf16.msra.mxu1 %v9314_v30  ;;  %v9361_v38 = vcombine.high %v615_v33, %v619_v34 }
 0x220   :  { %4100 = vmatprep.subr.bf16.mxu0 %v9321_v46  ;;  %4392 = vmatprep.subr.bf16.mxu1 %v9323_v48  ;;  %v9363_v46 = vcombine.high %v10894_v37, %v620_v1  ;;  %v10911_v48 = vld [vmem:[#allocation5 + $0xdd0] sm:$0xff] }
 0x221   :  { %4067 = vmatprep.mubr.bf16.mxu0 %v10784_v4  ;;  %4359 = vmatprep.mubr.bf16.mxu1 %v10784_v4  ;;  %v9338_v4 = vcombine.low %v592_v63, %v596_v0  ;;  %v9362_v63 = vcombine.low %v10894_v37, %v620_v1  ;;  %v9368_v58 = vcombine.low %v10911_v48, %v10913_v16 }
 0x223   :  { %4101 = vmatpush1.bf16.msra.mxu0 %v9320_v57  ;;  %4393 = vmatpush1.bf16.msra.mxu1 %v9322_v47  ;;  %v10919_v57 = vld [vmem:[#allocation5 + $0xdf8] sm:$0xff] }
 0x224   :  { %4102 = vmatprep.subr.bf16.mxu0 %v9329_v59  ;;  %4394 = vmatprep.subr.bf16.mxu1 %v9331_v27  ;;  %v9371_v10 = vcombine.high %v10917_v54, %v10919_v57  ;;  %v9370_v6 = vcombine.low %v10917_v54, %v10919_v57 }
 0x226   :  { %4068 = vmatmul.mubr.bf16.gmra.mrb[20].mxu0 %v10790_v23  ;;  %4360 = vmatmul.mubr.bf16.gmra.mrb[20].mxu1 %v10790_v23  ;;  %v11509_v23 = vsub.s32 2, %v10880_v12 }
 0x227   :  { %4103 = vmatpush1.bf16.msra.mxu0 %v9328_v8  ;;  %4395 = vmatpush1.bf16.msra.mxu1 %v9330_v55 }
 0x228   :  { %4104 = vmatprep.subr.bf16.mxu0 %v9337_v9  ;;  %4396 = vmatprep.subr.bf16.mxu1 %v9339_v61  ;;  %v10899_v39 = vrot.slane %v693_v53, %v11509_v23 }
 0x229   :  { %4077 = vmatprep.mubr.bf16.mxu0 %v10792_v35  ;;  %4369 = vmatprep.mubr.bf16.mxu1 %v10792_v35  ;;  %v10892_v35 = vrot.slane %v693_v53, %v697_v21 }
 0x22b   :  { %4105 = vmatpush1.bf16.msra.mxu0 %v9336_v15  ;;  %4397 = vmatpush1.bf16.msra.mxu1 %v9338_v4  ;;  %v10937_v15 = vld [vmem:[#allocation5 + $0xe30] sm:$0xff] }
 0x22c   :  { %4106 = vmatprep.subr.bf16.mxu0 %v9345_v18  ;;  %4398 = vmatprep.subr.bf16.mxu1 %v9347_v52  ;;  %v9377_v34 = vcombine.high %v10935_v11, %v10937_v15 }
 0x22e   :  { %4078 = vmatmul.mubr.bf16.gmra.mrb[24].mxu0 %v10798_v51  ;;  %4370 = vmatmul.mubr.bf16.gmra.mrb[24].mxu1 %v10798_v51 }
 0x22f   :  { %4107 = vmatpush1.bf16.msra.mxu0 %v9344_v28  ;;  %4399 = vmatpush1.bf16.msra.mxu1 %v9346_v5 }
 0x230   :  { %4108 = vmatprep.subr.bf16.mxu0 %v9353_v31  ;;  %4400 = vmatprep.subr.bf16.mxu1 %v9355_v20 }
 0x231   :  { %v3548_v30 = vpop.f32.mrb[0].mxu0  ;;  %4087 = vmatprep.mubr.bf16.mxu0 %v10800_v2  ;;  %v3840_v49 = vpop.f32.mrb[0].mxu1  ;;  %4379 = vmatprep.mubr.bf16.mxu1 %v10800_v2  ;;  %v9369_v2 = vcombine.high %v10911_v48, %v10913_v16 }
 0x232   :  { %v9948_v51 = vadd.f32 %v3548_v30, %v10892_v35  ;;  %v3550_v50 = vpop.f32.mrb[1].mxu0  ;;  %v9964_v47 = vadd.f32 %v3840_v49, %v10899_v39  ;;  %v3842_v27 = vpop.f32.mrb[1].mxu1  ;;  %v10968_v49 = vld [vmem:[#allocation5 + $0xe78] sm:$0xff] }
 0x233   :  { %v9949_v59 = vadd.f32 %v3550_v50, %v10903_v17  ;;  %v3552_v60 = vpop.f32.mrb[2].mxu0  ;;  %4109 = vmatpush1.bf16.msra.mxu0 %v9352_v40  ;;  %v9965_v0 = vadd.f32 %v3842_v27, %v10908_v43  ;;  %v3844_v8 = vpop.f32.mrb[2].mxu1  ;;  %4401 = vmatpush1.bf16.msra.mxu1 %v9354_v45  ;;  %v9379_v45 = vcombine.high %v10942_v19, %v10944_v24 }
 0x234   :  { %v9950_v7 = vadd.f32 %v3552_v60, %v10892_v35  ;;  %v3554_v55 = vpop.f32.mrb[3].mxu0  ;;  %4110 = vmatprep.subr.bf16.mxu0 %v9361_v38  ;;  %v9966_v9 = vadd.f32 %v3844_v8, %v10899_v39  ;;  %v3846_v42 = vpop.f32.mrb[3].mxu1  ;;  %4402 = vmatprep.subr.bf16.mxu1 %v9363_v46  ;;  %v4463_v4 = vmax.f32 %v9948_v51, 0.0  ;;  %v4465_v26 = vmax.f32 %v9964_v47, 0.0  ;;  %v10958_v38 = vld [vmem:[#allocation5 + $0xe50] sm:$0xff]  ;;  %v10966_v51 = vld [vmem:[#allocation5 + $0xe58] sm:$0xff] }
 0x235   :  { %v9951_v61 = vadd.f32 %v3554_v55, %v10903_v17  ;;  %v9967_v52 = vadd.f32 %v3846_v42, %v10908_v43  ;;  %v4464_v28 = vmax.f32 %v9949_v59, 0.0  ;;  %v4466_v31 = vmax.f32 %v9965_v0, 0.0  ;;  %v10989_v42 = vld [vmem:[#allocation5 + $0xeb0] sm:$0xff] }
 0x236   :  { %v4471_v18 = vmax.f32 %v9950_v7, 0.0  ;;  %4088 = vmatmul.mubr.bf16.gmra.mrb[28].mxu0 %v10806_v22  ;;  %v4473_v53 = vmax.f32 %v9966_v9, 0.0  ;;  %4380 = vmatmul.mubr.bf16.gmra.mrb[28].mxu1 %v10806_v22  ;;  %v10960_v22 = vld [vmem:[#allocation5 + $0xe70] sm:$0xff]  ;;  %v9376_v59 = vcombine.low %v10935_v11, %v10937_v15  ;;  %v9378_v27 = vcombine.low %v10942_v19, %v10944_v24 }
 0x237   :  { %v4472_v5 = vmax.f32 %v9951_v61, 0.0  ;;  %4111 = vmatpush1.bf16.msra.mxu0 %v9360_v62  ;;  %v4474_v33 = vmax.f32 %v9967_v52, 0.0  ;;  %4403 = vmatpush1.bf16.msra.mxu1 %v9362_v63  ;;  %v9385_v0 = vcombine.high %v10958_v38, %v10960_v22  ;;  %v9387_v9 = vcombine.high %v10966_v51, %v10968_v49  ;;  %v10987_v61 = vld [vmem:[#allocation5 + $0xe90] sm:$0xff] }
 0x238   :  { %v10948_v20 = vpack.c.bf16 %v4471_v18, %v4463_v4  ;;  %4112 = vmatprep.subr.bf16.mxu0 %v9369_v2  ;;  %v10952_v37 = vpack.c.bf16 %v4473_v53, %v4465_v26  ;;  %4404 = vmatprep.subr.bf16.mxu1 %v9371_v10  ;;  %v9384_v2 = vcombine.low %v10958_v38, %v10960_v22  ;;  %v648_v4 = vld [vmem:[#allocation5 + $0xe98] sm:$0xff]  ;;  %v11004_v38 = vld [vmem:[#allocation5 + $0xef0] sm:$0xff] }
 0x239   :  { %v10954_v1 = vpack.c.bf16 %v4472_v5, %v4464_v28  ;;  %v3558_v40 = vpop.f32.mrb[4].mxu0  ;;  %4130 = vmatprep.mubr.bf16.mxu0 %v10808_v36  ;;  %v10963_v30 = vpack.c.bf16 %v4474_v33, %v4466_v31  ;;  %v3850_v48 = vpop.f32.mrb[4].mxu1  ;;  %4422 = vmatprep.mubr.bf16.mxu1 %v10808_v36  ;;  %v9386_v15 = vcombine.low %v10966_v51, %v10968_v49  ;;  %v652_v18 = vld [vmem:[#allocation5 + $0xeb8] sm:$0xff] }
 0x23a   :  { %v9952_v46 = vadd.f32 %v3558_v40, %v10892_v35  ;;  %v3560_v16 = vpop.f32.mrb[5].mxu0  ;;  %v9968_v50 = vadd.f32 %v3850_v48, %v10899_v39  ;;  %v3852_v57 = vpop.f32.mrb[5].mxu1  ;;  %v9393_v5 = vcombine.high %v10987_v61, %v10989_v42  ;;  %v9395_v40 = vcombine.high %v648_v4, %v652_v18  ;;  %v11009_v51 = vld [vmem:[#allocation5 + $0xed8] sm:$0xff] }
 0x23b   :  { %v9953_v54 = vadd.f32 %v3560_v16, %v10903_v17  ;;  %v3562_v47 = vpop.f32.mrb[6].mxu0  ;;  %4113 = vmatpush1.bf16.msra.mxu0 %v9368_v58  ;;  %v9969_v60 = vadd.f32 %v3852_v57, %v10908_v43  ;;  %v3854_v63 = vpop.f32.mrb[6].mxu1  ;;  %4405 = vmatpush1.bf16.msra.mxu1 %v9370_v6  ;;  %v11011_v49 = vld [vmem:[#allocation5 + $0xef8] sm:$0xff] }
 0x23c   :  { %v9954_v62 = vadd.f32 %v3562_v47, %v10892_v35  ;;  %v3564_v36 = vpop.f32.mrb[7].mxu0  ;;  %4114 = vmatprep.subr.bf16.mxu0 %v9377_v34  ;;  %v9970_v7 = vadd.f32 %v3854_v63, %v10899_v39  ;;  %v3856_v55 = vpop.f32.mrb[7].mxu1  ;;  %4406 = vmatprep.subr.bf16.mxu1 %v9379_v45  ;;  %v4479_v58 = vmax.f32 %v9952_v46, 0.0  ;;  %v4481_v52 = vmax.f32 %v9968_v50, 0.0  ;;  %v11002_v45 = vld [vmem:[#allocation5 + $0xed0] sm:$0xff] }
 0x23d   :  { %v9955_v8 = vadd.f32 %v3564_v36, %v10903_v17  ;;  %v9971_v11 = vadd.f32 %v3856_v55, %v10908_v43  ;;  %v4480_v6 = vmax.f32 %v9953_v54, 0.0  ;;  %v4482_v26 = vmax.f32 %v9969_v60, 0.0 }
 0x23e   :  { %v4487_v10 = vmax.f32 %v9954_v62, 0.0  ;;  %v4489_v19 = vmax.f32 %v9970_v7, 0.0 }
 0x23f   :  { %v4488_v24 = vmax.f32 %v9955_v8, 0.0  ;;  %4115 = vmatpush1.bf16.msra.mxu0 %v9376_v59  ;;  %v4490_v53 = vmax.f32 %v9971_v11, 0.0  ;;  %4407 = vmatpush1.bf16.msra.mxu1 %v9378_v27  ;;  %v9392_v59 = vcombine.low %v10987_v61, %v10989_v42  ;;  %v9394_v27 = vcombine.low %v648_v4, %v652_v18  ;;  %v11027_v61 = vld [vmem:[#allocation5 + $0xf10] sm:$0xff]  ;;  %v664_v4 = vld [vmem:[#allocation5 + $0xf18] sm:$0xff] }
 0x240   :  { %v10994_v28 = vpack.c.bf16 %v4487_v10, %v4479_v58  ;;  %4116 = vmatprep.subr.bf16.mxu0 %v9385_v0  ;;  %v10998_v31 = vpack.c.bf16 %v4489_v19, %v4481_v52  ;;  %4408 = vmatprep.subr.bf16.mxu1 %v9387_v9  ;;  %v9401_v0 = vcombine.high %v11002_v45, %v11004_v38  ;;  %v11029_v42 = vld [vmem:[#allocation5 + $0xf30] sm:$0xff]  ;;  %v668_v18 = vld [vmem:[#allocation5 + $0xf38] sm:$0xff] }
 0x241   :  { %v11000_v33 = vpack.c.bf16 %v4488_v24, %v4480_v6  ;;  %v3568_v34 = vpop.f32.mrb[8].mxu0  ;;  %v11006_v22 = vpack.c.bf16 %v4490_v53, %v4482_v26  ;;  %v3860_v48 = vpop.f32.mrb[8].mxu1  ;;  %v9403_v9 = vcombine.high %v11009_v51, %v11011_v49 }
 0x242   :  { %v9956_v46 = vadd.f32 %v3568_v34, %v10892_v35  ;;  %v3570_v16 = vpop.f32.mrb[9].mxu0  ;;  %v9972_v50 = vadd.f32 %v3860_v48, %v10899_v39  ;;  %v3862_v57 = vpop.f32.mrb[9].mxu1  ;;  %v9409_v34 = vcombine.high %v11027_v61, %v11029_v42  ;;  %v671_v48 = vld [vmem:[#allocation5 + $0xf50] sm:$0xff] }
 0x243   :  { %v9957_v54 = vadd.f32 %v3570_v16, %v10903_v17  ;;  %v3572_v47 = vpop.f32.mrb[10].mxu0  ;;  %4117 = vmatpush1.bf16.msra.mxu0 %v9384_v2  ;;  %v9973_v60 = vadd.f32 %v3862_v57, %v10908_v43  ;;  %v3864_v63 = vpop.f32.mrb[10].mxu1  ;;  %4409 = vmatpush1.bf16.msra.mxu1 %v9386_v15  ;;  %v9400_v2 = vcombine.low %v11002_v45, %v11004_v38  ;;  %v675_v16 = vld [vmem:[#allocation5 + $0xf70] sm:$0xff]  ;;  %v672_v57 = vld [vmem:[#allocation5 + $0xf58] sm:$0xff] }
 0x244   :  { %v9958_v62 = vadd.f32 %v3572_v47, %v10892_v35  ;;  %v3574_v36 = vpop.f32.mrb[11].mxu0  ;;  %4118 = vmatprep.subr.bf16.mxu0 %v9393_v5  ;;  %v9974_v7 = vadd.f32 %v3864_v63, %v10899_v39  ;;  %v3866_v55 = vpop.f32.mrb[11].mxu1  ;;  %4410 = vmatprep.subr.bf16.mxu1 %v9395_v40  ;;  %v4495_v58 = vmax.f32 %v9956_v46, 0.0  ;;  %v9402_v15 = vcombine.low %v11009_v51, %v11011_v49  ;;  %v676_v47 = vld [vmem:[#allocation5 + $0xf78] sm:$0xff] }
 0x245   :  { %v9959_v8 = vadd.f32 %v3574_v36, %v10903_v17  ;;  %v9975_v11 = vadd.f32 %v3866_v55, %v10908_v43  ;;  %v4497_v52 = vmax.f32 %v9972_v50, 0.0  ;;  %v4496_v6 = vmax.f32 %v9957_v54, 0.0 }
 0x246   :  { %v4503_v10 = vmax.f32 %v9958_v62, 0.0  ;;  %v4505_v19 = vmax.f32 %v9974_v7, 0.0  ;;  %v4498_v26 = vmax.f32 %v9973_v60, 0.0  ;;  %v9411_v46 = vcombine.high %v664_v4, %v668_v18 }
 0x247   :  { %v4504_v24 = vmax.f32 %v9959_v8, 0.0  ;;  %4119 = vmatpush1.bf16.msra.mxu0 %v9392_v59  ;;  %v4506_v5 = vmax.f32 %v9975_v11, 0.0  ;;  %4411 = vmatpush1.bf16.msra.mxu1 %v9394_v27  ;;  %v9408_v63 = vcombine.low %v11027_v61, %v11029_v42  ;;  %v9410_v36 = vcombine.low %v664_v4, %v668_v18  ;;  %v683_v61 = vld [vmem:[#allocation5 + $0xfb0] sm:$0xff] }
 0x248   :  { %v11034_v53 = vpack.c.bf16 %v4503_v10, %v4495_v58  ;;  %4120 = vmatprep.subr.bf16.mxu0 %v9401_v0  ;;  %v11038_v40 = vpack.c.bf16 %v4505_v19, %v4497_v52  ;;  %4412 = vmatprep.subr.bf16.mxu1 %v9403_v9  ;;  %v9417_v9 = vcombine.high %v671_v48, %v675_v16  ;;  %v680_v19 = vld [vmem:[#allocation5 + $0xf98] sm:$0xff] }
 0x249   :  { %v11040_v45 = vpack.c.bf16 %v4504_v24, %v4496_v6  ;;  %v3578_v38 = vpop.f32.mrb[12].mxu0  ;;  %v11042_v51 = vpack.c.bf16 %v4506_v5, %v4498_v26  ;;  %v3870_v50 = vpop.f32.mrb[12].mxu1  ;;  %v9419_v52 = vcombine.high %v672_v57, %v676_v47  ;;  %v679_v6 = vld [vmem:[#allocation5 + $0xf90] sm:$0xff] }
 0x24a   :  { %v9960_v49 = vadd.f32 %v3578_v38, %v10892_v35  ;;  %v3580_v54 = vpop.f32.mrb[13].mxu0  ;;  %v9976_v59 = vadd.f32 %v3870_v50, %v10899_v39  ;;  %v3872_v60 = vpop.f32.mrb[13].mxu1  ;;  %v691_v50 = vld [vmem:[#allocation5 + $0xff0] sm:$0xff] }
 0x24b   :  { %v9961_v27 = vadd.f32 %v3580_v54, %v10903_v17  ;;  %v3582_v62 = vpop.f32.mrb[14].mxu0  ;;  %4121 = vmatpush1.bf16.msra.mxu0 %v9400_v2  ;;  %v9977_v0 = vadd.f32 %v3872_v60, %v10908_v43  ;;  %v3874_v8 = vpop.f32.mrb[14].mxu1  ;;  %4413 = vmatpush1.bf16.msra.mxu1 %v9402_v15  ;;  %v9416_v2 = vcombine.low %v671_v48, %v675_v16  ;;  %v684_v15 = vld [vmem:[#allocation5 + $0xfb8] sm:$0xff] }
 0x24c   :  { %v9962_v7 = vadd.f32 %v3582_v62, %v10892_v35  ;;  %v3584_v55 = vpop.f32.mrb[15].mxu0  ;;  %4122 = vmatprep.subr.bf16.mxu0 %v9409_v34  ;;  %v9978_v58 = vadd.f32 %v3874_v8, %v10899_v39  ;;  %v3876_v11 = vpop.f32.mrb[15].mxu1  ;;  %4414 = vmatprep.subr.bf16.mxu1 %v9411_v46  ;;  %v4511_v42 = vmax.f32 %v9960_v49, 0.0  ;;  %v9418_v35 = vcombine.low %v672_v57, %v676_v47  ;;  %v687_v49 = vld [vmem:[#allocation5 + $0xfd0] sm:$0xff]  ;;  %v688_v57 = vld [vmem:[#allocation5 + $0xfd8] sm:$0xff] }
 0x24d   :  { %v9963_v10 = vadd.f32 %v3584_v55, %v10903_v17  ;;  %v9979_v18 = vadd.f32 %v3876_v11, %v10908_v43  ;;  %v4513_v24 = vmax.f32 %v9976_v59, 0.0  ;;  %v4512_v26 = vmax.f32 %v9961_v27, 0.0  ;;  %v692_v47 = vld [vmem:[#allocation5 + $0xff8] sm:$0xff]  ;;  %v4571_v11 = vld [vmem:[#allocation8 + $0x60] sm:$0xff] }
 0x24e   :  { %v4519_v4 = vmax.f32 %v9962_v7, 0.0  ;;  %v4521_v5 = vmax.f32 %v9978_v58, 0.0  ;;  %v4514_v39 = vmax.f32 %v9977_v0, 0.0  ;;  %v9425_v46 = vcombine.high %v679_v6, %v683_v61  ;;  %v4560_v0 = vld [vmem:[#allocation8 + $0x8] sm:$0xff] }
 0x24f   :  { %v4520_v34 = vmax.f32 %v9963_v10, 0.0  ;;  %4123 = vmatpush1.bf16.msra.mxu0 %v9408_v63  ;;  %v4522_v38 = vmax.f32 %v9979_v18, 0.0  ;;  %4415 = vmatpush1.bf16.msra.mxu1 %v9410_v36  ;;  %v9427_v43 = vcombine.high %v680_v19, %v684_v15  ;;  %v9424_v59 = vcombine.low %v679_v6, %v683_v61  ;;  %v4559_v63 = vld [vmem:[#allocation8] sm:$0xff]  ;;  %v4564_v7 = vld [vmem:[#allocation8 + $0x28] sm:$0xff] }
 0x250   :  { %v11054_v17 = vpack.c.bf16 %v4519_v4, %v4511_v42  ;;  %4124 = vmatprep.subr.bf16.mxu0 %v9417_v9  ;;  %v11056_v48 = vpack.c.bf16 %v4521_v5, %v4513_v24  ;;  %4416 = vmatprep.subr.bf16.mxu1 %v9419_v52  ;;  %v9426_v27 = vcombine.low %v680_v19, %v684_v15  ;;  %v4563_v36 = vld [vmem:[#allocation8 + $0x20] sm:$0xff]  ;;  %v4572_v52 = vld [vmem:[#allocation8 + $0x68] sm:$0xff] }
 0x251   :  { %v11058_v16 = vpack.c.bf16 %v4520_v34, %v4512_v26  ;;  %v11060_v54 = vpack.c.bf16 %v4522_v38, %v4514_v39  ;;  %v9433_v60 = vcombine.high %v687_v49, %v691_v50  ;;  %v9435_v62 = vcombine.high %v688_v57, %v692_v47  ;;  %v4567_v10 = vld [vmem:[#allocation8 + $0x40] sm:$0xff]  ;;  %v4576_v19 = vld [vmem:[#allocation8 + $0x88] sm:$0xff] }
 0x252   :  { %v9432_v8 = vcombine.low %v687_v49, %v691_v50  ;;  %v9434_v55 = vcombine.low %v688_v57, %v692_v47  ;;  %v9437_v9 = vcombine.high %v4559_v63, %v4563_v36  ;;  %v9439_v58 = vcombine.high %v4560_v0, %v4564_v7  ;;  %v4575_v18 = vld [vmem:[#allocation8 + $0x80] sm:$0xff]  ;;  %v4580_v15 = vld [vmem:[#allocation8 + $0xa8] sm:$0xff] }
 0x253   :  { %4125 = vmatpush1.bf16.msra.mxu0 %v9416_v2  ;;  %4417 = vmatpush1.bf16.msra.mxu1 %v9418_v35  ;;  %v4568_v2 = vld [vmem:[#allocation8 + $0x48] sm:$0xff]  ;;  %v9436_v6 = vcombine.low %v4559_v63, %v4563_v36  ;;  %v9438_v61 = vcombine.low %v4560_v0, %v4564_v7  ;;  %v9445_v42 = vcombine.high %v4567_v10, %v4571_v11  ;;  %v4579_v35 = vld [vmem:[#allocation8 + $0xa0] sm:$0xff] }
 0x254   :  { %4126 = vmatprep.subr.bf16.mxu0 %v9425_v46  ;;  %4418 = vmatprep.subr.bf16.mxu1 %v9427_v43  ;;  %v9447_v4 = vcombine.high %v4568_v2, %v4572_v52  ;;  %v9444_v24 = vcombine.low %v4567_v10, %v4571_v11  ;;  %v9446_v26 = vcombine.low %v4568_v2, %v4572_v52  ;;  %v4583_v39 = vld [vmem:[#allocation8 + $0xc0] sm:$0xff]  ;;  %v4584_v46 = vld [vmem:[#allocation8 + $0xc8] sm:$0xff] }
 0x255   :  { %v9453_v5 = vcombine.high %v4575_v18, %v4579_v35  ;;  %v9455_v34 = vcombine.high %v4576_v19, %v4580_v15  ;;  %v4587_v38 = vld [vmem:[#allocation8 + $0xe0] sm:$0xff]  ;;  %v4588_v43 = vld [vmem:[#allocation8 + $0xe8] sm:$0xff]  ;;  %v9452_v49 = vcombine.low %v4575_v18, %v4579_v35 }
 0x256   :  { %v9461_v50 = vcombine.high %v4583_v39, %v4587_v38  ;;  %v9463_v57 = vcombine.high %v4584_v46, %v4588_v43  ;;  %v4591_v47 = vld [vmem:[#allocation8 + $0x100] sm:$0xff]  ;;  %v4608_v52 = vld [vmem:[#allocation8 + $0x188] sm:$0xff] }
 0x257   :  { %4127 = vmatpush1.bf16.msra.mxu0 %v9424_v59  ;;  %4419 = vmatpush1.bf16.msra.mxu1 %v9426_v27  ;;  %v4595_v59 = vld [vmem:[#allocation8 + $0x120] sm:$0xff]  ;;  %v4592_v27 = vld [vmem:[#allocation8 + $0x108] sm:$0xff] }
 0x258   :  { %4128 = vmatprep.subr.bf16.mxu0 %v9433_v60  ;;  %4420 = vmatprep.subr.bf16.mxu1 %v9435_v62  ;;  %v4596_v60 = vld [vmem:[#allocation8 + $0x128] sm:$0xff]  ;;  %v9462_v62 = vcombine.low %v4584_v46, %v4588_v43  ;;  %v9469_v63 = vcombine.high %v4591_v47, %v4595_v59  ;;  %v4599_v0 = vld [vmem:[#allocation8 + $0x140] sm:$0xff] }
 0x259   :  { %v9471_v36 = vcombine.high %v4592_v27, %v4596_v60  ;;  %v4603_v7 = vld [vmem:[#allocation8 + $0x160] sm:$0xff]  ;;  %v4628_v46 = vld [vmem:[#allocation8 + $0x228] sm:$0xff] }
 0x25a   :  { %v4607_v11 = vld [vmem:[#allocation8 + $0x180] sm:$0xff] }
 0x25b   :  { %4129 = vmatpush1.bf16.msra.mxu0 %v9432_v8  ;;  %4421 = vmatpush1.bf16.msra.mxu1 %v9434_v55  ;;  %v4600_v8 = vld [vmem:[#allocation8 + $0x148] sm:$0xff]  ;;  %v4611_v2 = vld [vmem:[#allocation8 + $0x1a0] sm:$0xff] }
 0x25c   :  { %7673 = vmatprep.subr.bf16.mxu0 %v9437_v9  ;;  %7965 = vmatprep.subr.bf16.mxu1 %v9439_v58  ;;  %v4604_v55 = vld [vmem:[#allocation8 + $0x168] sm:$0xff]  ;;  %v9468_v9 = vcombine.low %v4591_v47, %v4595_v59  ;;  %v9477_v58 = vcombine.high %v4599_v0, %v4603_v7  ;;  %v4615_v18 = vld [vmem:[#allocation8 + $0x1c0] sm:$0xff] }
 0x25d   :  { %v9479_v10 = vcombine.high %v4600_v8, %v4604_v55  ;;  %v4619_v35 = vld [vmem:[#allocation8 + $0x1e0] sm:$0xff]  ;;  %v4632_v47 = vld [vmem:[#allocation8 + $0x248] sm:$0xff] }
 0x25e   :  { %4131 = vmatmul.mubr.bf16.vlgmr.msra.gmra.mrb[16].mxu0 %v10814_v32  ;;  %4423 = vmatmul.mubr.bf16.vlgmr.msra.gmra.mrb[16].mxu1 %v10814_v32  ;;  %v9454_v32 = vcombine.low %v4576_v19, %v4580_v15  ;;  %v9484_v19 = vcombine.low %v4607_v11, %v4611_v2  ;;  %v4616_v15 = vld [vmem:[#allocation8 + $0x1c8] sm:$0xff] }
 0x25f   :  { %7674 = vmatpush1.bf16.msra.mxu0 %v9436_v6  ;;  %7966 = vmatpush1.bf16.msra.mxu1 %v9438_v61  ;;  %v4612_v6 = vld [vmem:[#allocation8 + $0x1a8] sm:$0xff]  ;;  %v9478_v61 = vcombine.low %v4600_v8, %v4604_v55 }
 0x260   :  { %7675 = vmatprep.subr.bf16.mxu0 %v9445_v42  ;;  %7967 = vmatprep.subr.bf16.mxu1 %v9447_v4  ;;  %v9485_v42 = vcombine.high %v4607_v11, %v4611_v2  ;;  %v9487_v4 = vcombine.high %v4608_v52, %v4612_v6  ;;  %v4636_v59 = vld [vmem:[#allocation8 + $0x268] sm:$0xff] }
 0x261   :  { %4140 = vmatprep.mubr.bf16.mxu0 %v10816_v44  ;;  %4432 = vmatprep.mubr.bf16.mxu1 %v10816_v44  ;;  %v9460_v44 = vcombine.low %v4583_v39, %v4587_v38  ;;  %v4624_v38 = vld [vmem:[#allocation8 + $0x208] sm:$0xff]  ;;  %v9510_v8 = vcombine.low %v4632_v47, %v4636_v59 }
 0x262   :  { %v4652_v11 = vld [vmem:[#allocation8 + $0x2e8] sm:$0xff] }
 0x263   :  { %7676 = vmatpush1.bf16.msra.mxu0 %v9444_v24  ;;  %7968 = vmatpush1.bf16.msra.mxu1 %v9446_v26  ;;  %v4620_v24 = vld [vmem:[#allocation8 + $0x1e8] sm:$0xff]  ;;  %v9493_v26 = vcombine.high %v4615_v18, %v4619_v35 }
 0x264   :  { %7677 = vmatprep.subr.bf16.mxu0 %v9453_v5  ;;  %7969 = vmatprep.subr.bf16.mxu1 %v9455_v34  ;;  %v4623_v5 = vld [vmem:[#allocation8 + $0x200] sm:$0xff]  ;;  %v9495_v39 = vcombine.high %v4616_v15, %v4620_v24  ;;  %v9494_v43 = vcombine.low %v4616_v15, %v4620_v24 }
 0x265   :  { %v4627_v34 = vld [vmem:[#allocation8 + $0x220] sm:$0xff] }
 0x266   :  { %4141 = vmatmul.mubr.bf16.gmra.mrb[20].mxu0 %v10822_v3  ;;  %4433 = vmatmul.mubr.bf16.gmra.mrb[20].mxu1 %v10822_v3  ;;  %v9470_v3 = vcombine.low %v4592_v27, %v4596_v60  ;;  %v9500_v27 = vcombine.low %v4623_v5, %v4627_v34 }
 0x267   :  { %7678 = vmatpush1.bf16.msra.mxu0 %v9452_v49  ;;  %7970 = vmatpush1.bf16.msra.mxu1 %v9454_v32  ;;  %v9501_v49 = vcombine.high %v4623_v5, %v4627_v34  ;;  %v9503_v32 = vcombine.high %v4624_v38, %v4628_v46  ;;  %v4664_v5 = vld [vmem:[#allocation8 + $0x348] sm:$0xff] }
 0x268   :  { %7679 = vmatprep.subr.bf16.mxu0 %v9461_v50  ;;  %7971 = vmatprep.subr.bf16.mxu1 %v9463_v57  ;;  %v4631_v50 = vld [vmem:[#allocation8 + $0x240] sm:$0xff]  ;;  %v4668_v34 = vld [vmem:[#allocation8 + $0x368] sm:$0xff] }
 0x269   :  { %4150 = vmatprep.mubr.bf16.mxu0 %v10824_v14  ;;  %4442 = vmatprep.mubr.bf16.mxu1 %v10824_v14  ;;  %v9476_v14 = vcombine.low %v4599_v0, %v4603_v7  ;;  %v4635_v57 = vld [vmem:[#allocation8 + $0x260] sm:$0xff]  ;;  %v4644_v0 = vld [vmem:[#allocation8 + $0x2a8] sm:$0xff] }
 0x26a   :  { %v9509_v60 = vcombine.high %v4631_v50, %v4635_v57  ;;  %v9508_v7 = vcombine.low %v4631_v50, %v4635_v57  ;;  %v4676_v50 = vld [vmem:[#allocation8 + $0x3a8] sm:$0xff] }
 0x26b   :  { %7680 = vmatpush1.bf16.msra.mxu0 %v9460_v44  ;;  %7972 = vmatpush1.bf16.msra.mxu1 %v9462_v62  ;;  %v9511_v44 = vcombine.high %v4632_v47, %v4636_v59  ;;  %v4639_v62 = vld [vmem:[#allocation8 + $0x280] sm:$0xff]  ;;  %v9542_v47 = vcombine.low %v4664_v5, %v4668_v34 }
 0x26c   :  { %7681 = vmatprep.subr.bf16.mxu0 %v9469_v63  ;;  %7973 = vmatprep.subr.bf16.mxu1 %v9471_v36  ;;  %v4643_v63 = vld [vmem:[#allocation8 + $0x2a0] sm:$0xff]  ;;  %v4640_v36 = vld [vmem:[#allocation8 + $0x288] sm:$0xff] }
 0x26d   :  { %v9517_v55 = vcombine.high %v4639_v62, %v4643_v63  ;;  %v9516_v2 = vcombine.low %v4639_v62, %v4643_v63  ;;  %v4684_v62 = vld [vmem:[#allocation8 + $0x3e8] sm:$0xff] }
 0x26e   :  { %4151 = vmatmul.mubr.bf16.gmra.mrb[24].mxu0 %v10830_v41  ;;  %4443 = vmatmul.mubr.bf16.gmra.mrb[24].mxu1 %v10830_v41  ;;  %v9486_v41 = vcombine.low %v4608_v52, %v4612_v6  ;;  %v9518_v52 = vcombine.low %v4640_v36, %v4644_v0 }
 0x26f   :  { %7682 = vmatpush1.bf16.msra.mxu0 %v9468_v9  ;;  %7974 = vmatpush1.bf16.msra.mxu1 %v9470_v3  ;;  %v9519_v9 = vcombine.high %v4640_v36, %v4644_v0  ;;  %v4647_v3 = vld [vmem:[#allocation8 + $0x2c0] sm:$0xff] }
 0x270   :  { %7683 = vmatprep.subr.bf16.mxu0 %v9477_v58  ;;  %7975 = vmatprep.subr.bf16.mxu1 %v9479_v10  ;;  %v4651_v58 = vld [vmem:[#allocation8 + $0x2e0] sm:$0xff]  ;;  %v4648_v10 = vld [vmem:[#allocation8 + $0x2c8] sm:$0xff] }
 0x271   :  { %4160 = vmatprep.mubr.bf16.mxu0 %v10832_v56  ;;  %4452 = vmatprep.mubr.bf16.mxu1 %v10832_v56  ;;  %v9492_v56 = vcombine.low %v4615_v18, %v4619_v35  ;;  %v9525_v6 = vcombine.high %v4647_v3, %v4651_v58  ;;  %v4660_v18 = vld [vmem:[#allocation8 + $0x328] sm:$0xff]  ;;  %v9524_v35 = vcombine.low %v4647_v3, %v4651_v58 }
 0x272   :  { %v4692_v3 = vld [vmem:[#allocation8 + $0x428] sm:$0xff] }
 0x273   :  { %7684 = vmatpush1.bf16.msra.mxu0 %v9476_v14  ;;  %7976 = vmatpush1.bf16.msra.mxu1 %v9478_v61  ;;  %v9527_v14 = vcombine.high %v4648_v10, %v4652_v11  ;;  %v4655_v61 = vld [vmem:[#allocation8 + $0x300] sm:$0xff] }
 0x274   :  { %7685 = vmatprep.subr.bf16.mxu0 %v9485_v42  ;;  %7977 = vmatprep.subr.bf16.mxu1 %v9487_v4  ;;  %v4659_v42 = vld [vmem:[#allocation8 + $0x320] sm:$0xff]  ;;  %v4656_v4 = vld [vmem:[#allocation8 + $0x308] sm:$0xff] }
 0x275   :  { %v9533_v15 = vcombine.high %v4655_v61, %v4659_v42  ;;  %v9535_v24 = vcombine.high %v4656_v4, %v4660_v18 }
 0x276   :  { %4161 = vmatmul.mubr.bf16.gmra.mrb[28].mxu0 %v10838_v13  ;;  %4453 = vmatmul.mubr.bf16.gmra.mrb[28].mxu1 %v10838_v13  ;;  %v9502_v13 = vcombine.low %v4624_v38, %v4628_v46  ;;  %v9534_v38 = vcombine.low %v4656_v4, %v4660_v18 }
 0x277   :  { %7686 = vmatpush1.bf16.msra.mxu0 %v9484_v19  ;;  %7705 = vmatprep.mubr.bf16.mxu0 %v10954_v1  ;;  %v9526_v19 = vcombine.low %v4648_v10, %v4652_v11 }
 0x278   :  { %7978 = vmatpush1.bf16.msra.mxu1 %v9486_v41  ;;  %7997 = vmatprep.mubr.bf16.mxu1 %v10954_v1  ;;  %v4663_v41 = vld [vmem:[#allocation8 + $0x340] sm:$0xff] }
 0x279   :  { %7687 = vmatprep.subr.bf16.mxu0 %v9493_v26  ;;  %7979 = vmatprep.subr.bf16.mxu1 %v9495_v39  ;;  %v4667_v26 = vld [vmem:[#allocation8 + $0x360] sm:$0xff]  ;;  %v9532_v39 = vcombine.low %v4655_v61, %v4659_v42  ;;  %v4700_v61 = vld [vmem:[#allocation8 + $0x468] sm:$0xff] }
 0x27a   :  { %v9541_v46 = vcombine.high %v4663_v41, %v4667_v26  ;;  %v9540_v57 = vcombine.low %v4663_v41, %v4667_v26  ;;  %v4708_v41 = vld [vmem:[#allocation8 + $0x4a8] sm:$0xff] }
 0x27b   :  { %7688 = vmatpush1.bf16.msra.mxu0 %v9492_v56  ;;  %v9543_v56 = vcombine.high %v4664_v5, %v4668_v34 }
 0x27c   :  { %7980 = vmatpush1.bf16.msra.mxu1 %v9494_v43  ;;  %7689 = vmatprep.subr.bf16.mxu0 %v9501_v49  ;;  %v4671_v43 = vld [vmem:[#allocation8 + $0x380] sm:$0xff] }
 0x27d   :  { %7981 = vmatprep.subr.bf16.mxu1 %v9503_v32  ;;  %v4675_v49 = vld [vmem:[#allocation8 + $0x3a0] sm:$0xff]  ;;  %v4672_v32 = vld [vmem:[#allocation8 + $0x388] sm:$0xff] }
 0x27e   :  { %v9549_v59 = vcombine.high %v4671_v43, %v4675_v49  ;;  %v9548_v63 = vcombine.low %v4671_v43, %v4675_v49  ;;  %v9550_v36 = vcombine.low %v4672_v32, %v4676_v50  ;;  %v4716_v43 = vld [vmem:[#allocation8 + $0x4e8] sm:$0xff] }
 0x27f   :  { %7690 = vmatpush1.bf16.msra.mxu0 %v9500_v27  ;;  %v9551_v27 = vcombine.high %v4672_v32, %v4676_v50 }
 0x280   :  { %7982 = vmatpush1.bf16.msra.mxu1 %v9502_v13  ;;  %7691 = vmatprep.subr.bf16.mxu0 %v9509_v60  ;;  %v4679_v13 = vld [vmem:[#allocation8 + $0x3c0] sm:$0xff] }
 0x281   :  { %7983 = vmatprep.subr.bf16.mxu1 %v9511_v44  ;;  %v4683_v60 = vld [vmem:[#allocation8 + $0x3e0] sm:$0xff]  ;;  %v4680_v44 = vld [vmem:[#allocation8 + $0x3c8] sm:$0xff] }
 0x282   :  { %v9557_v0 = vcombine.high %v4679_v13, %v4683_v60  ;;  %v9556_v58 = vcombine.low %v4679_v13, %v4683_v60  ;;  %v9558_v10 = vcombine.low %v4680_v44, %v4684_v62  ;;  %v4724_v13 = vld [vmem:[#allocation8 + $0x528] sm:$0xff] }
 0x283   :  { %7692 = vmatpush1.bf16.msra.mxu0 %v9508_v7  ;;  %v9559_v7 = vcombine.high %v4680_v44, %v4684_v62 }
 0x284   :  { %7984 = vmatpush1.bf16.msra.mxu1 %v9510_v8  ;;  %7693 = vmatprep.subr.bf16.mxu0 %v9517_v55  ;;  %v4687_v8 = vld [vmem:[#allocation8 + $0x400] sm:$0xff] }
 0x285   :  { %7985 = vmatprep.subr.bf16.mxu1 %v9519_v9  ;;  %v4691_v55 = vld [vmem:[#allocation8 + $0x420] sm:$0xff]  ;;  %v4688_v9 = vld [vmem:[#allocation8 + $0x408] sm:$0xff] }
 0x286   :  { %v9565_v11 = vcombine.high %v4687_v8, %v4691_v55  ;;  %v9564_v42 = vcombine.low %v4687_v8, %v4691_v55  ;;  %v9566_v4 = vcombine.low %v4688_v9, %v4692_v3  ;;  %v4732_v8 = vld [vmem:[#allocation8 + $0x568] sm:$0xff] }
 0x287   :  { %7694 = vmatpush1.bf16.msra.mxu0 %v9516_v2  ;;  %v9567_v2 = vcombine.high %v4688_v9, %v4692_v3 }
 0x288   :  { %7986 = vmatpush1.bf16.msra.mxu1 %v9518_v52  ;;  %7695 = vmatprep.subr.bf16.mxu0 %v9525_v6  ;;  %v4695_v52 = vld [vmem:[#allocation8 + $0x440] sm:$0xff] }
 0x289   :  { %7987 = vmatprep.subr.bf16.mxu1 %v9527_v14  ;;  %v4699_v6 = vld [vmem:[#allocation8 + $0x460] sm:$0xff]  ;;  %v4696_v14 = vld [vmem:[#allocation8 + $0x448] sm:$0xff] }
 0x28a   :  { %v9573_v18 = vcombine.high %v4695_v52, %v4699_v6  ;;  %v9572_v26 = vcombine.low %v4695_v52, %v4699_v6  ;;  %v9574_v5 = vcombine.low %v4696_v14, %v4700_v61  ;;  %v4740_v52 = vld [vmem:[#allocation8 + $0x5a8] sm:$0xff] }
 0x28b   :  { %7696 = vmatpush1.bf16.msra.mxu0 %v9524_v35  ;;  %v9575_v35 = vcombine.high %v4696_v14, %v4700_v61 }
 0x28c   :  { %7988 = vmatpush1.bf16.msra.mxu1 %v9526_v19  ;;  %7697 = vmatprep.subr.bf16.mxu0 %v9533_v15  ;;  %v4703_v19 = vld [vmem:[#allocation8 + $0x480] sm:$0xff] }
 0x28d   :  { %7989 = vmatprep.subr.bf16.mxu1 %v9535_v24  ;;  %v4707_v15 = vld [vmem:[#allocation8 + $0x4a0] sm:$0xff]  ;;  %v4704_v24 = vld [vmem:[#allocation8 + $0x488] sm:$0xff] }
 0x28e   :  { %v9581_v34 = vcombine.high %v4703_v19, %v4707_v15  ;;  %v9580_v49 = vcombine.low %v4703_v19, %v4707_v15  ;;  %v9582_v32 = vcombine.low %v4704_v24, %v4708_v41  ;;  %v4748_v19 = vld [vmem:[#allocation8 + $0x5e8] sm:$0xff] }
 0x28f   :  { %7698 = vmatpush1.bf16.msra.mxu0 %v9532_v39  ;;  %v9583_v39 = vcombine.high %v4704_v24, %v4708_v41 }
 0x290   :  { %7990 = vmatpush1.bf16.msra.mxu1 %v9534_v38  ;;  %7699 = vmatprep.subr.bf16.mxu0 %v9541_v46  ;;  %v4711_v38 = vld [vmem:[#allocation8 + $0x4c0] sm:$0xff] }
 0x291   :  { %7991 = vmatprep.subr.bf16.mxu1 %v9543_v56  ;;  %v4715_v46 = vld [vmem:[#allocation8 + $0x4e0] sm:$0xff]  ;;  %v4712_v56 = vld [vmem:[#allocation8 + $0x4c8] sm:$0xff] }
 0x292   :  { %v9589_v50 = vcombine.high %v4711_v38, %v4715_v46  ;;  %v9588_v60 = vcombine.low %v4711_v38, %v4715_v46  ;;  %v9590_v44 = vcombine.low %v4712_v56, %v4716_v43  ;;  %v4756_v38 = vld [vmem:[#allocation8 + $0x628] sm:$0xff] }
 0x293   :  { %7700 = vmatpush1.bf16.msra.mxu0 %v9540_v57  ;;  %v9591_v57 = vcombine.high %v4712_v56, %v4716_v43 }
 0x294   :  { %7992 = vmatpush1.bf16.msra.mxu1 %v9542_v47  ;;  %7701 = vmatprep.subr.bf16.mxu0 %v9549_v59  ;;  %v4719_v47 = vld [vmem:[#allocation8 + $0x500] sm:$0xff] }
 0x295   :  { %7993 = vmatprep.subr.bf16.mxu1 %v9551_v27  ;;  %v4723_v59 = vld [vmem:[#allocation8 + $0x520] sm:$0xff]  ;;  %v4720_v27 = vld [vmem:[#allocation8 + $0x508] sm:$0xff] }
 0x296   :  { %v9597_v62 = vcombine.high %v4719_v47, %v4723_v59  ;;  %v9596_v55 = vcombine.low %v4719_v47, %v4723_v59  ;;  %v9598_v9 = vcombine.low %v4720_v27, %v4724_v13  ;;  %v4764_v47 = vld [vmem:[#allocation8 + $0x668] sm:$0xff] }
 0x297   :  { %7702 = vmatpush1.bf16.msra.mxu0 %v9548_v63  ;;  %v9599_v63 = vcombine.high %v4720_v27, %v4724_v13 }
 0x298   :  { %7994 = vmatpush1.bf16.msra.mxu1 %v9550_v36  ;;  %7703 = vmatprep.subr.bf16.mxu0 %v9557_v0  ;;  %v4727_v36 = vld [vmem:[#allocation8 + $0x540] sm:$0xff] }
 0x299   :  { %7995 = vmatprep.subr.bf16.mxu1 %v9559_v7  ;;  %v4731_v0 = vld [vmem:[#allocation8 + $0x560] sm:$0xff]  ;;  %v4728_v7 = vld [vmem:[#allocation8 + $0x548] sm:$0xff] }
 0x29a   :  { %v9605_v3 = vcombine.high %v4727_v36, %v4731_v0  ;;  %v9604_v6 = vcombine.low %v4727_v36, %v4731_v0  ;;  %v9606_v14 = vcombine.low %v4728_v7, %v4732_v8  ;;  %v4772_v36 = vld [vmem:[#allocation8 + $0x6a8] sm:$0xff] }
 0x29b   :  { %7704 = vmatpush1.bf16.msra.mxu0 %v9556_v58  ;;  %v9607_v58 = vcombine.high %v4728_v7, %v4732_v8 }
 0x29c   :  { %7996 = vmatpush1.bf16.msra.mxu1 %v9558_v10  ;;  %7746 = vmatprep.subr.bf16.mxu0 %v9565_v11  ;;  %v4735_v10 = vld [vmem:[#allocation8 + $0x580] sm:$0xff] }
 0x29d   :  { %8038 = vmatprep.subr.bf16.mxu1 %v9567_v2  ;;  %v4739_v11 = vld [vmem:[#allocation8 + $0x5a0] sm:$0xff]  ;;  %v4736_v2 = vld [vmem:[#allocation8 + $0x588] sm:$0xff] }
 0x29e   :  { %7706 = vmatmul.mubr.bf16.vlgmr.msra.gmra.mrb[32].mxu0 %v10948_v20  ;;  %v9613_v61 = vcombine.high %v4735_v10, %v4739_v11  ;;  %v9612_v15 = vcombine.low %v4735_v10, %v4739_v11  ;;  %v9614_v24 = vcombine.low %v4736_v2, %v4740_v52  ;;  %v4780_v10 = vld [vmem:[#allocation8 + $0x6e8] sm:$0xff] }
 0x29f   :  { %7998 = vmatmul.mubr.bf16.vlgmr.msra.gmra.mrb[32].mxu1 %v10948_v20  ;;  %7715 = vmatprep.mubr.bf16.mxu0 %v11000_v33 }
 0x2a0   :  { %7747 = vmatpush1.bf16.msra.mxu0 %v9564_v42  ;;  %8007 = vmatprep.mubr.bf16.mxu1 %v11000_v33  ;;  %v9615_v42 = vcombine.high %v4736_v2, %v4740_v52 }
 0x2a1   :  { %8039 = vmatpush1.bf16.msra.mxu1 %v9566_v4  ;;  %7748 = vmatprep.subr.bf16.mxu0 %v9573_v18  ;;  %v4743_v4 = vld [vmem:[#allocation8 + $0x5c0] sm:$0xff] }
 0x2a2   :  { %8040 = vmatprep.subr.bf16.mxu1 %v9575_v35  ;;  %v4747_v18 = vld [vmem:[#allocation8 + $0x5e0] sm:$0xff]  ;;  %v4744_v35 = vld [vmem:[#allocation8 + $0x5c8] sm:$0xff] }
 0x2a3   :  { %v9621_v41 = vcombine.high %v4743_v4, %v4747_v18  ;;  %v9620_v46 = vcombine.low %v4743_v4, %v4747_v18  ;;  %v9622_v56 = vcombine.low %v4744_v35, %v4748_v19  ;;  %v4788_v4 = vld [vmem:[#allocation8 + $0x728] sm:$0xff] }
 0x2a4   :  { %7749 = vmatpush1.bf16.msra.mxu0 %v9572_v26  ;;  %v9623_v26 = vcombine.high %v4744_v35, %v4748_v19 }
 0x2a5   :  { %8041 = vmatpush1.bf16.msra.mxu1 %v9574_v5  ;;  %7750 = vmatprep.subr.bf16.mxu0 %v9581_v34  ;;  %v4751_v5 = vld [vmem:[#allocation8 + $0x600] sm:$0xff] }
 0x2a6   :  { %7716 = vmatmul.mubr.bf16.gmra.mrb[36].mxu0 %v10994_v28  ;;  %8042 = vmatprep.subr.bf16.mxu1 %v9583_v39  ;;  %v4755_v34 = vld [vmem:[#allocation8 + $0x620] sm:$0xff]  ;;  %v4752_v39 = vld [vmem:[#allocation8 + $0x608] sm:$0xff] }
 0x2a7   :  { %8008 = vmatmul.mubr.bf16.gmra.mrb[36].mxu1 %v10994_v28  ;;  %7725 = vmatprep.mubr.bf16.mxu0 %v11040_v45  ;;  %v9629_v43 = vcombine.high %v4751_v5, %v4755_v34  ;;  %v9628_v59 = vcombine.low %v4751_v5, %v4755_v34  ;;  %v9630_v27 = vcombine.low %v4752_v39, %v4756_v38  ;;  %v4796_v5 = vld [vmem:[#allocation8 + $0x768] sm:$0xff] }
 0x2a8   :  { %7751 = vmatpush1.bf16.msra.mxu0 %v9580_v49  ;;  %8017 = vmatprep.mubr.bf16.mxu1 %v11040_v45  ;;  %v9631_v49 = vcombine.high %v4752_v39, %v4756_v38 }
 0x2a9   :  { %8043 = vmatpush1.bf16.msra.mxu1 %v9582_v32  ;;  %7752 = vmatprep.subr.bf16.mxu0 %v9589_v50  ;;  %v4759_v32 = vld [vmem:[#allocation8 + $0x640] sm:$0xff] }
 0x2aa   :  { %8044 = vmatprep.subr.bf16.mxu1 %v9591_v57  ;;  %v4763_v50 = vld [vmem:[#allocation8 + $0x660] sm:$0xff]  ;;  %v4760_v57 = vld [vmem:[#allocation8 + $0x648] sm:$0xff] }
 0x2ab   :  { %v9637_v13 = vcombine.high %v4759_v32, %v4763_v50  ;;  %v9636_v0 = vcombine.low %v4759_v32, %v4763_v50  ;;  %v9638_v7 = vcombine.low %v4760_v57, %v4764_v47  ;;  %v4804_v32 = vld [vmem:[#allocation8 + $0x7a8] sm:$0xff] }
 0x2ac   :  { %7753 = vmatpush1.bf16.msra.mxu0 %v9588_v60  ;;  %v9639_v60 = vcombine.high %v4760_v57, %v4764_v47 }
 0x2ad   :  { %8045 = vmatpush1.bf16.msra.mxu1 %v9590_v44  ;;  %7754 = vmatprep.subr.bf16.mxu0 %v9597_v62  ;;  %v4767_v44 = vld [vmem:[#allocation8 + $0x680] sm:$0xff] }
 0x2ae   :  { %7726 = vmatmul.mubr.bf16.gmra.mrb[40].mxu0 %v11034_v53  ;;  %8046 = vmatprep.subr.bf16.mxu1 %v9599_v63  ;;  %v4771_v62 = vld [vmem:[#allocation8 + $0x6a0] sm:$0xff]  ;;  %v4768_v63 = vld [vmem:[#allocation8 + $0x688] sm:$0xff] }
 0x2af   :  { %8018 = vmatmul.mubr.bf16.gmra.mrb[40].mxu1 %v11034_v53  ;;  %7735 = vmatprep.mubr.bf16.mxu0 %v11058_v16  ;;  %v9645_v8 = vcombine.high %v4767_v44, %v4771_v62  ;;  %v9644_v11 = vcombine.low %v4767_v44, %v4771_v62  ;;  %v9646_v2 = vcombine.low %v4768_v63, %v4772_v36  ;;  %v4812_v44 = vld [vmem:[#allocation8 + $0x7e8] sm:$0xff] }
 0x2b0   :  { %7755 = vmatpush1.bf16.msra.mxu0 %v9596_v55  ;;  %8027 = vmatprep.mubr.bf16.mxu1 %v11058_v16  ;;  %v9647_v55 = vcombine.high %v4768_v63, %v4772_v36 }
 0x2b1   :  { %8047 = vmatpush1.bf16.msra.mxu1 %v9598_v9  ;;  %7756 = vmatprep.subr.bf16.mxu0 %v9605_v3  ;;  %v4775_v9 = vld [vmem:[#allocation8 + $0x6c0] sm:$0xff] }
 0x2b2   :  { %8048 = vmatprep.subr.bf16.mxu1 %v9607_v58  ;;  %v4779_v3 = vld [vmem:[#allocation8 + $0x6e0] sm:$0xff]  ;;  %v4776_v58 = vld [vmem:[#allocation8 + $0x6c8] sm:$0xff] }
 0x2b3   :  { %v9653_v52 = vcombine.high %v4775_v9, %v4779_v3  ;;  %v9652_v18 = vcombine.low %v4775_v9, %v4779_v3  ;;  %v9654_v35 = vcombine.low %v4776_v58, %v4780_v10  ;;  %v4820_v9 = vld [vmem:[#allocation8 + $0x828] sm:$0xff] }
 0x2b4   :  { %7757 = vmatpush1.bf16.msra.mxu0 %v9604_v6  ;;  %v9655_v6 = vcombine.high %v4776_v58, %v4780_v10 }
 0x2b5   :  { %8049 = vmatpush1.bf16.msra.mxu1 %v9606_v14  ;;  %7758 = vmatprep.subr.bf16.mxu0 %v9613_v61  ;;  %v4783_v14 = vld [vmem:[#allocation8 + $0x700] sm:$0xff] }
 0x2b6   :  { %7736 = vmatmul.mubr.bf16.gmra.mrb[44].mxu0 %v11054_v17  ;;  %8050 = vmatprep.subr.bf16.mxu1 %v9615_v42  ;;  %v4787_v61 = vld [vmem:[#allocation8 + $0x720] sm:$0xff]  ;;  %v4784_v42 = vld [vmem:[#allocation8 + $0x708] sm:$0xff] }
 0x2b7   :  { %8028 = vmatmul.mubr.bf16.gmra.mrb[44].mxu1 %v11054_v17  ;;  %7778 = vmatprep.mubr.bf16.mxu0 %v10963_v30  ;;  %v9661_v19 = vcombine.high %v4783_v14, %v4787_v61  ;;  %v9660_v34 = vcombine.low %v4783_v14, %v4787_v61  ;;  %v9662_v39 = vcombine.low %v4784_v42, %v4788_v4  ;;  %v4828_v14 = vld [vmem:[#allocation8 + $0x868] sm:$0xff] }
 0x2b8   :  { %7759 = vmatpush1.bf16.msra.mxu0 %v9612_v15  ;;  %8070 = vmatprep.mubr.bf16.mxu1 %v10963_v30  ;;  %v9663_v15 = vcombine.high %v4784_v42, %v4788_v4 }
 0x2b9   :  { %8051 = vmatpush1.bf16.msra.mxu1 %v9614_v24  ;;  %7760 = vmatprep.subr.bf16.mxu0 %v9621_v41  ;;  %v4791_v24 = vld [vmem:[#allocation8 + $0x740] sm:$0xff] }
 0x2ba   :  { %8052 = vmatprep.subr.bf16.mxu1 %v9623_v26  ;;  %v4795_v41 = vld [vmem:[#allocation8 + $0x760] sm:$0xff]  ;;  %v4792_v26 = vld [vmem:[#allocation8 + $0x748] sm:$0xff] }
 0x2bb   :  { %v9669_v38 = vcombine.high %v4791_v24, %v4795_v41  ;;  %v9668_v50 = vcombine.low %v4791_v24, %v4795_v41  ;;  %v9670_v57 = vcombine.low %v4792_v26, %v4796_v5  ;;  %v4836_v24 = vld [vmem:[#allocation8 + $0x8a8] sm:$0xff] }
 0x2bc   :  { %7761 = vmatpush1.bf16.msra.mxu0 %v9620_v46  ;;  %v9671_v46 = vcombine.high %v4792_v26, %v4796_v5 }
 0x2bd   :  { %8053 = vmatpush1.bf16.msra.mxu1 %v9622_v56  ;;  %7762 = vmatprep.subr.bf16.mxu0 %v9629_v43  ;;  %v4799_v56 = vld [vmem:[#allocation8 + $0x780] sm:$0xff] }
 0x2be   :  { %8054 = vmatprep.subr.bf16.mxu1 %v9631_v49  ;;  %v4803_v43 = vld [vmem:[#allocation8 + $0x7a0] sm:$0xff]  ;;  %v4800_v49 = vld [vmem:[#allocation8 + $0x788] sm:$0xff] }
 0x2bf   :  { %v9677_v47 = vcombine.high %v4799_v56, %v4803_v43  ;;  %v9676_v62 = vcombine.low %v4799_v56, %v4803_v43  ;;  %v9678_v63 = vcombine.low %v4800_v49, %v4804_v32  ;;  %v4844_v56 = vld [vmem:[#allocation8 + $0x8e8] sm:$0xff] }
 0x2c0   :  { %7763 = vmatpush1.bf16.msra.mxu0 %v9628_v59  ;;  %v9679_v59 = vcombine.high %v4800_v49, %v4804_v32 }
 0x2c1   :  { %8055 = vmatpush1.bf16.msra.mxu1 %v9630_v27  ;;  %7764 = vmatprep.subr.bf16.mxu0 %v9637_v13  ;;  %v4807_v27 = vld [vmem:[#allocation8 + $0x7c0] sm:$0xff] }
 0x2c2   :  { %8056 = vmatprep.subr.bf16.mxu1 %v9639_v60  ;;  %v4811_v13 = vld [vmem:[#allocation8 + $0x7e0] sm:$0xff]  ;;  %v4808_v60 = vld [vmem:[#allocation8 + $0x7c8] sm:$0xff] }
 0x2c3   :  { %v9685_v36 = vcombine.high %v4807_v27, %v4811_v13  ;;  %v9684_v3 = vcombine.low %v4807_v27, %v4811_v13  ;;  %v9686_v58 = vcombine.low %v4808_v60, %v4812_v44  ;;  %v4852_v27 = vld [vmem:[#allocation8 + $0x928] sm:$0xff] }
 0x2c4   :  { %7765 = vmatpush1.bf16.msra.mxu0 %v9636_v0  ;;  %v9687_v0 = vcombine.high %v4808_v60, %v4812_v44 }
 0x2c5   :  { %8057 = vmatpush1.bf16.msra.mxu1 %v9638_v7  ;;  %7766 = vmatprep.subr.bf16.mxu0 %v9645_v8  ;;  %v4815_v7 = vld [vmem:[#allocation8 + $0x800] sm:$0xff] }
 0x2c6   :  { %8058 = vmatprep.subr.bf16.mxu1 %v9647_v55  ;;  %v4819_v8 = vld [vmem:[#allocation8 + $0x820] sm:$0xff]  ;;  %v4816_v55 = vld [vmem:[#allocation8 + $0x808] sm:$0xff] }
 0x2c7   :  { %v9693_v10 = vcombine.high %v4815_v7, %v4819_v8  ;;  %v9692_v61 = vcombine.low %v4815_v7, %v4819_v8  ;;  %v9694_v42 = vcombine.low %v4816_v55, %v4820_v9  ;;  %v4860_v7 = vld [vmem:[#allocation8 + $0x968] sm:$0xff] }
 0x2c8   :  { %7767 = vmatpush1.bf16.msra.mxu0 %v9644_v11  ;;  %v9695_v11 = vcombine.high %v4816_v55, %v4820_v9 }
 0x2c9   :  { %8059 = vmatpush1.bf16.msra.mxu1 %v9646_v2  ;;  %7768 = vmatprep.subr.bf16.mxu0 %v9653_v52  ;;  %v4823_v2 = vld [vmem:[#allocation8 + $0x840] sm:$0xff] }
 0x2ca   :  { %8060 = vmatprep.subr.bf16.mxu1 %v9655_v6  ;;  %v4827_v52 = vld [vmem:[#allocation8 + $0x860] sm:$0xff]  ;;  %v4824_v6 = vld [vmem:[#allocation8 + $0x848] sm:$0xff] }
 0x2cb   :  { %v9701_v4 = vcombine.high %v4823_v2, %v4827_v52  ;;  %v9700_v41 = vcombine.low %v4823_v2, %v4827_v52  ;;  %v9702_v26 = vcombine.low %v4824_v6, %v4828_v14  ;;  %v4868_v2 = vld [vmem:[#allocation8 + $0x9a8] sm:$0xff] }
 0x2cc   :  { %7769 = vmatpush1.bf16.msra.mxu0 %v9652_v18  ;;  %v9703_v18 = vcombine.high %v4824_v6, %v4828_v14 }
 0x2cd   :  { %8061 = vmatpush1.bf16.msra.mxu1 %v9654_v35  ;;  %7770 = vmatprep.subr.bf16.mxu0 %v9661_v19  ;;  %v4831_v35 = vld [vmem:[#allocation8 + $0x880] sm:$0xff] }
 0x2ce   :  { %8062 = vmatprep.subr.bf16.mxu1 %v9663_v15  ;;  %v4835_v19 = vld [vmem:[#allocation8 + $0x8a0] sm:$0xff]  ;;  %v4832_v15 = vld [vmem:[#allocation8 + $0x888] sm:$0xff] }
 0x2cf   :  { %v9709_v5 = vcombine.high %v4831_v35, %v4835_v19  ;;  %v9708_v43 = vcombine.low %v4831_v35, %v4835_v19  ;;  %v9710_v49 = vcombine.low %v4832_v15, %v4836_v24  ;;  %v4876_v35 = vld [vmem:[#allocation8 + $0x9e8] sm:$0xff] }
 0x2d0   :  { %7771 = vmatpush1.bf16.msra.mxu0 %v9660_v34  ;;  %v9711_v34 = vcombine.high %v4832_v15, %v4836_v24 }
 0x2d1   :  { %8063 = vmatpush1.bf16.msra.mxu1 %v9662_v39  ;;  %7772 = vmatprep.subr.bf16.mxu0 %v9669_v38  ;;  %v4839_v39 = vld [vmem:[#allocation8 + $0x8c0] sm:$0xff] }
 0x2d2   :  { %8064 = vmatprep.subr.bf16.mxu1 %v9671_v46  ;;  %v4843_v38 = vld [vmem:[#allocation8 + $0x8e0] sm:$0xff]  ;;  %v4840_v46 = vld [vmem:[#allocation8 + $0x8c8] sm:$0xff] }
 0x2d3   :  { %v9717_v32 = vcombine.high %v4839_v39, %v4843_v38  ;;  %v9716_v13 = vcombine.low %v4839_v39, %v4843_v38  ;;  %v9718_v60 = vcombine.low %v4840_v46, %v4844_v56  ;;  %v4884_v39 = vld [vmem:[#allocation8 + $0xa28] sm:$0xff] }
 0x2d4   :  { %7773 = vmatpush1.bf16.msra.mxu0 %v9668_v50  ;;  %v9719_v50 = vcombine.high %v4840_v46, %v4844_v56 }
 0x2d5   :  { %8065 = vmatpush1.bf16.msra.mxu1 %v9670_v57  ;;  %7774 = vmatprep.subr.bf16.mxu0 %v9677_v47  ;;  %v4847_v57 = vld [vmem:[#allocation8 + $0x900] sm:$0xff] }
 0x2d6   :  { %8066 = vmatprep.subr.bf16.mxu1 %v9679_v59  ;;  %v4851_v47 = vld [vmem:[#allocation8 + $0x920] sm:$0xff]  ;;  %v4848_v59 = vld [vmem:[#allocation8 + $0x908] sm:$0xff] }
 0x2d7   :  { %v9725_v44 = vcombine.high %v4847_v57, %v4851_v47  ;;  %v9724_v8 = vcombine.low %v4847_v57, %v4851_v47  ;;  %v9726_v55 = vcombine.low %v4848_v59, %v4852_v27  ;;  %v4892_v57 = vld [vmem:[#allocation8 + $0xa68] sm:$0xff] }
 0x2d8   :  { %7775 = vmatpush1.bf16.msra.mxu0 %v9676_v62  ;;  %v9727_v62 = vcombine.high %v4848_v59, %v4852_v27 }
 0x2d9   :  { %8067 = vmatpush1.bf16.msra.mxu1 %v9678_v63  ;;  %7776 = vmatprep.subr.bf16.mxu0 %v9685_v36  ;;  %v4855_v63 = vld [vmem:[#allocation8 + $0x940] sm:$0xff] }
 0x2da   :  { %8068 = vmatprep.subr.bf16.mxu1 %v9687_v0  ;;  %v4859_v36 = vld [vmem:[#allocation8 + $0x960] sm:$0xff]  ;;  %v4856_v0 = vld [vmem:[#allocation8 + $0x948] sm:$0xff] }
 0x2db   :  { %v9733_v9 = vcombine.high %v4855_v63, %v4859_v36  ;;  %v9732_v52 = vcombine.low %v4855_v63, %v4859_v36  ;;  %v9734_v6 = vcombine.low %v4856_v0, %v4860_v7  ;;  %v4900_v63 = vld [vmem:[#allocation8 + $0xaa8] sm:$0xff] }
 0x2dc   :  { %7777 = vmatpush1.bf16.msra.mxu0 %v9684_v3  ;;  %v9735_v3 = vcombine.high %v4856_v0, %v4860_v7 }
 0x2dd   :  { %8069 = vmatpush1.bf16.msra.mxu1 %v9686_v58  ;;  %7819 = vmatprep.subr.bf16.mxu0 %v9693_v10  ;;  %v4863_v58 = vld [vmem:[#allocation8 + $0x980] sm:$0xff] }
 0x2de   :  { %8111 = vmatprep.subr.bf16.mxu1 %v9695_v11  ;;  %v4867_v10 = vld [vmem:[#allocation8 + $0x9a0] sm:$0xff]  ;;  %v4864_v11 = vld [vmem:[#allocation8 + $0x988] sm:$0xff] }
 0x2df   :  { %7779 = vmatmul.mubr.bf16.vlgmr.msra.gmra.mrb[32].mxu0 %v10952_v37  ;;  %v9741_v14 = vcombine.high %v4863_v58, %v4867_v10  ;;  %v9740_v19 = vcombine.low %v4863_v58, %v4867_v10  ;;  %v9742_v15 = vcombine.low %v4864_v11, %v4868_v2  ;;  %v4908_v58 = vld [vmem:[#allocation8 + $0xae8] sm:$0xff] }
 0x2e0   :  { %8071 = vmatmul.mubr.bf16.vlgmr.msra.gmra.mrb[32].mxu1 %v10952_v37  ;;  %7788 = vmatprep.mubr.bf16.mxu0 %v11006_v22 }
 0x2e1   :  { %8080 = vmatprep.mubr.bf16.mxu1 %v11006_v22  ;;  %7820 = vmatpush1.bf16.msra.mxu0 %v9692_v61  ;;  %v9743_v61 = vcombine.high %v4864_v11, %v4868_v2 }
 0x2e2   :  { %8112 = vmatpush1.bf16.msra.mxu1 %v9694_v42  ;;  %7821 = vmatprep.subr.bf16.mxu0 %v9701_v4  ;;  %v4871_v42 = vld [vmem:[#allocation8 + $0x9c0] sm:$0xff] }
 0x2e3   :  { %8113 = vmatprep.subr.bf16.mxu1 %v9703_v18  ;;  %v4875_v4 = vld [vmem:[#allocation8 + $0x9e0] sm:$0xff]  ;;  %v4872_v18 = vld [vmem:[#allocation8 + $0x9c8] sm:$0xff] }
 0x2e4   :  { %v9749_v24 = vcombine.high %v4871_v42, %v4875_v4  ;;  %v9748_v38 = vcombine.low %v4871_v42, %v4875_v4  ;;  %v9750_v46 = vcombine.low %v4872_v18, %v4876_v35  ;;  %v4916_v42 = vld [vmem:[#allocation8 + $0xb28] sm:$0xff] }
 0x2e5   :  { %7822 = vmatpush1.bf16.msra.mxu0 %v9700_v41  ;;  %v9751_v41 = vcombine.high %v4872_v18, %v4876_v35 }
 0x2e6   :  { %8114 = vmatpush1.bf16.msra.mxu1 %v9702_v26  ;;  %7823 = vmatprep.subr.bf16.mxu0 %v9709_v5  ;;  %v4879_v26 = vld [vmem:[#allocation8 + $0xa00] sm:$0xff] }
 0x2e7   :  { %7789 = vmatmul.mubr.bf16.gmra.mrb[36].mxu0 %v10998_v31  ;;  %8115 = vmatprep.subr.bf16.mxu1 %v9711_v34  ;;  %v4883_v5 = vld [vmem:[#allocation8 + $0xa20] sm:$0xff]  ;;  %v4880_v34 = vld [vmem:[#allocation8 + $0xa08] sm:$0xff] }
 0x2e8   :  { %8081 = vmatmul.mubr.bf16.gmra.mrb[36].mxu1 %v10998_v31  ;;  %7798 = vmatprep.mubr.bf16.mxu0 %v11042_v51  ;;  %v9757_v56 = vcombine.high %v4879_v26, %v4883_v5  ;;  %v9756_v47 = vcombine.low %v4879_v26, %v4883_v5  ;;  %v9758_v59 = vcombine.low %v4880_v34, %v4884_v39  ;;  %v4924_v26 = vld [vmem:[#allocation8 + $0xb68] sm:$0xff] }
 0x2e9   :  { %8090 = vmatprep.mubr.bf16.mxu1 %v11042_v51  ;;  %7824 = vmatpush1.bf16.msra.mxu0 %v9708_v43  ;;  %v9759_v43 = vcombine.high %v4880_v34, %v4884_v39 }
 0x2ea   :  { %8116 = vmatpush1.bf16.msra.mxu1 %v9710_v49  ;;  %7825 = vmatprep.subr.bf16.mxu0 %v9717_v32  ;;  %v4887_v49 = vld [vmem:[#allocation8 + $0xa40] sm:$0xff] }
 0x2eb   :  { %8117 = vmatprep.subr.bf16.mxu1 %v9719_v50  ;;  %v4891_v32 = vld [vmem:[#allocation8 + $0xa60] sm:$0xff]  ;;  %v4888_v50 = vld [vmem:[#allocation8 + $0xa48] sm:$0xff] }
 0x2ec   :  { %v9765_v27 = vcombine.high %v4887_v49, %v4891_v32  ;;  %v9764_v36 = vcombine.low %v4887_v49, %v4891_v32  ;;  %v9766_v0 = vcombine.low %v4888_v50, %v4892_v57  ;;  %v4932_v49 = vld [vmem:[#allocation8 + $0xba8] sm:$0xff] }
 0x2ed   :  { %7826 = vmatpush1.bf16.msra.mxu0 %v9716_v13  ;;  %v9767_v13 = vcombine.high %v4888_v50, %v4892_v57 }
 0x2ee   :  { %8118 = vmatpush1.bf16.msra.mxu1 %v9718_v60  ;;  %7827 = vmatprep.subr.bf16.mxu0 %v9725_v44  ;;  %v4895_v60 = vld [vmem:[#allocation8 + $0xa80] sm:$0xff] }
 0x2ef   :  { %7799 = vmatmul.mubr.bf16.gmra.mrb[40].mxu0 %v11038_v40  ;;  %8119 = vmatprep.subr.bf16.mxu1 %v9727_v62  ;;  %v4899_v44 = vld [vmem:[#allocation8 + $0xaa0] sm:$0xff]  ;;  %v4896_v62 = vld [vmem:[#allocation8 + $0xa88] sm:$0xff] }
 0x2f0   :  { %8091 = vmatmul.mubr.bf16.gmra.mrb[40].mxu1 %v11038_v40  ;;  %7808 = vmatprep.mubr.bf16.mxu0 %v11060_v54  ;;  %v9773_v7 = vcombine.high %v4895_v60, %v4899_v44  ;;  %v9772_v10 = vcombine.low %v4895_v60, %v4899_v44  ;;  %v9774_v11 = vcombine.low %v4896_v62, %v4900_v63  ;;  %v4940_v60 = vld [vmem:[#allocation8 + $0xbe8] sm:$0xff] }
 0x2f1   :  { %8100 = vmatprep.mubr.bf16.mxu1 %v11060_v54  ;;  %7828 = vmatpush1.bf16.msra.mxu0 %v9724_v8  ;;  %v9775_v8 = vcombine.high %v4896_v62, %v4900_v63 }
 0x2f2   :  { %8120 = vmatpush1.bf16.msra.mxu1 %v9726_v55  ;;  %7829 = vmatprep.subr.bf16.mxu0 %v9733_v9  ;;  %v4903_v55 = vld [vmem:[#allocation8 + $0xac0] sm:$0xff] }
 0x2f3   :  { %8121 = vmatprep.subr.bf16.mxu1 %v9735_v3  ;;  %v4907_v9 = vld [vmem:[#allocation8 + $0xae0] sm:$0xff]  ;;  %v4904_v3 = vld [vmem:[#allocation8 + $0xac8] sm:$0xff] }
 0x2f4   :  { %v9781_v2 = vcombine.high %v4903_v55, %v4907_v9  ;;  %v9780_v4 = vcombine.low %v4903_v55, %v4907_v9  ;;  %v9782_v18 = vcombine.low %v4904_v3, %v4908_v58  ;;  %v11114_v55 = vld [vmem:[#allocation8 + $0xc28] sm:$0xff] }
 0x2f5   :  { %7830 = vmatpush1.bf16.msra.mxu0 %v9732_v52  ;;  %v9783_v52 = vcombine.high %v4904_v3, %v4908_v58 }
 0x2f6   :  { %8122 = vmatpush1.bf16.msra.mxu1 %v9734_v6  ;;  %7831 = vmatprep.subr.bf16.mxu0 %v9741_v14  ;;  %v4911_v6 = vld [vmem:[#allocation8 + $0xb00] sm:$0xff] }
 0x2f7   :  { %7809 = vmatmul.mubr.bf16.gmra.mrb[44].mxu0 %v11056_v48  ;;  %8123 = vmatprep.subr.bf16.mxu1 %v9743_v61  ;;  %v4915_v14 = vld [vmem:[#allocation8 + $0xb20] sm:$0xff]  ;;  %v4912_v61 = vld [vmem:[#allocation8 + $0xb08] sm:$0xff] }
 0x2f8   :  { %8101 = vmatmul.mubr.bf16.gmra.mrb[44].mxu1 %v11056_v48  ;;  %v9789_v35 = vcombine.high %v4911_v6, %v4915_v14  ;;  %v9788_v5 = vcombine.low %v4911_v6, %v4915_v14  ;;  %v9790_v34 = vcombine.low %v4912_v61, %v4916_v42  ;;  %v11503_v6 = vsub.s32 7, %v10880_v12  ;;  %v10470_v14 = vld [vmem:[#allocation7] sm:$0xff] }
 0x2f9   :  { %7832 = vmatpush1.bf16.msra.mxu0 %v9740_v19  ;;  %v9791_v19 = vcombine.high %v4912_v61, %v4916_v42 }
 0x2fa   :  { %8124 = vmatpush1.bf16.msra.mxu1 %v9742_v15  ;;  %7833 = vmatprep.subr.bf16.mxu0 %v9749_v24  ;;  %v4919_v15 = vld [vmem:[#allocation8 + $0xb40] sm:$0xff] }
 0x2fb   :  { %8125 = vmatprep.subr.bf16.mxu1 %v9751_v41  ;;  %v4923_v24 = vld [vmem:[#allocation8 + $0xb60] sm:$0xff]  ;;  %v4920_v41 = vld [vmem:[#allocation8 + $0xb48] sm:$0xff] }
 0x2fc   :  { %v9797_v39 = vcombine.high %v4919_v15, %v4923_v24  ;;  %v9796_v32 = vcombine.low %v4919_v15, %v4923_v24  ;;  %v9798_v50 = vcombine.low %v4920_v41, %v4924_v26 }
 0x2fd   :  { %7834 = vmatpush1.bf16.msra.mxu0 %v9748_v38  ;;  %v9799_v38 = vcombine.high %v4920_v41, %v4924_v26 }
 0x2fe   :  { %8126 = vmatpush1.bf16.msra.mxu1 %v9750_v46  ;;  %7835 = vmatprep.subr.bf16.mxu0 %v9757_v56  ;;  %v4927_v46 = vld [vmem:[#allocation8 + $0xb80] sm:$0xff] }
 0x2ff   :  { %8127 = vmatprep.subr.bf16.mxu1 %v9759_v43  ;;  %v4931_v56 = vld [vmem:[#allocation8 + $0xba0] sm:$0xff]  ;;  %v4928_v43 = vld [vmem:[#allocation8 + $0xb88] sm:$0xff] }
 0x300   :  { %v9805_v57 = vcombine.high %v4927_v46, %v4931_v56  ;;  %v9804_v44 = vcombine.low %v4927_v46, %v4931_v56  ;;  %v9806_v62 = vcombine.low %v4928_v43, %v4932_v49 }
 0x301   :  { %7836 = vmatpush1.bf16.msra.mxu0 %v9756_v47  ;;  %v9807_v47 = vcombine.high %v4928_v43, %v4932_v49 }
 0x302   :  { %8128 = vmatpush1.bf16.msra.mxu1 %v9758_v59  ;;  %7837 = vmatprep.subr.bf16.mxu0 %v9765_v27  ;;  %v4935_v59 = vld [vmem:[#allocation8 + $0xbc0] sm:$0xff] }
 0x303   :  { %8129 = vmatprep.subr.bf16.mxu1 %v9767_v13  ;;  %v4939_v27 = vld [vmem:[#allocation8 + $0xbe0] sm:$0xff]  ;;  %v4936_v13 = vld [vmem:[#allocation8 + $0xbc8] sm:$0xff] }
 0x304   :  { %v9813_v63 = vcombine.high %v4935_v59, %v4939_v27  ;;  %v9812_v9 = vcombine.low %v4935_v59, %v4939_v27  ;;  %v9814_v3 = vcombine.low %v4936_v13, %v4940_v60  ;;  %v11150_v27 = vld [vmem:[#allocation8 + $0xc40] sm:$0xff] }
 0x305   :  { %7838 = vmatpush1.bf16.msra.mxu0 %v9764_v36  ;;  %v9815_v36 = vcombine.high %v4936_v13, %v4940_v60  ;;  %v11152_v13 = vld [vmem:[#allocation8 + $0xc60] sm:$0xff] }
 0x306   :  { %8130 = vmatpush1.bf16.msra.mxu1 %v9766_v0  ;;  %7839 = vmatprep.subr.bf16.mxu0 %v9773_v7  ;;  %v11108_v0 = vld [vmem:[#allocation8 + $0xc00] sm:$0xff] }
 0x307   :  { %8131 = vmatprep.subr.bf16.mxu1 %v9775_v8  ;;  %v11110_v7 = vld [vmem:[#allocation8 + $0xc20] sm:$0xff]  ;;  %v11112_v8 = vld [vmem:[#allocation8 + $0xc08] sm:$0xff] }
 0x308   :  { %v9821_v58 = vcombine.high %v11108_v0, %v11110_v7  ;;  %v9820_v59 = vcombine.low %v11108_v0, %v11110_v7  ;;  %v11160_v0 = vld [vmem:[#allocation8 + $0xca0] sm:$0xff] }
 0x309   :  { %7840 = vmatpush1.bf16.msra.mxu0 %v9772_v10  ;;  %v9823_v10 = vcombine.high %v11112_v8, %v11114_v55 }
 0x30a   :  { %8132 = vmatpush1.bf16.msra.mxu1 %v9774_v11  ;;  %7841 = vmatprep.subr.bf16.mxu0 %v9781_v2  ;;  %v11506_v11 = vsub.s32 4, %v10880_v12  ;;  %v11505_v2 = vsub.s32 6, %v10880_v12 }
 0x30b   :  { %8133 = vmatprep.subr.bf16.mxu1 %v9783_v52  ;;  %v11504_v52 = vsub.s32 5, %v10880_v12 }
 0x30c   :  { %v11126_v61 = vrot.slane %v10470_v14, %v11506_v11  ;;  %v11130_v42 = vrot.slane %v10470_v14, %v11505_v2 }
 0x30d   :  { %7842 = vmatpush1.bf16.msra.mxu0 %v9780_v4  ;;  %v11134_v4 = vrot.slane %v10470_v14, %v11504_v52  ;;  %v11250_v52 = vld [vmem:[#allocation8 + $0xd48] sm:$0xff] }
 0x30e   :  { %8134 = vmatpush1.bf16.msra.mxu1 %v9782_v18  ;;  %7843 = vmatprep.subr.bf16.mxu0 %v9789_v35  ;;  %v11138_v18 = vrot.slane %v10470_v14, %v11503_v6  ;;  %v9822_v14 = vcombine.low %v11112_v8, %v11114_v55 }
 0x30f   :  { %8135 = vmatprep.subr.bf16.mxu1 %v9791_v19 }
 0x311   :  { %7844 = vmatpush1.bf16.msra.mxu0 %v9788_v5 }
 0x312   :  { %8136 = vmatpush1.bf16.msra.mxu1 %v9790_v34  ;;  %7845 = vmatprep.subr.bf16.mxu0 %v9797_v39 }
 0x313   :  { %8137 = vmatprep.subr.bf16.mxu1 %v9799_v38 }
 0x315   :  { %7846 = vmatpush1.bf16.msra.mxu0 %v9796_v32 }
 0x316   :  { %8138 = vmatpush1.bf16.msra.mxu1 %v9798_v50  ;;  %7847 = vmatprep.subr.bf16.mxu0 %v9805_v57 }
 0x317   :  { %8139 = vmatprep.subr.bf16.mxu1 %v9807_v47 }
 0x319   :  { %7848 = vmatpush1.bf16.msra.mxu0 %v9804_v44 }
 0x31a   :  { %8140 = vmatpush1.bf16.msra.mxu1 %v9806_v62  ;;  %7849 = vmatprep.subr.bf16.mxu0 %v9813_v63 }
 0x31b   :  { %8141 = vmatprep.subr.bf16.mxu1 %v9815_v36  ;;  %v4952_v36 = vld [vmem:[#allocation8 + $0xc48] sm:$0xff] }
 0x31d   :  { %7850 = vmatpush1.bf16.msra.mxu0 %v9812_v9  ;;  %v4956_v9 = vld [vmem:[#allocation8 + $0xc68] sm:$0xff] }
 0x31e   :  { %8142 = vmatpush1.bf16.msra.mxu1 %v9814_v3  ;;  %7892 = vmatprep.subr.bf16.mxu0 %v9821_v58 }
 0x31f   :  { %8184 = vmatprep.subr.bf16.mxu1 %v9823_v10 }
 0x331   :  { %v4132_v35 = vpop.f32.mrb[16].mxu0  ;;  %v4424_v15 = vpop.f32.mrb[16].mxu1 }
 0x332   :  { %v9980_v19 = vadd.f32 %v4132_v35, %v11126_v61  ;;  %v4134_v24 = vpop.f32.mrb[17].mxu0  ;;  %v9996_v41 = vadd.f32 %v4424_v15, %v11130_v42  ;;  %v4426_v5 = vpop.f32.mrb[17].mxu1  ;;  %v11158_v35 = vld [vmem:[#allocation8 + $0xc80] sm:$0xff] }
 0x333   :  { %v9981_v26 = vadd.f32 %v4134_v24, %v11134_v4  ;;  %v4136_v34 = vpop.f32.mrb[18].mxu0  ;;  %v9997_v39 = vadd.f32 %v4426_v5, %v11138_v18  ;;  %v4428_v46 = vpop.f32.mrb[18].mxu1  ;;  %v9828_v24 = vcombine.low %v11150_v27, %v11152_v13 }
 0x334   :  { %v9982_v38 = vadd.f32 %v4136_v34, %v11126_v61  ;;  %v4138_v56 = vpop.f32.mrb[19].mxu0  ;;  %v9998_v43 = vadd.f32 %v4428_v46, %v11130_v42  ;;  %v4430_v32 = vpop.f32.mrb[19].mxu1  ;;  %v4467_v50 = vmax.f32 %v9980_v19, 0.0  ;;  %v4469_v60 = vmax.f32 %v9996_v41, 0.0  ;;  %v11175_v46 = vld [vmem:[#allocation8 + $0xca8] sm:$0xff] }
 0x335   :  { %v9983_v49 = vadd.f32 %v4138_v56, %v11134_v4  ;;  %v9999_v47 = vadd.f32 %v4430_v32, %v11138_v18  ;;  %v4468_v44 = vmax.f32 %v9981_v26, 0.0  ;;  %v4470_v3 = vmax.f32 %v9997_v39, 0.0 }
 0x336   :  { %v4475_v57 = vmax.f32 %v9982_v38, 0.0  ;;  %v4477_v62 = vmax.f32 %v9998_v43, 0.0  ;;  %v9829_v41 = vcombine.high %v11150_v27, %v11152_v13  ;;  %v9830_v34 = vcombine.low %v4952_v36, %v4956_v9  ;;  %v11173_v38 = vld [vmem:[#allocation8 + $0xc88] sm:$0xff] }
 0x337   :  { %v4476_v63 = vmax.f32 %v9983_v49, 0.0  ;;  %v4478_v10 = vmax.f32 %v9999_v47, 0.0  ;;  %v9831_v39 = vcombine.high %v4952_v36, %v4956_v9  ;;  %v9838_v36 = vcombine.low %v11173_v38, %v11175_v46  ;;  %v11193_v9 = vld [vmem:[#allocation8 + $0xcc0] sm:$0xff] }
 0x338   :  { %v11154_v58 = vpack.c.bf16 %v4475_v57, %v4467_v50  ;;  %v11162_v7 = vpack.c.bf16 %v4477_v62, %v4469_v60  ;;  %v9837_v50 = vcombine.high %v11158_v35, %v11160_v0  ;;  %v9836_v60 = vcombine.low %v11158_v35, %v11160_v0 }
 0x339   :  { %v11164_v19 = vpack.c.bf16 %v4476_v63, %v4468_v44  ;;  %v4142_v15 = vpop.f32.mrb[20].mxu0  ;;  %v11170_v26 = vpack.c.bf16 %v4478_v10, %v4470_v3  ;;  %v4434_v8 = vpop.f32.mrb[20].mxu1  ;;  %v11195_v3 = vld [vmem:[#allocation8 + $0xce0] sm:$0xff]  ;;  %v9839_v35 = vcombine.high %v11173_v38, %v11175_v46 }
 0x33a   :  { %v9984_v5 = vadd.f32 %v4142_v15, %v11126_v61  ;;  %v4144_v55 = vpop.f32.mrb[21].mxu0  ;;  %v10000_v56 = vadd.f32 %v4434_v8, %v11130_v42  ;;  %v4436_v49 = vpop.f32.mrb[21].mxu1  ;;  %v9844_v46 = vcombine.low %v11193_v9, %v11195_v3 }
 0x33b   :  { %v9985_v43 = vadd.f32 %v4144_v55, %v11134_v4  ;;  %v4146_v32 = vpop.f32.mrb[22].mxu0  ;;  %7851 = vmatprep.mubr.bf16.mxu0 %v11164_v19  ;;  %8143 = vmatprep.mubr.bf16.mxu1 %v11164_v19  ;;  %v10001_v57 = vadd.f32 %v4436_v49, %v11138_v18  ;;  %v4438_v27 = vpop.f32.mrb[22].mxu1  ;;  %v11200_v49 = vld [vmem:[#allocation8 + $0xcc8] sm:$0xff] }
 0x33c   :  { %v9986_v47 = vadd.f32 %v4146_v32, %v11126_v61  ;;  %v4148_v13 = vpop.f32.mrb[23].mxu0  ;;  %7852 = vmatmul.mubr.bf16.vlgmr.msra.gmra.mrb[32].mxu0 %v11154_v58  ;;  %8144 = vmatmul.mubr.bf16.vlgmr.msra.gmra.mrb[32].mxu1 %v11154_v58  ;;  %v10002_v44 = vadd.f32 %v4438_v27, %v11130_v42  ;;  %v4440_v63 = vpop.f32.mrb[23].mxu1  ;;  %v4483_v10 = vmax.f32 %v9984_v5, 0.0  ;;  %v4485_v0 = vmax.f32 %v10000_v56, 0.0  ;;  %v11202_v32 = vld [vmem:[#allocation8 + $0xce8] sm:$0xff]  ;;  %v11214_v56 = vld [vmem:[#allocation8 + $0xd00] sm:$0xff] }
 0x33d   :  { %v9987_v62 = vadd.f32 %v4148_v13, %v11134_v4  ;;  %7893 = vmatpush1.bf16.msra.mxu0 %v9820_v59  ;;  %8185 = vmatpush1.bf16.msra.mxu1 %v9822_v14  ;;  %v10003_v8 = vadd.f32 %v4440_v63, %v11138_v18  ;;  %v4484_v55 = vmax.f32 %v9985_v43, 0.0  ;;  %v4486_v27 = vmax.f32 %v10001_v57, 0.0  ;;  %v11216_v43 = vld [vmem:[#allocation8 + $0xd20] sm:$0xff] }
 0x33e   :  { %v4491_v15 = vmax.f32 %v9986_v47, 0.0  ;;  %7894 = vmatprep.subr.bf16.mxu0 %v9829_v41  ;;  %8186 = vmatprep.subr.bf16.mxu1 %v9831_v39  ;;  %v4493_v59 = vmax.f32 %v10002_v44, 0.0  ;;  %v9845_v47 = vcombine.high %v11193_v9, %v11195_v3 }
 0x33f   :  { %v4492_v14 = vmax.f32 %v9987_v62, 0.0  ;;  %v4494_v5 = vmax.f32 %v10003_v8, 0.0  ;;  %v11229_v8 = vld [vmem:[#allocation8 + $0xd08] sm:$0xff] }
 0x340   :  { %v11204_v13 = vpack.c.bf16 %v4491_v15, %v4483_v10  ;;  %v11208_v41 = vpack.c.bf16 %v4493_v59, %v4485_v0  ;;  %v9846_v15 = vcombine.low %v11200_v49, %v11202_v32 }
 0x341   :  { %v11210_v39 = vpack.c.bf16 %v4492_v14, %v4484_v55  ;;  %7895 = vmatpush1.bf16.msra.mxu0 %v9828_v24  ;;  %8187 = vmatpush1.bf16.msra.mxu1 %v9830_v34  ;;  %v4152_v38 = vpop.f32.mrb[24].mxu0  ;;  %v11218_v57 = vpack.c.bf16 %v4494_v5, %v4486_v27  ;;  %v4444_v62 = vpop.f32.mrb[24].mxu1  ;;  %v9847_v24 = vcombine.high %v11200_v49, %v11202_v32 }
 0x342   :  { %v9988_v44 = vadd.f32 %v4152_v38, %v11126_v61  ;;  %v4154_v63 = vpop.f32.mrb[25].mxu0  ;;  %7896 = vmatprep.subr.bf16.mxu0 %v9837_v50  ;;  %8188 = vmatprep.subr.bf16.mxu1 %v9839_v35  ;;  %v10004_v34 = vadd.f32 %v4444_v62, %v11130_v42  ;;  %v4446_v9 = vpop.f32.mrb[25].mxu1  ;;  %v11231_v50 = vld [vmem:[#allocation8 + $0xd28] sm:$0xff]  ;;  %v9853_v14 = vcombine.high %v11214_v56, %v11216_v43 }
 0x343   :  { %v9989_v10 = vadd.f32 %v4154_v63, %v11134_v4  ;;  %v4156_v3 = vpop.f32.mrb[26].mxu0  ;;  %7861 = vmatprep.mubr.bf16.mxu0 %v11210_v39  ;;  %8153 = vmatprep.mubr.bf16.mxu1 %v11210_v39  ;;  %v10005_v35 = vadd.f32 %v4446_v9, %v11138_v18  ;;  %v4448_v55 = vpop.f32.mrb[26].mxu1  ;;  %v9852_v5 = vcombine.low %v11214_v56, %v11216_v43  ;;  %v11252_v56 = vld [vmem:[#allocation8 + $0xd68] sm:$0xff] }
 0x344   :  { %v9990_v0 = vadd.f32 %v4156_v3, %v11126_v61  ;;  %v4158_v59 = vpop.f32.mrb[27].mxu0  ;;  %7862 = vmatmul.mubr.bf16.gmra.mrb[36].mxu0 %v11204_v13  ;;  %8154 = vmatmul.mubr.bf16.gmra.mrb[36].mxu1 %v11204_v13  ;;  %v10006_v27 = vadd.f32 %v4448_v55, %v11130_v42  ;;  %v4450_v32 = vpop.f32.mrb[27].mxu1  ;;  %v4499_v38 = vmax.f32 %v9988_v44, 0.0  ;;  %v9855_v9 = vcombine.high %v11229_v8, %v11231_v50  ;;  %v11246_v3 = vld [vmem:[#allocation8 + $0xd40] sm:$0xff] }
 0x345   :  { %v9991_v49 = vadd.f32 %v4158_v59, %v11134_v4  ;;  %7897 = vmatpush1.bf16.msra.mxu0 %v9836_v60  ;;  %8189 = vmatpush1.bf16.msra.mxu1 %v9838_v36  ;;  %v10007_v63 = vadd.f32 %v4450_v32, %v11138_v18  ;;  %v11248_v55 = vld [vmem:[#allocation8 + $0xd60] sm:$0xff]  ;;  %v4501_v59 = vmax.f32 %v10004_v34, 0.0  ;;  %v4500_v6 = vmax.f32 %v9989_v10, 0.0 }
 0x346   :  { %v4507_v62 = vmax.f32 %v9990_v0, 0.0  ;;  %7898 = vmatprep.subr.bf16.mxu0 %v9845_v47  ;;  %8190 = vmatprep.subr.bf16.mxu1 %v9847_v24  ;;  %v4509_v60 = vmax.f32 %v10006_v27, 0.0  ;;  %v4502_v43 = vmax.f32 %v10005_v35, 0.0  ;;  %v9854_v24 = vcombine.low %v11229_v8, %v11231_v50  ;;  %v4991_v50 = vld [vmem:[#allocation8 + $0xd80] sm:$0xff] }
 0x347   :  { %v4508_v36 = vmax.f32 %v9991_v49, 0.0  ;;  %v4510_v47 = vmax.f32 %v10007_v63, 0.0  ;;  %v9861_v10 = vcombine.high %v11246_v3, %v11248_v55  ;;  %v9863_v8 = vcombine.high %v11250_v52, %v11252_v56 }
 0x348   :  { %v11254_v44 = vpack.c.bf16 %v4507_v62, %v4499_v38  ;;  %v11258_v0 = vpack.c.bf16 %v4509_v60, %v4501_v59  ;;  %v9860_v59 = vcombine.low %v11246_v3, %v11248_v55 }
 0x349   :  { %v11260_v32 = vpack.c.bf16 %v4508_v36, %v4500_v6  ;;  %7899 = vmatpush1.bf16.msra.mxu0 %v9844_v46  ;;  %8191 = vmatpush1.bf16.msra.mxu1 %v9846_v15  ;;  %v4162_v34 = vpop.f32.mrb[28].mxu0  ;;  %v11264_v27 = vpack.c.bf16 %v4510_v47, %v4502_v43  ;;  %v4454_v49 = vpop.f32.mrb[28].mxu1  ;;  %v4995_v6 = vld [vmem:[#allocation8 + $0xda0] sm:$0xff] }
 0x34a   :  { %v9992_v35 = vadd.f32 %v4162_v34, %v11126_v61  ;;  %v4164_v38 = vpop.f32.mrb[29].mxu0  ;;  %7900 = vmatprep.subr.bf16.mxu0 %v9853_v14  ;;  %8192 = vmatprep.subr.bf16.mxu1 %v9855_v9  ;;  %v10008_v46 = vadd.f32 %v4454_v49, %v11130_v42  ;;  %v4456_v62 = vpop.f32.mrb[29].mxu1  ;;  %v4992_v14 = vld [vmem:[#allocation8 + $0xd88] sm:$0xff]  ;;  %v9862_v34 = vcombine.low %v11250_v52, %v11252_v56  ;;  %v4999_v52 = vld [vmem:[#allocation8 + $0xdc0] sm:$0xff] }
 0x34b   :  { %v9993_v15 = vadd.f32 %v4164_v38, %v11134_v4  ;;  %v4166_v63 = vpop.f32.mrb[30].mxu0  ;;  %7871 = vmatprep.mubr.bf16.mxu0 %v11260_v32  ;;  %8163 = vmatprep.mubr.bf16.mxu1 %v11260_v32  ;;  %v4996_v9 = vld [vmem:[#allocation8 + $0xda8] sm:$0xff]  ;;  %v10009_v60 = vadd.f32 %v4456_v62, %v11138_v18  ;;  %v4458_v43 = vpop.f32.mrb[30].mxu1  ;;  %v9869_v55 = vcombine.high %v4991_v50, %v4995_v6 }
 0x34c   :  { %v9994_v36 = vadd.f32 %v4166_v63, %v11126_v61  ;;  %v4168_v47 = vpop.f32.mrb[31].mxu0  ;;  %7872 = vmatmul.mubr.bf16.gmra.mrb[40].mxu0 %v11254_v44  ;;  %8164 = vmatmul.mubr.bf16.gmra.mrb[40].mxu1 %v11254_v44  ;;  %v10010_v49 = vadd.f32 %v4458_v43, %v11130_v42  ;;  %v4460_v3 = vpop.f32.mrb[31].mxu1  ;;  %v4515_v62 = vmax.f32 %v9992_v35, 0.0  ;;  %v9871_v63 = vcombine.high %v4992_v14, %v4996_v9 }
 0x34d   :  { %v9995_v38 = vadd.f32 %v4168_v47, %v11134_v4  ;;  %7901 = vmatpush1.bf16.msra.mxu0 %v9852_v5  ;;  %8193 = vmatpush1.bf16.msra.mxu1 %v9854_v24  ;;  %v10011_v61 = vadd.f32 %v4460_v3, %v11138_v18  ;;  %v4517_v11 = vmax.f32 %v10008_v46, 0.0  ;;  %v4516_v25 = vmax.f32 %v9993_v15, 0.0  ;;  %v5003_v5 = vld [vmem:[#allocation8 + $0xde0] sm:$0xff]  ;;  %v5000_v24 = vld [vmem:[#allocation8 + $0xdc8] sm:$0xff] }
 0x34e   :  { %v4523_v2 = vmax.f32 %v9994_v36, 0.0  ;;  %7902 = vmatprep.subr.bf16.mxu0 %v9861_v10  ;;  %8194 = vmatprep.subr.bf16.mxu1 %v9863_v8  ;;  %v4525_v29 = vmax.f32 %v10010_v49, 0.0  ;;  %v4518_v56 = vmax.f32 %v10009_v60, 0.0  ;;  %v9868_v43 = vcombine.low %v4991_v50, %v4995_v6  ;;  %v5004_v47 = vld [vmem:[#allocation8 + $0xde8] sm:$0xff]  ;;  %v5007_v8 = vld [vmem:[#allocation8 + $0xe00] sm:$0xff] }
 0x34f   :  { %v4524_v23 = vmax.f32 %v9995_v38, 0.0  ;;  %v4526_v4 = vmax.f32 %v10011_v61, 0.0  ;;  %v9870_v18 = vcombine.low %v4992_v14, %v4996_v9  ;;  %v9879_v50 = vcombine.high %v5000_v24, %v5004_v47  ;;  %v5011_v6 = vld [vmem:[#allocation8 + $0xe20] sm:$0xff]  ;;  %v5008_v46 = vld [vmem:[#allocation8 + $0xe08] sm:$0xff] }
 0x350   :  { %v11284_v42 = vpack.c.bf16 %v4523_v2, %v4515_v62  ;;  %v11286_v35 = vpack.c.bf16 %v4525_v29, %v4517_v11  ;;  %v9877_v2 = vcombine.high %v4999_v52, %v5003_v5  ;;  %v5012_v29 = vld [vmem:[#allocation8 + $0xe28] sm:$0xff]  ;;  %v9885_v11 = vcombine.high %v5007_v8, %v5011_v6  ;;  %v5019_v14 = vld [vmem:[#allocation8 + $0xe60] sm:$0xff] }
 0x351   :  { %v11288_v36 = vpack.c.bf16 %v4524_v23, %v4516_v25  ;;  %7903 = vmatpush1.bf16.msra.mxu0 %v9860_v59  ;;  %8195 = vmatpush1.bf16.msra.mxu1 %v9862_v34  ;;  %v11290_v10 = vpack.c.bf16 %v4526_v4, %v4518_v56  ;;  %v9876_v23 = vcombine.low %v4999_v52, %v5003_v5  ;;  %v5015_v59 = vld [vmem:[#allocation8 + $0xe40] sm:$0xff]  ;;  %v5016_v9 = vld [vmem:[#allocation8 + $0xe48] sm:$0xff] }
 0x352   :  { %7904 = vmatprep.subr.bf16.mxu0 %v9869_v55  ;;  %8196 = vmatprep.subr.bf16.mxu1 %v9871_v63  ;;  %v9878_v25 = vcombine.low %v5000_v24, %v5004_v47  ;;  %v9887_v15 = vcombine.high %v5008_v46, %v5012_v29  ;;  %v5020_v60 = vld [vmem:[#allocation8 + $0xe68] sm:$0xff]  ;;  %v9884_v34 = vcombine.low %v5007_v8, %v5011_v6  ;;  %v5023_v55 = vld [vmem:[#allocation8 + $0xe80] sm:$0xff] }
 0x353   :  { %7881 = vmatprep.mubr.bf16.mxu0 %v11288_v36  ;;  %8173 = vmatprep.mubr.bf16.mxu1 %v11288_v36  ;;  %v9886_v49 = vcombine.low %v5008_v46, %v5012_v29  ;;  %v9893_v38 = vcombine.high %v5015_v59, %v5019_v14  ;;  %v9895_v3 = vcombine.high %v5016_v9, %v5020_v60  ;;  %v5027_v62 = vld [vmem:[#allocation8 + $0xea0] sm:$0xff]  ;;  %v5024_v61 = vld [vmem:[#allocation8 + $0xe88] sm:$0xff] }
 0x354   :  { %7882 = vmatmul.mubr.bf16.gmra.mrb[44].mxu0 %v11284_v42  ;;  %8174 = vmatmul.mubr.bf16.gmra.mrb[44].mxu1 %v11284_v42  ;;  %v5028_v63 = vld [vmem:[#allocation8 + $0xea8] sm:$0xff]  ;;  %v9892_v52 = vcombine.low %v5015_v59, %v5019_v14  ;;  %v9894_v56 = vcombine.low %v5016_v9, %v5020_v60  ;;  %v9901_v4 = vcombine.high %v5023_v55, %v5027_v62  ;;  %v5031_v5 = vld [vmem:[#allocation8 + $0xec0] sm:$0xff] }
 0x355   :  { %7905 = vmatpush1.bf16.msra.mxu0 %v9868_v43  ;;  %8197 = vmatpush1.bf16.msra.mxu1 %v9870_v18  ;;  %v9903_v43 = vcombine.high %v5024_v61, %v5028_v63  ;;  %v5035_v24 = vld [vmem:[#allocation8 + $0xee0] sm:$0xff]  ;;  %v5032_v47 = vld [vmem:[#allocation8 + $0xec8] sm:$0xff]  ;;  %v9900_v8 = vcombine.low %v5023_v55, %v5027_v62 }
 0x356   :  { %7924 = vmatprep.mubr.bf16.mxu0 %v11170_v26  ;;  %8216 = vmatprep.mubr.bf16.mxu1 %v11170_v26  ;;  %v5036_v18 = vld [vmem:[#allocation8 + $0xee8] sm:$0xff]  ;;  %v5039_v46 = vld [vmem:[#allocation8 + $0xf00] sm:$0xff] }
 0x357   :  { %7906 = vmatprep.subr.bf16.mxu0 %v9877_v2  ;;  %8198 = vmatprep.subr.bf16.mxu1 %v9879_v50  ;;  %v9902_v2 = vcombine.low %v5024_v61, %v5028_v63  ;;  %v9909_v50 = vcombine.high %v5031_v5, %v5035_v24  ;;  %v9911_v6 = vcombine.high %v5032_v47, %v5036_v18  ;;  %v5043_v29 = vld [vmem:[#allocation8 + $0xf20] sm:$0xff] }
 0x358   :  { %v9917_v59 = vcombine.high %v5039_v46, %v5043_v29  ;;  %v5047_v9 = vld [vmem:[#allocation8 + $0xf40] sm:$0xff] }
 0x359   :  { %7907 = vmatpush1.bf16.msra.mxu0 %v9876_v23  ;;  %8199 = vmatpush1.bf16.msra.mxu1 %v9878_v25  ;;  %v5040_v23 = vld [vmem:[#allocation8 + $0xf08] sm:$0xff]  ;;  %v5051_v60 = vld [vmem:[#allocation8 + $0xf60] sm:$0xff] }
 0x35a   :  { %7908 = vmatprep.subr.bf16.mxu0 %v9885_v11  ;;  %8200 = vmatprep.subr.bf16.mxu1 %v9887_v15  ;;  %v5044_v25 = vld [vmem:[#allocation8 + $0xf28] sm:$0xff]  ;;  %v9908_v11 = vcombine.low %v5031_v5, %v5035_v24  ;;  %v9910_v15 = vcombine.low %v5032_v47, %v5036_v18  ;;  %v9925_v55 = vcombine.high %v5047_v9, %v5051_v60  ;;  %v5055_v61 = vld [vmem:[#allocation8 + $0xf80] sm:$0xff] }
 0x35b   :  { %v9919_v14 = vcombine.high %v5040_v23, %v5044_v25  ;;  %v5059_v63 = vld [vmem:[#allocation8 + $0xfa0] sm:$0xff] }
 0x35c   :  { %v9933_v5 = vcombine.high %v5055_v61, %v5059_v63  ;;  %v5063_v47 = vld [vmem:[#allocation8 + $0xfc0] sm:$0xff] }
 0x35d   :  { %7909 = vmatpush1.bf16.msra.mxu0 %v9884_v34  ;;  %8201 = vmatpush1.bf16.msra.mxu1 %v9886_v49  ;;  %v5048_v34 = vld [vmem:[#allocation8 + $0xf48] sm:$0xff]  ;;  %v5067_v18 = vld [vmem:[#allocation8 + $0xfe0] sm:$0xff] }
 0x35e   :  { %7910 = vmatprep.subr.bf16.mxu0 %v9893_v38  ;;  %8202 = vmatprep.subr.bf16.mxu1 %v9895_v3  ;;  %v5052_v49 = vld [vmem:[#allocation8 + $0xf68] sm:$0xff]  ;;  %v9916_v38 = vcombine.low %v5039_v46, %v5043_v29  ;;  %v9918_v3 = vcombine.low %v5040_v23, %v5044_v25  ;;  %v9941_v46 = vcombine.high %v5063_v47, %v5067_v18  ;;  %v4561_v23 = vld [vmem:[#allocation8 + $0x10] sm:$0xff] }
 0x35f   :  { %v9927_v62 = vcombine.high %v5048_v34, %v5052_v49  ;;  %v4565_v25 = vld [vmem:[#allocation8 + $0x30] sm:$0xff] }
 0x361   :  { %7911 = vmatpush1.bf16.msra.mxu0 %v9892_v52  ;;  %8203 = vmatpush1.bf16.msra.mxu1 %v9894_v56  ;;  %v5056_v52 = vld [vmem:[#allocation8 + $0xf88] sm:$0xff] }
 0x362   :  { %7912 = vmatprep.subr.bf16.mxu0 %v9901_v4  ;;  %8204 = vmatprep.subr.bf16.mxu1 %v9903_v43  ;;  %v5060_v56 = vld [vmem:[#allocation8 + $0xfa8] sm:$0xff]  ;;  %v9924_v4 = vcombine.low %v5047_v9, %v5051_v60  ;;  %v9926_v43 = vcombine.low %v5048_v34, %v5052_v49  ;;  %v9441_v9 = vcombine.high %v4561_v23, %v4565_v25  ;;  %v4569_v34 = vld [vmem:[#allocation8 + $0x50] sm:$0xff] }
 0x363   :  { %v9935_v24 = vcombine.high %v5056_v52, %v5060_v56  ;;  %v4573_v49 = vld [vmem:[#allocation8 + $0x70] sm:$0xff] }
 0x365   :  { %7913 = vmatpush1.bf16.msra.mxu0 %v9900_v8  ;;  %8205 = vmatpush1.bf16.msra.mxu1 %v9902_v2  ;;  %v5064_v8 = vld [vmem:[#allocation8 + $0xfc8] sm:$0xff] }
 0x366   :  { %7914 = vmatprep.subr.bf16.mxu0 %v9909_v50  ;;  %8206 = vmatprep.subr.bf16.mxu1 %v9911_v6  ;;  %v5068_v2 = vld [vmem:[#allocation8 + $0xfe8] sm:$0xff]  ;;  %v9932_v50 = vcombine.low %v5055_v61, %v5059_v63  ;;  %v9934_v6 = vcombine.low %v5056_v52, %v5060_v56  ;;  %v9449_v61 = vcombine.high %v4569_v34, %v4573_v49  ;;  %v4577_v52 = vld [vmem:[#allocation8 + $0x90] sm:$0xff] }
 0x367   :  { %v9943_v29 = vcombine.high %v5064_v8, %v5068_v2  ;;  %v4581_v56 = vld [vmem:[#allocation8 + $0xb0] sm:$0xff] }
 0x369   :  { %7915 = vmatpush1.bf16.msra.mxu0 %v9908_v11  ;;  %8207 = vmatpush1.bf16.msra.mxu1 %v9910_v15  ;;  %v4562_v11 = vld [vmem:[#allocation8 + $0x18] sm:$0xff] }
 0x36a   :  { %7916 = vmatprep.subr.bf16.mxu0 %v9917_v59  ;;  %8208 = vmatprep.subr.bf16.mxu1 %v9919_v14  ;;  %v4566_v15 = vld [vmem:[#allocation8 + $0x38] sm:$0xff]  ;;  %v9940_v59 = vcombine.low %v5063_v47, %v5067_v18  ;;  %v9942_v14 = vcombine.low %v5064_v8, %v5068_v2  ;;  %v9457_v47 = vcombine.high %v4577_v52, %v4581_v56  ;;  %v4585_v8 = vld [vmem:[#allocation8 + $0xd0] sm:$0xff] }
 0x36b   :  { %v9443_v60 = vcombine.high %v4562_v11, %v4566_v15  ;;  %v4589_v2 = vld [vmem:[#allocation8 + $0xf0] sm:$0xff] }
 0x36d   :  { %7917 = vmatpush1.bf16.msra.mxu0 %v9916_v38  ;;  %8209 = vmatpush1.bf16.msra.mxu1 %v9918_v3  ;;  %v4570_v38 = vld [vmem:[#allocation8 + $0x58] sm:$0xff] }
 0x36e   :  { %7918 = vmatprep.subr.bf16.mxu0 %v9925_v55  ;;  %8210 = vmatprep.subr.bf16.mxu1 %v9927_v62  ;;  %v4574_v3 = vld [vmem:[#allocation8 + $0x78] sm:$0xff]  ;;  %v9440_v55 = vcombine.low %v4561_v23, %v4565_v25  ;;  %v9442_v62 = vcombine.low %v4562_v11, %v4566_v15  ;;  %v9465_v23 = vcombine.high %v4585_v8, %v4589_v2  ;;  %v4593_v11 = vld [vmem:[#allocation8 + $0x110] sm:$0xff] }
 0x36f   :  { %v9451_v63 = vcombine.high %v4570_v38, %v4574_v3  ;;  %v4597_v15 = vld [vmem:[#allocation8 + $0x130] sm:$0xff] }
 0x371   :  { %7919 = vmatpush1.bf16.msra.mxu0 %v9924_v4  ;;  %8211 = vmatpush1.bf16.msra.mxu1 %v9926_v43  ;;  %v4578_v4 = vld [vmem:[#allocation8 + $0x98] sm:$0xff] }
 0x372   :  { %7920 = vmatprep.subr.bf16.mxu0 %v9933_v5  ;;  %8212 = vmatprep.subr.bf16.mxu1 %v9935_v24  ;;  %v4582_v43 = vld [vmem:[#allocation8 + $0xb8] sm:$0xff]  ;;  %v9448_v5 = vcombine.low %v4569_v34, %v4573_v49  ;;  %v9450_v24 = vcombine.low %v4570_v38, %v4574_v3  ;;  %v9473_v34 = vcombine.high %v4593_v11, %v4597_v15  ;;  %v4601_v38 = vld [vmem:[#allocation8 + $0x150] sm:$0xff] }
 0x373   :  { %v9459_v18 = vcombine.high %v4578_v4, %v4582_v43  ;;  %v4605_v3 = vld [vmem:[#allocation8 + $0x170] sm:$0xff] }
 0x375   :  { %7921 = vmatpush1.bf16.msra.mxu0 %v9932_v50  ;;  %8213 = vmatpush1.bf16.msra.mxu1 %v9934_v6  ;;  %v4586_v50 = vld [vmem:[#allocation8 + $0xd8] sm:$0xff] }
 0x376   :  { %7922 = vmatprep.subr.bf16.mxu0 %v9941_v46  ;;  %8214 = vmatprep.subr.bf16.mxu1 %v9943_v29  ;;  %v4590_v6 = vld [vmem:[#allocation8 + $0xf8] sm:$0xff]  ;;  %v9456_v46 = vcombine.low %v4577_v52, %v4581_v56  ;;  %v9458_v29 = vcombine.low %v4578_v4, %v4582_v43  ;;  %v9481_v52 = vcombine.high %v4601_v38, %v4605_v3  ;;  %v4609_v4 = vld [vmem:[#allocation8 + $0x190] sm:$0xff] }
 0x377   :  { %v9467_v25 = vcombine.high %v4586_v50, %v4590_v6  ;;  %v4613_v43 = vld [vmem:[#allocation8 + $0x1b0] sm:$0xff] }
 0x379   :  { %7923 = vmatpush1.bf16.msra.mxu0 %v9940_v59  ;;  %8215 = vmatpush1.bf16.msra.mxu1 %v9942_v14  ;;  %v4594_v59 = vld [vmem:[#allocation8 + $0x118] sm:$0xff] }
 0x37a   :  { %8257 = vmatprep.subr.bf16.mxu0 %v9441_v9  ;;  %8549 = vmatprep.subr.bf16.mxu1 %v9443_v60  ;;  %v4598_v14 = vld [vmem:[#allocation8 + $0x138] sm:$0xff]  ;;  %v9464_v9 = vcombine.low %v4585_v8, %v4589_v2  ;;  %v9466_v60 = vcombine.low %v4586_v50, %v4590_v6  ;;  %v9489_v8 = vcombine.high %v4609_v4, %v4613_v43  ;;  %v4617_v50 = vld [vmem:[#allocation8 + $0x1d0] sm:$0xff] }
 0x37b   :  { %v9475_v49 = vcombine.high %v4594_v59, %v4598_v14  ;;  %v4621_v6 = vld [vmem:[#allocation8 + $0x1f0] sm:$0xff] }
 0x37c   :  { %7925 = vmatmul.mubr.bf16.vlgmr.msra.gmra.mrb[32].mxu0 %v11162_v7  ;;  %8217 = vmatmul.mubr.bf16.vlgmr.msra.gmra.mrb[32].mxu1 %v11162_v7 }
 0x37d   :  { %7934 = vmatprep.mubr.bf16.mxu0 %v11218_v57  ;;  %8226 = vmatprep.mubr.bf16.mxu1 %v11218_v57 }
 0x37e   :  { %8258 = vmatpush1.bf16.msra.mxu0 %v9440_v55  ;;  %8550 = vmatpush1.bf16.msra.mxu1 %v9442_v62  ;;  %v4602_v55 = vld [vmem:[#allocation8 + $0x158] sm:$0xff] }
 0x37f   :  { %8259 = vmatprep.subr.bf16.mxu0 %v9449_v61  ;;  %8551 = vmatprep.subr.bf16.mxu1 %v9451_v63  ;;  %v4606_v62 = vld [vmem:[#allocation8 + $0x178] sm:$0xff]  ;;  %v9472_v61 = vcombine.low %v4593_v11, %v4597_v15  ;;  %v9474_v63 = vcombine.low %v4594_v59, %v4598_v14  ;;  %v9497_v11 = vcombine.high %v4617_v50, %v4621_v6  ;;  %v4625_v59 = vld [vmem:[#allocation8 + $0x210] sm:$0xff] }
 0x380   :  { %v9483_v56 = vcombine.high %v4602_v55, %v4606_v62  ;;  %v4629_v14 = vld [vmem:[#allocation8 + $0x230] sm:$0xff] }
 0x382   :  { %8260 = vmatpush1.bf16.msra.mxu0 %v9448_v5  ;;  %8552 = vmatpush1.bf16.msra.mxu1 %v9450_v24  ;;  %v4610_v5 = vld [vmem:[#allocation8 + $0x198] sm:$0xff] }
 0x383   :  { %8261 = vmatprep.subr.bf16.mxu0 %v9457_v47  ;;  %8553 = vmatprep.subr.bf16.mxu1 %v9459_v18  ;;  %v4614_v24 = vld [vmem:[#allocation8 + $0x1b8] sm:$0xff]  ;;  %v9480_v47 = vcombine.low %v4601_v38, %v4605_v3  ;;  %v9482_v18 = vcombine.low %v4602_v55, %v4606_v62  ;;  %v9505_v38 = vcombine.high %v4625_v59, %v4629_v14  ;;  %v4633_v55 = vld [vmem:[#allocation8 + $0x250] sm:$0xff] }
 0x384   :  { %7935 = vmatmul.mubr.bf16.gmra.mrb[36].mxu0 %v11208_v41  ;;  %8227 = vmatmul.mubr.bf16.gmra.mrb[36].mxu1 %v11208_v41  ;;  %v9491_v2 = vcombine.high %v4610_v5, %v4614_v24  ;;  %v4637_v62 = vld [vmem:[#allocation8 + $0x270] sm:$0xff] }
 0x385   :  { %7944 = vmatprep.mubr.bf16.mxu0 %v11264_v27  ;;  %8236 = vmatprep.mubr.bf16.mxu1 %v11264_v27 }
 0x386   :  { %8262 = vmatpush1.bf16.msra.mxu0 %v9456_v46  ;;  %8554 = vmatpush1.bf16.msra.mxu1 %v9458_v29  ;;  %v4618_v46 = vld [vmem:[#allocation8 + $0x1d8] sm:$0xff] }
 0x387   :  { %8263 = vmatprep.subr.bf16.mxu0 %v9465_v23  ;;  %8555 = vmatprep.subr.bf16.mxu1 %v9467_v25  ;;  %v4622_v29 = vld [vmem:[#allocation8 + $0x1f8] sm:$0xff]  ;;  %v9488_v23 = vcombine.low %v4609_v4, %v4613_v43  ;;  %v9490_v25 = vcombine.low %v4610_v5, %v4614_v24  ;;  %v9513_v4 = vcombine.high %v4633_v55, %v4637_v62  ;;  %v4641_v43 = vld [vmem:[#allocation8 + $0x290] sm:$0xff] }
 0x388   :  { %v9499_v15 = vcombine.high %v4618_v46, %v4622_v29  ;;  %v4645_v5 = vld [vmem:[#allocation8 + $0x2b0] sm:$0xff]  ;;  %v4642_v24 = vld [vmem:[#allocation8 + $0x298] sm:$0xff] }
 0x38a   :  { %8264 = vmatpush1.bf16.msra.mxu0 %v9464_v9  ;;  %8556 = vmatpush1.bf16.msra.mxu1 %v9466_v60  ;;  %v4626_v9 = vld [vmem:[#allocation8 + $0x218] sm:$0xff] }
 0x38b   :  { %8265 = vmatprep.subr.bf16.mxu0 %v9473_v34  ;;  %8557 = vmatprep.subr.bf16.mxu1 %v9475_v49  ;;  %v4630_v60 = vld [vmem:[#allocation8 + $0x238] sm:$0xff]  ;;  %v9496_v34 = vcombine.low %v4617_v50, %v4621_v6  ;;  %v9498_v49 = vcombine.low %v4618_v46, %v4622_v29  ;;  %v4649_v6 = vld [vmem:[#allocation8 + $0x2d0] sm:$0xff] }
 0x38c   :  { %7945 = vmatmul.mubr.bf16.gmra.mrb[40].mxu0 %v11258_v0  ;;  %8237 = vmatmul.mubr.bf16.gmra.mrb[40].mxu1 %v11258_v0  ;;  %v9507_v3 = vcombine.high %v4626_v9, %v4630_v60  ;;  %v4653_v46 = vld [vmem:[#allocation8 + $0x2f0] sm:$0xff]  ;;  %v4650_v29 = vld [vmem:[#allocation8 + $0x2d8] sm:$0xff] }
 0x38d   :  { %7954 = vmatprep.mubr.bf16.mxu0 %v11290_v10  ;;  %8246 = vmatprep.mubr.bf16.mxu1 %v11290_v10 }
 0x38e   :  { %8266 = vmatpush1.bf16.msra.mxu0 %v9472_v61  ;;  %8558 = vmatpush1.bf16.msra.mxu1 %v9474_v63  ;;  %v4634_v61 = vld [vmem:[#allocation8 + $0x258] sm:$0xff] }
 0x38f   :  { %8267 = vmatprep.subr.bf16.mxu0 %v9481_v52  ;;  %8559 = vmatprep.subr.bf16.mxu1 %v9483_v56  ;;  %v4638_v63 = vld [vmem:[#allocation8 + $0x278] sm:$0xff]  ;;  %v9504_v52 = vcombine.low %v4625_v59, %v4629_v14  ;;  %v9506_v56 = vcombine.low %v4626_v9, %v4630_v60  ;;  %v4657_v14 = vld [vmem:[#allocation8 + $0x310] sm:$0xff] }
 0x390   :  { %v4661_v9 = vld [vmem:[#allocation8 + $0x330] sm:$0xff]  ;;  %v4658_v60 = vld [vmem:[#allocation8 + $0x318] sm:$0xff] }
 0x392   :  { %8268 = vmatpush1.bf16.msra.mxu0 %v9480_v47  ;;  %8560 = vmatpush1.bf16.msra.mxu1 %v9482_v18  ;;  %v4646_v47 = vld [vmem:[#allocation8 + $0x2b8] sm:$0xff]  ;;  %v9512_v18 = vcombine.low %v4633_v55, %v4637_v62  ;;  %v4665_v62 = vld [vmem:[#allocation8 + $0x350] sm:$0xff] }
 0x393   :  { %8269 = vmatprep.subr.bf16.mxu0 %v9489_v8  ;;  %8561 = vmatprep.subr.bf16.mxu1 %v9491_v2  ;;  %v9514_v8 = vcombine.low %v4634_v61, %v4638_v63  ;;  %v9521_v2 = vcombine.high %v4641_v43, %v4645_v5  ;;  %v9523_v50 = vcombine.high %v4642_v24, %v4646_v47 }
 0x394   :  { %7955 = vmatmul.mubr.bf16.gmra.mrb[44].mxu0 %v11286_v35  ;;  %8247 = vmatmul.mubr.bf16.gmra.mrb[44].mxu1 %v11286_v35 }
 0x395   :  { %8289 = vmatprep.mubr.bf16.mxu0 %v10954_v1  ;;  %8581 = vmatprep.mubr.bf16.mxu1 %v10954_v1  ;;  %v9515_v1 = vcombine.high %v4634_v61, %v4638_v63  ;;  %v4669_v61 = vld [vmem:[#allocation8 + $0x370] sm:$0xff]  ;;  %v4666_v63 = vld [vmem:[#allocation8 + $0x358] sm:$0xff] }
 0x396   :  { %8270 = vmatpush1.bf16.msra.mxu0 %v9488_v23  ;;  %8562 = vmatpush1.bf16.msra.mxu1 %v9490_v25  ;;  %v4654_v23 = vld [vmem:[#allocation8 + $0x2f8] sm:$0xff]  ;;  %v9520_v25 = vcombine.low %v4641_v43, %v4645_v5  ;;  %v4673_v5 = vld [vmem:[#allocation8 + $0x390] sm:$0xff] }
 0x397   :  { %8271 = vmatprep.subr.bf16.mxu0 %v9497_v11  ;;  %8563 = vmatprep.subr.bf16.mxu1 %v9499_v15  ;;  %v9522_v11 = vcombine.low %v4642_v24, %v4646_v47  ;;  %v9529_v15 = vcombine.high %v4649_v6, %v4653_v46  ;;  %v9531_v59 = vcombine.high %v4650_v29, %v4654_v23  ;;  %v4677_v24 = vld [vmem:[#allocation8 + $0x3b0] sm:$0xff]  ;;  %v4674_v47 = vld [vmem:[#allocation8 + $0x398] sm:$0xff] }
 0x39a   :  { %8272 = vmatpush1.bf16.msra.mxu0 %v9496_v34  ;;  %8564 = vmatpush1.bf16.msra.mxu1 %v9498_v49  ;;  %v4662_v34 = vld [vmem:[#allocation8 + $0x338] sm:$0xff]  ;;  %v9528_v49 = vcombine.low %v4649_v6, %v4653_v46  ;;  %v4681_v46 = vld [vmem:[#allocation8 + $0x3d0] sm:$0xff] }
 0x39b   :  { %8273 = vmatprep.subr.bf16.mxu0 %v9505_v38  ;;  %8565 = vmatprep.subr.bf16.mxu1 %v9507_v3  ;;  %v9530_v38 = vcombine.low %v4650_v29, %v4654_v23  ;;  %v9537_v3 = vcombine.high %v4657_v14, %v4661_v9  ;;  %v9539_v55 = vcombine.high %v4658_v60, %v4662_v34  ;;  %v4685_v29 = vld [vmem:[#allocation8 + $0x3f0] sm:$0xff]  ;;  %v4682_v23 = vld [vmem:[#allocation8 + $0x3d8] sm:$0xff] }
 0x39e   :  { %8274 = vmatpush1.bf16.msra.mxu0 %v9504_v52  ;;  %8566 = vmatpush1.bf16.msra.mxu1 %v9506_v56  ;;  %v4670_v52 = vld [vmem:[#allocation8 + $0x378] sm:$0xff]  ;;  %v9536_v56 = vcombine.low %v4657_v14, %v4661_v9  ;;  %v4689_v9 = vld [vmem:[#allocation8 + $0x410] sm:$0xff] }
 0x39f   :  { %8275 = vmatprep.subr.bf16.mxu0 %v9513_v4  ;;  %8567 = vmatprep.subr.bf16.mxu1 %v9515_v1  ;;  %v9538_v4 = vcombine.low %v4658_v60, %v4662_v34  ;;  %v9545_v1 = vcombine.high %v4665_v62, %v4669_v61  ;;  %v9547_v43 = vcombine.high %v4666_v63, %v4670_v52  ;;  %v4693_v60 = vld [vmem:[#allocation8 + $0x430] sm:$0xff]  ;;  %v4690_v34 = vld [vmem:[#allocation8 + $0x418] sm:$0xff] }
 0x3a2   :  { %8276 = vmatpush1.bf16.msra.mxu0 %v9512_v18  ;;  %8568 = vmatpush1.bf16.msra.mxu1 %v9514_v8  ;;  %v4678_v18 = vld [vmem:[#allocation8 + $0x3b8] sm:$0xff]  ;;  %v9544_v8 = vcombine.low %v4665_v62, %v4669_v61  ;;  %v4697_v61 = vld [vmem:[#allocation8 + $0x450] sm:$0xff] }
 0x3a3   :  { %8277 = vmatprep.subr.bf16.mxu0 %v9521_v2  ;;  %8569 = vmatprep.subr.bf16.mxu1 %v9523_v50  ;;  %v9546_v2 = vcombine.low %v4666_v63, %v4670_v52  ;;  %v9553_v50 = vcombine.high %v4673_v5, %v4677_v24  ;;  %v9555_v6 = vcombine.high %v4674_v47, %v4678_v18  ;;  %v4701_v63 = vld [vmem:[#allocation8 + $0x470] sm:$0xff]  ;;  %v4698_v52 = vld [vmem:[#allocation8 + $0x458] sm:$0xff] }
 0x3a6   :  { %8278 = vmatpush1.bf16.msra.mxu0 %v9520_v25  ;;  %8570 = vmatpush1.bf16.msra.mxu1 %v9522_v11  ;;  %v4686_v25 = vld [vmem:[#allocation8 + $0x3f8] sm:$0xff]  ;;  %v9552_v11 = vcombine.low %v4673_v5, %v4677_v24  ;;  %v4705_v24 = vld [vmem:[#allocation8 + $0x490] sm:$0xff] }
 0x3a7   :  { %8279 = vmatprep.subr.bf16.mxu0 %v9529_v15  ;;  %8571 = vmatprep.subr.bf16.mxu1 %v9531_v59  ;;  %v9554_v15 = vcombine.low %v4674_v47, %v4678_v18  ;;  %v9561_v59 = vcombine.high %v4681_v46, %v4685_v29  ;;  %v9563_v14 = vcombine.high %v4682_v23, %v4686_v25  ;;  %v4709_v47 = vld [vmem:[#allocation8 + $0x4b0] sm:$0xff]  ;;  %v4706_v18 = vld [vmem:[#allocation8 + $0x498] sm:$0xff] }
 0x3aa   :  { %8280 = vmatpush1.bf16.msra.mxu0 %v9528_v49  ;;  %8572 = vmatpush1.bf16.msra.mxu1 %v9530_v38  ;;  %v4694_v49 = vld [vmem:[#allocation8 + $0x438] sm:$0xff]  ;;  %v9560_v38 = vcombine.low %v4681_v46, %v4685_v29  ;;  %v4713_v29 = vld [vmem:[#allocation8 + $0x4d0] sm:$0xff] }
 0x3ab   :  { %8281 = vmatprep.subr.bf16.mxu0 %v9537_v3  ;;  %8573 = vmatprep.subr.bf16.mxu1 %v9539_v55  ;;  %v9562_v3 = vcombine.low %v4682_v23, %v4686_v25  ;;  %v9569_v55 = vcombine.high %v4689_v9, %v4693_v60  ;;  %v9571_v62 = vcombine.high %v4690_v34, %v4694_v49  ;;  %v4717_v23 = vld [vmem:[#allocation8 + $0x4f0] sm:$0xff]  ;;  %v4714_v25 = vld [vmem:[#allocation8 + $0x4d8] sm:$0xff] }
 0x3ae   :  { %8282 = vmatpush1.bf16.msra.mxu0 %v9536_v56  ;;  %8574 = vmatpush1.bf16.msra.mxu1 %v9538_v4  ;;  %v4702_v56 = vld [vmem:[#allocation8 + $0x478] sm:$0xff]  ;;  %v9568_v4 = vcombine.low %v4689_v9, %v4693_v60  ;;  %v4721_v9 = vld [vmem:[#allocation8 + $0x510] sm:$0xff] }
 0x3af   :  { %8283 = vmatprep.subr.bf16.mxu0 %v9545_v1  ;;  %8575 = vmatprep.subr.bf16.mxu1 %v9547_v43  ;;  %v9570_v1 = vcombine.low %v4690_v34, %v4694_v49  ;;  %v9577_v43 = vcombine.high %v4697_v61, %v4701_v63  ;;  %v9579_v5 = vcombine.high %v4698_v52, %v4702_v56  ;;  %v4722_v60 = vld [vmem:[#allocation8 + $0x518] sm:$0xff] }
 0x3b0   :  { %v4726_v34 = vld [vmem:[#allocation8 + $0x538] sm:$0xff]  ;;  %v9592_v49 = vcombine.low %v4713_v29, %v4717_v23 }
 0x3b2   :  { %8284 = vmatpush1.bf16.msra.mxu0 %v9544_v8  ;;  %8576 = vmatpush1.bf16.msra.mxu1 %v9546_v2  ;;  %v4710_v8 = vld [vmem:[#allocation8 + $0x4b8] sm:$0xff]  ;;  %v9576_v2 = vcombine.low %v4697_v61, %v4701_v63  ;;  %v4733_v61 = vld [vmem:[#allocation8 + $0x570] sm:$0xff] }
 0x3b3   :  { %8285 = vmatprep.subr.bf16.mxu0 %v9553_v50  ;;  %8577 = vmatprep.subr.bf16.mxu1 %v9555_v6  ;;  %v9578_v50 = vcombine.low %v4698_v52, %v4702_v56  ;;  %v9585_v6 = vcombine.high %v4705_v24, %v4709_v47  ;;  %v9587_v46 = vcombine.high %v4706_v18, %v4710_v8  ;;  %v4730_v63 = vld [vmem:[#allocation8 + $0x558] sm:$0xff] }
 0x3b4   :  { %v4734_v52 = vld [vmem:[#allocation8 + $0x578] sm:$0xff]  ;;  %v9602_v56 = vcombine.low %v4722_v60, %v4726_v34 }
 0x3b6   :  { %8286 = vmatpush1.bf16.msra.mxu0 %v9552_v11  ;;  %8578 = vmatpush1.bf16.msra.mxu1 %v9554_v15  ;;  %v4718_v11 = vld [vmem:[#allocation8 + $0x4f8] sm:$0xff]  ;;  %v9586_v15 = vcombine.low %v4706_v18, %v4710_v8  ;;  %v9610_v18 = vcombine.low %v4730_v63, %v4734_v52 }
 0x3b7   :  { %8287 = vmatprep.subr.bf16.mxu0 %v9561_v59  ;;  %8579 = vmatprep.subr.bf16.mxu1 %v9563_v14  ;;  %v9593_v59 = vcombine.high %v4713_v29, %v4717_v23  ;;  %v9595_v14 = vcombine.high %v4714_v25, %v4718_v11  ;;  %v4750_v29 = vld [vmem:[#allocation8 + $0x5f8] sm:$0xff] }
 0x3ba   :  { %8288 = vmatpush1.bf16.msra.mxu0 %v9560_v38  ;;  %8580 = vmatpush1.bf16.msra.mxu1 %v9562_v3  ;;  %v9594_v38 = vcombine.low %v4714_v25, %v4718_v11 }
 0x3bb   :  { %8330 = vmatprep.subr.bf16.mxu0 %v9569_v55  ;;  %8622 = vmatprep.subr.bf16.mxu1 %v9571_v62  ;;  %v9603_v55 = vcombine.high %v4722_v60, %v4726_v34  ;;  %v4729_v62 = vld [vmem:[#allocation8 + $0x550] sm:$0xff] }
 0x3bc   :  { %v4761_v34 = vld [vmem:[#allocation8 + $0x650] sm:$0xff] }
 0x3bd   :  { %8290 = vmatmul.mubr.bf16.vlgmr.msra.gmra.mrb[48].mxu0 %v10948_v20  ;;  %8582 = vmatmul.mubr.bf16.vlgmr.msra.gmra.mrb[48].mxu1 %v10948_v20  ;;  %v9584_v20 = vcombine.low %v4705_v24, %v4709_v47  ;;  %v4742_v24 = vld [vmem:[#allocation8 + $0x5b8] sm:$0xff]  ;;  %v9608_v47 = vcombine.low %v4729_v62, %v4733_v61 }
 0x3be   :  { %8299 = vmatprep.mubr.bf16.mxu0 %v11000_v33  ;;  %8331 = vmatpush1.bf16.msra.mxu0 %v9568_v4  ;;  %v9609_v4 = vcombine.high %v4729_v62, %v4733_v61 }
 0x3bf   :  { %8591 = vmatprep.mubr.bf16.mxu1 %v11000_v33  ;;  %8623 = vmatpush1.bf16.msra.mxu1 %v9570_v1  ;;  %v4725_v33 = vld [vmem:[#allocation8 + $0x530] sm:$0xff]  ;;  %v9611_v1 = vcombine.high %v4730_v63, %v4734_v52 }
 0x3c0   :  { %8332 = vmatprep.subr.bf16.mxu0 %v9577_v43  ;;  %8624 = vmatprep.subr.bf16.mxu1 %v9579_v5  ;;  %v9601_v3 = vcombine.high %v4721_v9, %v4725_v33  ;;  %v4737_v43 = vld [vmem:[#allocation8 + $0x590] sm:$0xff]  ;;  %v4738_v5 = vld [vmem:[#allocation8 + $0x598] sm:$0xff] }
 0x3c1   :  { %v9618_v23 = vcombine.low %v4738_v5, %v4742_v24  ;;  %v4769_v63 = vld [vmem:[#allocation8 + $0x690] sm:$0xff] }
 0x3c2   :  { %8333 = vmatpush1.bf16.msra.mxu0 %v9576_v2  ;;  %v9619_v2 = vcombine.high %v4738_v5, %v4742_v24  ;;  %v4773_v52 = vld [vmem:[#allocation8 + $0x6b0] sm:$0xff]  ;;  %v4778_v24 = vld [vmem:[#allocation8 + $0x6d8] sm:$0xff] }
 0x3c3   :  { %8625 = vmatpush1.bf16.msra.mxu1 %v9578_v50  ;;  %8334 = vmatprep.subr.bf16.mxu0 %v9585_v6  ;;  %v4745_v50 = vld [vmem:[#allocation8 + $0x5d0] sm:$0xff] }
 0x3c4   :  { %8626 = vmatprep.subr.bf16.mxu1 %v9587_v46  ;;  %v4749_v6 = vld [vmem:[#allocation8 + $0x5f0] sm:$0xff]  ;;  %v4746_v46 = vld [vmem:[#allocation8 + $0x5d8] sm:$0xff] }
 0x3c5   :  { %8300 = vmatmul.mubr.bf16.gmra.mrb[52].mxu0 %v10994_v28  ;;  %8592 = vmatmul.mubr.bf16.gmra.mrb[52].mxu1 %v10994_v28  ;;  %v9600_v28 = vcombine.low %v4721_v9, %v4725_v33  ;;  %v9625_v25 = vcombine.high %v4745_v50, %v4749_v6  ;;  %v9627_v11 = vcombine.high %v4746_v46, %v4750_v29  ;;  %v4781_v5 = vld [vmem:[#allocation8 + $0x6f0] sm:$0xff] }
 0x3c6   :  { %8309 = vmatprep.mubr.bf16.mxu0 %v11040_v45  ;;  %8335 = vmatpush1.bf16.msra.mxu0 %v9584_v20  ;;  %v4753_v20 = vld [vmem:[#allocation8 + $0x610] sm:$0xff]  ;;  %v9626_v9 = vcombine.low %v4746_v46, %v4750_v29  ;;  %v4786_v29 = vld [vmem:[#allocation8 + $0x718] sm:$0xff] }
 0x3c7   :  { %8601 = vmatprep.mubr.bf16.mxu1 %v11040_v45  ;;  %8627 = vmatpush1.bf16.msra.mxu1 %v9586_v15  ;;  %v4741_v45 = vld [vmem:[#allocation8 + $0x5b0] sm:$0xff]  ;;  %v4754_v15 = vld [vmem:[#allocation8 + $0x618] sm:$0xff] }
 0x3c8   :  { %8336 = vmatprep.subr.bf16.mxu0 %v9593_v59  ;;  %8628 = vmatprep.subr.bf16.mxu1 %v9595_v14  ;;  %v9617_v8 = vcombine.high %v4737_v43, %v4741_v45  ;;  %v4758_v59 = vld [vmem:[#allocation8 + $0x638] sm:$0xff]  ;;  %v9624_v14 = vcombine.low %v4745_v50, %v4749_v6  ;;  %v4785_v6 = vld [vmem:[#allocation8 + $0x710] sm:$0xff] }
 0x3c9   :  { %v9635_v60 = vcombine.high %v4754_v15, %v4758_v59  ;;  %v4789_v46 = vld [vmem:[#allocation8 + $0x730] sm:$0xff] }
 0x3ca   :  { %8337 = vmatpush1.bf16.msra.mxu0 %v9592_v49  ;;  %v4765_v49 = vld [vmem:[#allocation8 + $0x670] sm:$0xff] }
 0x3cb   :  { %8629 = vmatpush1.bf16.msra.mxu1 %v9594_v38  ;;  %8338 = vmatprep.subr.bf16.mxu0 %v9601_v3  ;;  %v4762_v38 = vld [vmem:[#allocation8 + $0x658] sm:$0xff]  ;;  %v9641_v62 = vcombine.high %v4761_v34, %v4765_v49 }
 0x3cc   :  { %8630 = vmatprep.subr.bf16.mxu1 %v9603_v55  ;;  %v4766_v3 = vld [vmem:[#allocation8 + $0x678] sm:$0xff]  ;;  %v9634_v55 = vcombine.low %v4754_v15, %v4758_v59  ;;  %v4797_v15 = vld [vmem:[#allocation8 + $0x770] sm:$0xff] }
 0x3cd   :  { %8310 = vmatmul.mubr.bf16.gmra.mrb[56].mxu0 %v11034_v53  ;;  %8602 = vmatmul.mubr.bf16.gmra.mrb[56].mxu1 %v11034_v53  ;;  %v9616_v53 = vcombine.low %v4737_v43, %v4741_v45  ;;  %v9643_v61 = vcombine.high %v4762_v38, %v4766_v3  ;;  %v4777_v45 = vld [vmem:[#allocation8 + $0x6d0] sm:$0xff]  ;;  %v4794_v59 = vld [vmem:[#allocation8 + $0x758] sm:$0xff] }
 0x3ce   :  { %8319 = vmatprep.mubr.bf16.mxu0 %v11058_v16  ;;  %8339 = vmatpush1.bf16.msra.mxu0 %v9600_v28  ;;  %v4774_v28 = vld [vmem:[#allocation8 + $0x6b8] sm:$0xff] }
 0x3cf   :  { %8611 = vmatprep.mubr.bf16.mxu1 %v11058_v16  ;;  %8631 = vmatpush1.bf16.msra.mxu1 %v9602_v56  ;;  %v4757_v16 = vld [vmem:[#allocation8 + $0x630] sm:$0xff]  ;;  %v9640_v56 = vcombine.low %v4761_v34, %v4765_v49 }
 0x3d0   :  { %8340 = vmatprep.subr.bf16.mxu0 %v9609_v4  ;;  %8632 = vmatprep.subr.bf16.mxu1 %v9611_v1  ;;  %v9633_v33 = vcombine.high %v4753_v20, %v4757_v16  ;;  %v9642_v4 = vcombine.low %v4762_v38, %v4766_v3  ;;  %v9649_v1 = vcombine.high %v4769_v63, %v4773_v52  ;;  %v4801_v49 = vld [vmem:[#allocation8 + $0x790] sm:$0xff]  ;;  %v4802_v3 = vld [vmem:[#allocation8 + $0x798] sm:$0xff] }
 0x3d1   :  { %v4805_v38 = vld [vmem:[#allocation8 + $0x7b0] sm:$0xff] }
 0x3d2   :  { %8341 = vmatpush1.bf16.msra.mxu0 %v9608_v47  ;;  %v4782_v47 = vld [vmem:[#allocation8 + $0x6f8] sm:$0xff] }
 0x3d3   :  { %8633 = vmatpush1.bf16.msra.mxu1 %v9610_v18  ;;  %8342 = vmatprep.subr.bf16.mxu0 %v9617_v8  ;;  %v9648_v18 = vcombine.low %v4769_v63, %v4773_v52  ;;  %v9659_v50 = vcombine.high %v4778_v24, %v4782_v47  ;;  %v4809_v52 = vld [vmem:[#allocation8 + $0x7d0] sm:$0xff] }
 0x3d4   :  { %8634 = vmatprep.subr.bf16.mxu1 %v9619_v2  ;;  %v9657_v2 = vcombine.high %v4777_v45, %v4781_v5 }
 0x3d5   :  { %8320 = vmatmul.mubr.bf16.gmra.mrb[60].mxu0 %v11054_v17  ;;  %8612 = vmatmul.mubr.bf16.gmra.mrb[60].mxu1 %v11054_v17  ;;  %v9632_v17 = vcombine.low %v4753_v20, %v4757_v16  ;;  %v4793_v16 = vld [vmem:[#allocation8 + $0x750] sm:$0xff] }
 0x3d6   :  { %8343 = vmatpush1.bf16.msra.mxu0 %v9616_v53  ;;  %8362 = vmatprep.mubr.bf16.mxu0 %v10963_v30  ;;  %v4790_v53 = vld [vmem:[#allocation8 + $0x738] sm:$0xff] }
 0x3d7   :  { %8635 = vmatpush1.bf16.msra.mxu1 %v9618_v23  ;;  %8654 = vmatprep.mubr.bf16.mxu1 %v10963_v30  ;;  %v4770_v30 = vld [vmem:[#allocation8 + $0x698] sm:$0xff]  ;;  %v9656_v23 = vcombine.low %v4777_v45, %v4781_v5  ;;  %v9667_v20 = vcombine.high %v4786_v29, %v4790_v53  ;;  %v4817_v5 = vld [vmem:[#allocation8 + $0x810] sm:$0xff] }
 0x3d8   :  { %8344 = vmatprep.subr.bf16.mxu0 %v9625_v25  ;;  %8636 = vmatprep.subr.bf16.mxu1 %v9627_v11  ;;  %v9651_v43 = vcombine.high %v4770_v30, %v4774_v28  ;;  %v9650_v8 = vcombine.low %v4770_v30, %v4774_v28  ;;  %v9658_v25 = vcombine.low %v4778_v24, %v4782_v47  ;;  %v4813_v30 = vld [vmem:[#allocation8 + $0x7f0] sm:$0xff]  ;;  %v4810_v28 = vld [vmem:[#allocation8 + $0x7d8] sm:$0xff] }
 0x3d9   :  { %v9665_v11 = vcombine.high %v4785_v6, %v4789_v46  ;;  %v4821_v24 = vld [vmem:[#allocation8 + $0x830] sm:$0xff]  ;;  %v4818_v47 = vld [vmem:[#allocation8 + $0x818] sm:$0xff] }
 0x3da   :  { %8345 = vmatpush1.bf16.msra.mxu0 %v9624_v14  ;;  %v4798_v14 = vld [vmem:[#allocation8 + $0x778] sm:$0xff] }
 0x3db   :  { %8637 = vmatpush1.bf16.msra.mxu1 %v9626_v9  ;;  %8346 = vmatprep.subr.bf16.mxu0 %v9633_v33  ;;  %v9664_v9 = vcombine.low %v4785_v6, %v4789_v46  ;;  %v9666_v33 = vcombine.low %v4786_v29, %v4790_v53  ;;  %v9675_v34 = vcombine.high %v4794_v59, %v4798_v14  ;;  %v4825_v46 = vld [vmem:[#allocation8 + $0x850] sm:$0xff]  ;;  %v4826_v53 = vld [vmem:[#allocation8 + $0x858] sm:$0xff] }
 0x3dc   :  { %8638 = vmatprep.subr.bf16.mxu1 %v9635_v60  ;;  %v9673_v60 = vcombine.high %v4793_v16, %v4797_v15  ;;  %v4829_v29 = vld [vmem:[#allocation8 + $0x870] sm:$0xff] }
 0x3de   :  { %8347 = vmatpush1.bf16.msra.mxu0 %v9632_v17  ;;  %v4806_v17 = vld [vmem:[#allocation8 + $0x7b8] sm:$0xff] }
 0x3df   :  { %8639 = vmatpush1.bf16.msra.mxu1 %v9634_v55  ;;  %8348 = vmatprep.subr.bf16.mxu0 %v9641_v62  ;;  %v9672_v55 = vcombine.low %v4793_v16, %v4797_v15  ;;  %v9674_v62 = vcombine.low %v4794_v59, %v4798_v14  ;;  %v9683_v63 = vcombine.high %v4802_v3, %v4806_v17  ;;  %v4833_v15 = vld [vmem:[#allocation8 + $0x890] sm:$0xff]  ;;  %v4834_v14 = vld [vmem:[#allocation8 + $0x898] sm:$0xff] }
 0x3e0   :  { %8640 = vmatprep.subr.bf16.mxu1 %v9643_v61  ;;  %v9681_v61 = vcombine.high %v4801_v49, %v4805_v38  ;;  %v4837_v59 = vld [vmem:[#allocation8 + $0x8b0] sm:$0xff] }
 0x3e2   :  { %8349 = vmatpush1.bf16.msra.mxu0 %v9640_v56  ;;  %v4814_v56 = vld [vmem:[#allocation8 + $0x7f8] sm:$0xff] }
 0x3e3   :  { %8641 = vmatpush1.bf16.msra.mxu1 %v9642_v4  ;;  %8350 = vmatprep.subr.bf16.mxu0 %v9649_v1  ;;  %v9680_v4 = vcombine.low %v4801_v49, %v4805_v38  ;;  %v9682_v1 = vcombine.low %v4802_v3, %v4806_v17  ;;  %v9691_v45 = vcombine.high %v4810_v28, %v4814_v56  ;;  %v4841_v38 = vld [vmem:[#allocation8 + $0x8d0] sm:$0xff]  ;;  %v4842_v17 = vld [vmem:[#allocation8 + $0x8d8] sm:$0xff] }
 0x3e4   :  { %8642 = vmatprep.subr.bf16.mxu1 %v9651_v43  ;;  %v9689_v43 = vcombine.high %v4809_v52, %v4813_v30  ;;  %v4845_v3 = vld [vmem:[#allocation8 + $0x8f0] sm:$0xff] }
 0x3e6   :  { %8351 = vmatpush1.bf16.msra.mxu0 %v9648_v18  ;;  %v4822_v18 = vld [vmem:[#allocation8 + $0x838] sm:$0xff] }
 0x3e7   :  { %8643 = vmatpush1.bf16.msra.mxu1 %v9650_v8  ;;  %8352 = vmatprep.subr.bf16.mxu0 %v9657_v2  ;;  %v9688_v8 = vcombine.low %v4809_v52, %v4813_v30  ;;  %v9690_v2 = vcombine.low %v4810_v28, %v4814_v56  ;;  %v9699_v6 = vcombine.high %v4818_v47, %v4822_v18  ;;  %v4853_v52 = vld [vmem:[#allocation8 + $0x930] sm:$0xff]  ;;  %v4850_v30 = vld [vmem:[#allocation8 + $0x918] sm:$0xff] }
 0x3e8   :  { %8644 = vmatprep.subr.bf16.mxu1 %v9659_v50  ;;  %v9697_v50 = vcombine.high %v4817_v5, %v4821_v24  ;;  %v4854_v28 = vld [vmem:[#allocation8 + $0x938] sm:$0xff]  ;;  %v9720_v56 = vcombine.low %v4841_v38, %v4845_v3 }
 0x3ea   :  { %8353 = vmatpush1.bf16.msra.mxu0 %v9656_v23  ;;  %v4830_v23 = vld [vmem:[#allocation8 + $0x878] sm:$0xff] }
 0x3eb   :  { %8645 = vmatpush1.bf16.msra.mxu1 %v9658_v25  ;;  %8354 = vmatprep.subr.bf16.mxu0 %v9665_v11  ;;  %v9696_v25 = vcombine.low %v4817_v5, %v4821_v24  ;;  %v9698_v11 = vcombine.low %v4818_v47, %v4822_v18  ;;  %v9707_v16 = vcombine.high %v4826_v53, %v4830_v23  ;;  %v4861_v5 = vld [vmem:[#allocation8 + $0x970] sm:$0xff]  ;;  %v4858_v24 = vld [vmem:[#allocation8 + $0x958] sm:$0xff] }
 0x3ec   :  { %8646 = vmatprep.subr.bf16.mxu1 %v9667_v20  ;;  %v9705_v20 = vcombine.high %v4825_v46, %v4829_v29  ;;  %v4862_v47 = vld [vmem:[#allocation8 + $0x978] sm:$0xff]  ;;  %v9730_v18 = vcombine.low %v4850_v30, %v4854_v28 }
 0x3ee   :  { %8355 = vmatpush1.bf16.msra.mxu0 %v9664_v9  ;;  %v4838_v9 = vld [vmem:[#allocation8 + $0x8b8] sm:$0xff] }
 0x3ef   :  { %8647 = vmatpush1.bf16.msra.mxu1 %v9666_v33  ;;  %8356 = vmatprep.subr.bf16.mxu0 %v9673_v60  ;;  %v9704_v33 = vcombine.low %v4825_v46, %v4829_v29  ;;  %v9706_v60 = vcombine.low %v4826_v53, %v4830_v23  ;;  %v9715_v49 = vcombine.high %v4834_v14, %v4838_v9  ;;  %v4870_v46 = vld [vmem:[#allocation8 + $0x9b8] sm:$0xff] }
 0x3f0   :  { %8648 = vmatprep.subr.bf16.mxu1 %v9675_v34  ;;  %v9713_v34 = vcombine.high %v4833_v15, %v4837_v59  ;;  %v9738_v53 = vcombine.low %v4858_v24, %v4862_v47 }
 0x3f2   :  { %8357 = vmatpush1.bf16.msra.mxu0 %v9672_v55  ;;  %v4846_v55 = vld [vmem:[#allocation8 + $0x8f8] sm:$0xff] }
 0x3f3   :  { %8649 = vmatpush1.bf16.msra.mxu1 %v9674_v62  ;;  %8358 = vmatprep.subr.bf16.mxu0 %v9681_v61  ;;  %v9714_v62 = vcombine.low %v4834_v14, %v4838_v9  ;;  %v9721_v61 = vcombine.high %v4841_v38, %v4845_v3  ;;  %v4881_v9 = vld [vmem:[#allocation8 + $0xa10] sm:$0xff] }
 0x3f4   :  { %8650 = vmatprep.subr.bf16.mxu1 %v9683_v63  ;;  %v4849_v63 = vld [vmem:[#allocation8 + $0x910] sm:$0xff] }
 0x3f6   :  { %8359 = vmatpush1.bf16.msra.mxu0 %v9680_v4  ;;  %v9722_v4 = vcombine.low %v4842_v17, %v4846_v55 }
 0x3f7   :  { %8651 = vmatpush1.bf16.msra.mxu1 %v9682_v1  ;;  %8360 = vmatprep.subr.bf16.mxu0 %v9689_v43  ;;  %v9729_v1 = vcombine.high %v4849_v63, %v4853_v52  ;;  %v9731_v43 = vcombine.high %v4850_v30, %v4854_v28  ;;  %v4901_v30 = vld [vmem:[#allocation8 + $0xab0] sm:$0xff]  ;;  %v4898_v28 = vld [vmem:[#allocation8 + $0xa98] sm:$0xff] }
 0x3f8   :  { %8652 = vmatprep.subr.bf16.mxu1 %v9691_v45  ;;  %v4857_v45 = vld [vmem:[#allocation8 + $0x950] sm:$0xff] }
 0x3f9   :  { %v9736_v29 = vcombine.low %v4857_v45, %v4861_v5 }
 0x3fa   :  { %8361 = vmatpush1.bf16.msra.mxu0 %v9688_v8  ;;  %v9737_v8 = vcombine.high %v4857_v45, %v4861_v5  ;;  %v4905_v5 = vld [vmem:[#allocation8 + $0xad0] sm:$0xff] }
 0x3fb   :  { %8653 = vmatpush1.bf16.msra.mxu1 %v9690_v2  ;;  %8403 = vmatprep.subr.bf16.mxu0 %v9697_v50  ;;  %v4865_v2 = vld [vmem:[#allocation8 + $0x990] sm:$0xff] }
 0x3fc   :  { %8695 = vmatprep.subr.bf16.mxu1 %v9699_v6  ;;  %v4869_v50 = vld [vmem:[#allocation8 + $0x9b0] sm:$0xff]  ;;  %v4866_v6 = vld [vmem:[#allocation8 + $0x998] sm:$0xff] }
 0x3fd   :  { %8363 = vmatmul.mubr.bf16.vlgmr.msra.gmra.mrb[48].mxu0 %v10952_v37  ;;  %v9745_v23 = vcombine.high %v4865_v2, %v4869_v50 }
 0x3fe   :  { %8655 = vmatmul.mubr.bf16.vlgmr.msra.gmra.mrb[48].mxu1 %v10952_v37  ;;  %8372 = vmatprep.mubr.bf16.mxu0 %v11006_v22  ;;  %v9712_v37 = vcombine.low %v4833_v15, %v4837_v59  ;;  %v4878_v15 = vld [vmem:[#allocation8 + $0x9f8] sm:$0xff]  ;;  %v9746_v59 = vcombine.low %v4866_v6, %v4870_v46 }
 0x3ff   :  { %8404 = vmatpush1.bf16.msra.mxu0 %v9696_v25  ;;  %8664 = vmatprep.mubr.bf16.mxu1 %v11006_v22  ;;  %v9723_v22 = vcombine.high %v4842_v17, %v4846_v55  ;;  %v9747_v25 = vcombine.high %v4866_v6, %v4870_v46  ;;  %v4889_v55 = vld [vmem:[#allocation8 + $0xa50] sm:$0xff]  ;;  %v4914_v46 = vld [vmem:[#allocation8 + $0xb18] sm:$0xff] }
 0x400   :  { %8696 = vmatpush1.bf16.msra.mxu1 %v9698_v11  ;;  %8405 = vmatprep.subr.bf16.mxu0 %v9705_v20  ;;  %v4873_v11 = vld [vmem:[#allocation8 + $0x9d0] sm:$0xff] }
 0x401   :  { %8697 = vmatprep.subr.bf16.mxu1 %v9707_v16  ;;  %v4877_v20 = vld [vmem:[#allocation8 + $0x9f0] sm:$0xff]  ;;  %v4874_v16 = vld [vmem:[#allocation8 + $0x9d8] sm:$0xff] }
 0x402   :  { %v9753_v14 = vcombine.high %v4873_v11, %v4877_v20  ;;  %v9754_v38 = vcombine.low %v4874_v16, %v4878_v15  ;;  %v4917_v6 = vld [vmem:[#allocation8 + $0xb30] sm:$0xff] }
 0x403   :  { %8406 = vmatpush1.bf16.msra.mxu0 %v9704_v33  ;;  %v4885_v33 = vld [vmem:[#allocation8 + $0xa30] sm:$0xff] }
 0x404   :  { %8698 = vmatpush1.bf16.msra.mxu1 %v9706_v60  ;;  %8407 = vmatprep.subr.bf16.mxu0 %v9713_v34  ;;  %v4882_v60 = vld [vmem:[#allocation8 + $0xa18] sm:$0xff]  ;;  %v9761_v3 = vcombine.high %v4881_v9, %v4885_v33 }
 0x405   :  { %8373 = vmatmul.mubr.bf16.gmra.mrb[52].mxu0 %v10998_v31  ;;  %8699 = vmatprep.subr.bf16.mxu1 %v9715_v49  ;;  %v4886_v34 = vld [vmem:[#allocation8 + $0xa38] sm:$0xff]  ;;  %v9752_v49 = vcombine.low %v4873_v11, %v4877_v20  ;;  %v4921_v20 = vld [vmem:[#allocation8 + $0xb50] sm:$0xff] }
 0x406   :  { %8665 = vmatmul.mubr.bf16.gmra.mrb[52].mxu1 %v10998_v31  ;;  %8382 = vmatprep.mubr.bf16.mxu0 %v11042_v51  ;;  %v9728_v31 = vcombine.low %v4849_v63, %v4853_v52  ;;  %v9763_v17 = vcombine.high %v4882_v60, %v4886_v34 }
 0x407   :  { %8408 = vmatpush1.bf16.msra.mxu0 %v9712_v37  ;;  %8674 = vmatprep.mubr.bf16.mxu1 %v11042_v51  ;;  %v9739_v51 = vcombine.high %v4858_v24, %v4862_v47  ;;  %v4893_v37 = vld [vmem:[#allocation8 + $0xa70] sm:$0xff]  ;;  %v4906_v47 = vld [vmem:[#allocation8 + $0xad8] sm:$0xff] }
 0x408   :  { %8700 = vmatpush1.bf16.msra.mxu1 %v9714_v62  ;;  %8409 = vmatprep.subr.bf16.mxu0 %v9721_v61  ;;  %v4890_v62 = vld [vmem:[#allocation8 + $0xa58] sm:$0xff]  ;;  %v9769_v63 = vcombine.high %v4889_v55, %v4893_v37  ;;  %v4909_v24 = vld [vmem:[#allocation8 + $0xaf0] sm:$0xff] }
 0x409   :  { %8701 = vmatprep.subr.bf16.mxu1 %v9723_v22  ;;  %v4894_v61 = vld [vmem:[#allocation8 + $0xa78] sm:$0xff]  ;;  %v9762_v22 = vcombine.low %v4882_v60, %v4886_v34  ;;  %v4933_v60 = vld [vmem:[#allocation8 + $0xbb0] sm:$0xff] }
 0x40a   :  { %v9771_v52 = vcombine.high %v4890_v62, %v4894_v61  ;;  %v4930_v34 = vld [vmem:[#allocation8 + $0xb98] sm:$0xff] }
 0x40b   :  { %8410 = vmatpush1.bf16.msra.mxu0 %v9720_v56  ;;  %v4902_v56 = vld [vmem:[#allocation8 + $0xab8] sm:$0xff] }
 0x40c   :  { %8702 = vmatpush1.bf16.msra.mxu1 %v9722_v4  ;;  %8411 = vmatprep.subr.bf16.mxu0 %v9729_v1  ;;  %v9768_v4 = vcombine.low %v4889_v55, %v4893_v37  ;;  %v9770_v1 = vcombine.low %v4890_v62, %v4894_v61  ;;  %v9779_v45 = vcombine.high %v4898_v28, %v4902_v56  ;;  %v4937_v37 = vld [vmem:[#allocation8 + $0xbd0] sm:$0xff]  ;;  %v4938_v61 = vld [vmem:[#allocation8 + $0xbd8] sm:$0xff] }
 0x40d   :  { %8383 = vmatmul.mubr.bf16.gmra.mrb[56].mxu0 %v11038_v40  ;;  %8703 = vmatprep.subr.bf16.mxu1 %v9731_v43  ;;  %v4941_v62 = vld [vmem:[#allocation8 + $0xbf0] sm:$0xff] }
 0x40e   :  { %8675 = vmatmul.mubr.bf16.gmra.mrb[56].mxu1 %v11038_v40  ;;  %8392 = vmatprep.mubr.bf16.mxu0 %v11060_v54  ;;  %v9744_v40 = vcombine.low %v4865_v2, %v4869_v50  ;;  %v4913_v50 = vld [vmem:[#allocation8 + $0xb10] sm:$0xff] }
 0x40f   :  { %8412 = vmatpush1.bf16.msra.mxu0 %v9728_v31  ;;  %8684 = vmatprep.mubr.bf16.mxu1 %v11060_v54  ;;  %v9755_v54 = vcombine.high %v4874_v16, %v4878_v15  ;;  %v4910_v31 = vld [vmem:[#allocation8 + $0xaf8] sm:$0xff]  ;;  %v4925_v16 = vld [vmem:[#allocation8 + $0xb70] sm:$0xff] }
 0x410   :  { %8704 = vmatpush1.bf16.msra.mxu1 %v9730_v18  ;;  %8413 = vmatprep.subr.bf16.mxu0 %v9737_v8  ;;  %v9778_v8 = vcombine.low %v4898_v28, %v4902_v56  ;;  %v9787_v2 = vcombine.high %v4906_v47, %v4910_v31  ;;  %v4922_v15 = vld [vmem:[#allocation8 + $0xb58] sm:$0xff]  ;;  %v4949_v28 = vld [vmem:[#allocation8 + $0xc30] sm:$0xff] }
 0x411   :  { %8705 = vmatprep.subr.bf16.mxu1 %v9739_v51  ;;  %v9785_v51 = vcombine.high %v4905_v5, %v4909_v24  ;;  %v4946_v56 = vld [vmem:[#allocation8 + $0xc18] sm:$0xff] }
 0x413   :  { %8414 = vmatpush1.bf16.msra.mxu0 %v9736_v29  ;;  %v4918_v29 = vld [vmem:[#allocation8 + $0xb38] sm:$0xff] }
 0x414   :  { %8706 = vmatpush1.bf16.msra.mxu1 %v9738_v53  ;;  %8415 = vmatprep.subr.bf16.mxu0 %v9745_v23  ;;  %v9784_v53 = vcombine.low %v4905_v5, %v4909_v24  ;;  %v9786_v23 = vcombine.low %v4906_v47, %v4910_v31  ;;  %v9795_v11 = vcombine.high %v4914_v46, %v4918_v29  ;;  %v4953_v24 = vld [vmem:[#allocation8 + $0xc50] sm:$0xff]  ;;  %v4954_v31 = vld [vmem:[#allocation8 + $0xc58] sm:$0xff] }
 0x415   :  { %8393 = vmatmul.mubr.bf16.gmra.mrb[60].mxu0 %v11056_v48  ;;  %8707 = vmatprep.subr.bf16.mxu1 %v9747_v25  ;;  %v9793_v25 = vcombine.high %v4913_v50, %v4917_v6  ;;  %v4957_v47 = vld [vmem:[#allocation8 + $0xc70] sm:$0xff] }
 0x416   :  { %8685 = vmatmul.mubr.bf16.gmra.mrb[60].mxu1 %v11056_v48  ;;  %8435 = vmatprep.mubr.bf16.mxu0 %v11164_v19  ;;  %v9760_v48 = vcombine.low %v4881_v9, %v4885_v33  ;;  %v4929_v33 = vld [vmem:[#allocation8 + $0xb90] sm:$0xff] }
 0x417   :  { %8416 = vmatpush1.bf16.msra.mxu0 %v9744_v40  ;;  %8727 = vmatprep.mubr.bf16.mxu1 %v11164_v19  ;;  %v4897_v19 = vld [vmem:[#allocation8 + $0xa90] sm:$0xff]  ;;  %v4926_v40 = vld [vmem:[#allocation8 + $0xb78] sm:$0xff] }
 0x418   :  { %8708 = vmatpush1.bf16.msra.mxu1 %v9746_v59  ;;  %8417 = vmatprep.subr.bf16.mxu0 %v9753_v14  ;;  %v9777_v43 = vcombine.high %v4897_v19, %v4901_v30  ;;  %v9776_v18 = vcombine.low %v4897_v19, %v4901_v30  ;;  %v9792_v59 = vcombine.low %v4913_v50, %v4917_v6  ;;  %v4945_v30 = vld [vmem:[#allocation8 + $0xc10] sm:$0xff] }
 0x419   :  { %8709 = vmatprep.subr.bf16.mxu1 %v9755_v54  ;;  %v9794_v14 = vcombine.low %v4914_v46, %v4918_v29  ;;  %v9801_v54 = vcombine.high %v4921_v20, %v4925_v16  ;;  %v9803_v9 = vcombine.high %v4922_v15, %v4926_v40  ;;  %v4961_v6 = vld [vmem:[#allocation8 + $0xc90] sm:$0xff]  ;;  %v4962_v29 = vld [vmem:[#allocation8 + $0xc98] sm:$0xff] }
 0x41a   :  { %v4965_v46 = vld [vmem:[#allocation8 + $0xcb0] sm:$0xff] }
 0x41b   :  { %8418 = vmatpush1.bf16.msra.mxu0 %v9752_v49  ;;  %v4934_v49 = vld [vmem:[#allocation8 + $0xbb8] sm:$0xff] }
 0x41c   :  { %8710 = vmatpush1.bf16.msra.mxu1 %v9754_v38  ;;  %8419 = vmatprep.subr.bf16.mxu0 %v9761_v3  ;;  %v9800_v38 = vcombine.low %v4921_v20, %v4925_v16  ;;  %v9802_v3 = vcombine.low %v4922_v15, %v4926_v40  ;;  %v9811_v55 = vcombine.high %v4930_v34, %v4934_v49  ;;  %v4969_v16 = vld [vmem:[#allocation8 + $0xcd0] sm:$0xff]  ;;  %v4970_v40 = vld [vmem:[#allocation8 + $0xcd8] sm:$0xff] }
 0x41d   :  { %8711 = vmatprep.subr.bf16.mxu1 %v9763_v17  ;;  %v9809_v17 = vcombine.high %v4929_v33, %v4933_v60  ;;  %v4973_v15 = vld [vmem:[#allocation8 + $0xcf0] sm:$0xff] }
 0x41f   :  { %8420 = vmatpush1.bf16.msra.mxu0 %v9760_v48  ;;  %v4942_v48 = vld [vmem:[#allocation8 + $0xbf8] sm:$0xff] }
 0x420   :  { %8712 = vmatpush1.bf16.msra.mxu1 %v9762_v22  ;;  %8421 = vmatprep.subr.bf16.mxu0 %v9769_v63  ;;  %v9808_v22 = vcombine.low %v4929_v33, %v4933_v60  ;;  %v9810_v63 = vcombine.low %v4930_v34, %v4934_v49  ;;  %v9819_v19 = vcombine.high %v4938_v61, %v4942_v48  ;;  %v4981_v33 = vld [vmem:[#allocation8 + $0xd30] sm:$0xff]  ;;  %v4978_v60 = vld [vmem:[#allocation8 + $0xd18] sm:$0xff] }
 0x421   :  { %8713 = vmatprep.subr.bf16.mxu1 %v9771_v52  ;;  %v9817_v52 = vcombine.high %v4937_v37, %v4941_v62  ;;  %v4982_v34 = vld [vmem:[#allocation8 + $0xd38] sm:$0xff]  ;;  %v9848_v49 = vcombine.low %v4969_v16, %v4973_v15 }
 0x423   :  { %8422 = vmatpush1.bf16.msra.mxu0 %v9768_v4  ;;  %v4950_v4 = vld [vmem:[#allocation8 + $0xc38] sm:$0xff] }
 0x424   :  { %8714 = vmatpush1.bf16.msra.mxu1 %v9770_v1  ;;  %8423 = vmatprep.subr.bf16.mxu0 %v9777_v43  ;;  %v9816_v1 = vcombine.low %v4937_v37, %v4941_v62  ;;  %v9818_v43 = vcombine.low %v4938_v61, %v4942_v48  ;;  %v9827_v5 = vcombine.high %v4946_v56, %v4950_v4  ;;  %v4985_v37 = vld [vmem:[#allocation8 + $0xd50] sm:$0xff]  ;;  %v4986_v61 = vld [vmem:[#allocation8 + $0xd58] sm:$0xff] }
 0x425   :  { %8715 = vmatprep.subr.bf16.mxu1 %v9779_v45  ;;  %v9825_v45 = vcombine.high %v4945_v30, %v4949_v28  ;;  %v4989_v62 = vld [vmem:[#allocation8 + $0xd70] sm:$0xff] }
 0x427   :  { %8424 = vmatpush1.bf16.msra.mxu0 %v9776_v18  ;;  %v4958_v18 = vld [vmem:[#allocation8 + $0xc78] sm:$0xff] }
 0x428   :  { %8716 = vmatpush1.bf16.msra.mxu1 %v9778_v8  ;;  %8425 = vmatprep.subr.bf16.mxu0 %v9785_v51  ;;  %v9824_v8 = vcombine.low %v4945_v30, %v4949_v28  ;;  %v9826_v51 = vcombine.low %v4946_v56, %v4950_v4  ;;  %v9835_v50 = vcombine.high %v4954_v31, %v4958_v18  ;;  %v11512_v28 = vsub.s32 3, %v10880_v12 }
 0x429   :  { %8717 = vmatprep.subr.bf16.mxu1 %v9787_v2  ;;  %v9833_v2 = vcombine.high %v4953_v24, %v4957_v47  ;;  %v9865_v4 = vcombine.high %v4985_v37, %v4989_v62 }
 0x42b   :  { %8426 = vmatpush1.bf16.msra.mxu0 %v9784_v53  ;;  %v4966_v53 = vld [vmem:[#allocation8 + $0xcb8] sm:$0xff] }
 0x42c   :  { %8718 = vmatpush1.bf16.msra.mxu1 %v9786_v23  ;;  %8427 = vmatprep.subr.bf16.mxu0 %v9793_v25  ;;  %v9832_v23 = vcombine.low %v4953_v24, %v4957_v47  ;;  %v9834_v25 = vcombine.low %v4954_v31, %v4958_v18  ;;  %v9843_v20 = vcombine.high %v4962_v29, %v4966_v53  ;;  %v4994_v47 = vld [vmem:[#allocation8 + $0xd98] sm:$0xff] }
 0x42d   :  { %8719 = vmatprep.subr.bf16.mxu1 %v9795_v11  ;;  %v9841_v11 = vcombine.high %v4961_v6, %v4965_v46  ;;  %v9864_v24 = vcombine.low %v4985_v37, %v4989_v62  ;;  %v4998_v31 = vld [vmem:[#allocation8 + $0xdb8] sm:$0xff] }
 0x42e   :  { %v5014_v37 = vld [vmem:[#allocation8 + $0xe38] sm:$0xff] }
 0x42f   :  { %8428 = vmatpush1.bf16.msra.mxu0 %v9792_v59  ;;  %v4974_v59 = vld [vmem:[#allocation8 + $0xcf8] sm:$0xff] }
 0x430   :  { %8720 = vmatpush1.bf16.msra.mxu1 %v9794_v14  ;;  %8429 = vmatprep.subr.bf16.mxu0 %v9801_v54  ;;  %v9842_v14 = vcombine.low %v4962_v29, %v4966_v53  ;;  %v9849_v54 = vcombine.high %v4969_v16, %v4973_v15  ;;  %v5001_v16 = vld [vmem:[#allocation8 + $0xdd0] sm:$0xff] }
 0x431   :  { %8721 = vmatprep.subr.bf16.mxu1 %v9803_v9  ;;  %v4977_v9 = vld [vmem:[#allocation8 + $0xd10] sm:$0xff] }
 0x432   :  { %v9856_v48 = vcombine.low %v4977_v9, %v4981_v33  ;;  %v5005_v15 = vld [vmem:[#allocation8 + $0xdf0] sm:$0xff] }
 0x433   :  { %8430 = vmatpush1.bf16.msra.mxu0 %v9800_v38  ;;  %v9850_v38 = vcombine.low %v4970_v40, %v4974_v59 }
 0x434   :  { %8722 = vmatpush1.bf16.msra.mxu1 %v9802_v3  ;;  %8431 = vmatprep.subr.bf16.mxu0 %v9809_v17  ;;  %v9857_v3 = vcombine.high %v4977_v9, %v4981_v33  ;;  %v11354_v17 = vld [vmem:[#allocation10] sm:$0xff]  ;;  %v9881_v9 = vcombine.high %v5001_v16, %v5005_v15 }
 0x435   :  { %8723 = vmatprep.subr.bf16.mxu1 %v9811_v55  ;;  %v9859_v55 = vcombine.high %v4978_v60, %v4982_v34  ;;  %v11374_v56 = vrot.slane %v11354_v17, %v11512_v28 }
 0x437   :  { %8432 = vmatpush1.bf16.msra.mxu0 %v9808_v22  ;;  %v9858_v22 = vcombine.low %v4978_v60, %v4982_v34  ;;  %v5009_v60 = vld [vmem:[#allocation8 + $0xe10] sm:$0xff] }
 0x438   :  { %8724 = vmatpush1.bf16.msra.mxu1 %v9810_v63  ;;  %8433 = vmatprep.subr.bf16.mxu0 %v9817_v52  ;;  %v11510_v63 = vsub.s32 2, %v10880_v12  ;;  %v5013_v34 = vld [vmem:[#allocation8 + $0xe30] sm:$0xff] }
 0x439   :  { %8725 = vmatprep.subr.bf16.mxu1 %v9819_v19  ;;  %v11511_v19 = vsub.s32 1, %v10880_v12 }
 0x43a   :  { %v11364_v52 = vrot.slane %v11354_v17, %v11510_v63 }
 0x43b   :  { %8434 = vmatpush1.bf16.msra.mxu0 %v9816_v1  ;;  %v11369_v30 = vrot.slane %v11354_v17, %v11511_v19  ;;  %v4993_v1 = vld [vmem:[#allocation8 + $0xd90] sm:$0xff] }
 0x43c   :  { %8726 = vmatpush1.bf16.msra.mxu1 %v9818_v43  ;;  %8476 = vmatprep.subr.bf16.mxu0 %v9825_v45  ;;  %v4997_v43 = vld [vmem:[#allocation8 + $0xdb0] sm:$0xff] }
 0x43d   :  { %8768 = vmatprep.subr.bf16.mxu1 %v9827_v5  ;;  %v9873_v53 = vcombine.high %v4993_v1, %v4997_v43 }
 0x43e   :  { %8436 = vmatmul.mubr.bf16.vlgmr.msra.gmra.mrb[48].mxu0 %v11154_v58 }
 0x43f   :  { %8728 = vmatmul.mubr.bf16.vlgmr.msra.gmra.mrb[48].mxu1 %v11154_v58  ;;  %8445 = vmatprep.mubr.bf16.mxu0 %v11210_v39  ;;  %v9840_v58 = vcombine.low %v4961_v6, %v4965_v46 }
 0x440   :  { %8477 = vmatpush1.bf16.msra.mxu0 %v9824_v8  ;;  %8737 = vmatprep.mubr.bf16.mxu1 %v11210_v39  ;;  %v9851_v39 = vcombine.high %v4970_v40, %v4974_v59 }
 0x441   :  { %8769 = vmatpush1.bf16.msra.mxu1 %v9826_v51  ;;  %8478 = vmatprep.subr.bf16.mxu0 %v9833_v2 }
 0x442   :  { %8770 = vmatprep.subr.bf16.mxu1 %v9835_v50 }
 0x444   :  { %8479 = vmatpush1.bf16.msra.mxu0 %v9832_v23 }
 0x445   :  { %8771 = vmatpush1.bf16.msra.mxu1 %v9834_v25  ;;  %8480 = vmatprep.subr.bf16.mxu0 %v9841_v11 }
 0x446   :  { %8446 = vmatmul.mubr.bf16.gmra.mrb[52].mxu0 %v11204_v13  ;;  %8772 = vmatprep.subr.bf16.mxu1 %v9843_v20  ;;  %v9875_v20 = vcombine.high %v4994_v47, %v4998_v31 }
 0x447   :  { %8738 = vmatmul.mubr.bf16.gmra.mrb[52].mxu1 %v11204_v13  ;;  %8455 = vmatprep.mubr.bf16.mxu0 %v11260_v32  ;;  %v4990_v13 = vld [vmem:[#allocation8 + $0xd78] sm:$0xff] }
 0x448   :  { %8481 = vmatpush1.bf16.msra.mxu0 %v9840_v58  ;;  %8747 = vmatprep.mubr.bf16.mxu1 %v11260_v32  ;;  %v11359_v32 = vrot.slane %v11354_v17, %v697_v21  ;;  %v9867_v21 = vcombine.high %v4986_v61, %v4990_v13  ;;  %v9866_v50 = vcombine.low %v4986_v61, %v4990_v13  ;;  %v5002_v58 = vld [vmem:[#allocation8 + $0xdd8] sm:$0xff] }
 0x449   :  { %8773 = vmatpush1.bf16.msra.mxu1 %v9842_v14  ;;  %8482 = vmatprep.subr.bf16.mxu0 %v9849_v54  ;;  %v5006_v14 = vld [vmem:[#allocation8 + $0xdf8] sm:$0xff]  ;;  %v9872_v54 = vcombine.low %v4993_v1, %v4997_v43 }
 0x44a   :  { %8774 = vmatprep.subr.bf16.mxu1 %v9851_v39  ;;  %v9874_v39 = vcombine.low %v4994_v47, %v4998_v31  ;;  %v9883_v33 = vcombine.high %v5002_v58, %v5006_v14 }
 0x44c   :  { %8483 = vmatpush1.bf16.msra.mxu0 %v9848_v49 }
 0x44d   :  { %8775 = vmatpush1.bf16.msra.mxu1 %v9850_v38  ;;  %8484 = vmatprep.subr.bf16.mxu0 %v9857_v3  ;;  %v9880_v3 = vcombine.low %v5001_v16, %v5005_v15 }
 0x44e   :  { %8456 = vmatmul.mubr.bf16.gmra.mrb[56].mxu0 %v11254_v44  ;;  %8776 = vmatprep.subr.bf16.mxu1 %v9859_v55  ;;  %v5010_v55 = vld [vmem:[#allocation8 + $0xe18] sm:$0xff] }
 0x44f   :  { %8748 = vmatmul.mubr.bf16.gmra.mrb[56].mxu1 %v11254_v44  ;;  %8465 = vmatprep.mubr.bf16.mxu0 %v11288_v36  ;;  %v7926_v45 = vpop.f32.mrb[32].mxu0  ;;  %v8218_v5 = vpop.f32.mrb[32].mxu1 }
 0x450   :  { %8485 = vmatpush1.bf16.msra.mxu0 %v9856_v48  ;;  %8757 = vmatprep.mubr.bf16.mxu1 %v11288_v36  ;;  %v10012_v18 = vadd.f32 %v7926_v45, %v11359_v32  ;;  %v10028_v8 = vadd.f32 %v8218_v5, %v11364_v52  ;;  %v7928_v51 = vpop.f32.mrb[33].mxu0  ;;  %v8220_v2 = vpop.f32.mrb[33].mxu1  ;;  %v9891_v45 = vcombine.high %v5010_v55, %v5014_v37  ;;  %v5017_v5 = vld [vmem:[#allocation8 + $0xe50] sm:$0xff] }
 0x451   :  { %8777 = vmatpush1.bf16.msra.mxu1 %v9858_v22  ;;  %v10013_v44 = vadd.f32 %v7928_v51, %v11369_v30  ;;  %v10029_v6 = vadd.f32 %v8220_v2, %v11374_v56  ;;  %8486 = vmatprep.subr.bf16.mxu0 %v9865_v4  ;;  %v7930_v46 = vpop.f32.mrb[34].mxu0  ;;  %v8222_v29 = vpop.f32.mrb[34].mxu1  ;;  %v9882_v22 = vcombine.low %v5002_v58, %v5006_v14 }
 0x452   :  { %8841 = vst [vmem:[#allocation11] sm:$0xff] %v10012_v18  ;;  %8843 = vst [vmem:[#allocation11 + $0x10] sm:$0xff] %v10028_v8  ;;  %8778 = vmatprep.subr.bf16.mxu1 %v9867_v21  ;;  %v10014_v36 = vadd.f32 %v7930_v46, %v11359_v32  ;;  %v10030_v23 = vadd.f32 %v8222_v29, %v11364_v52  ;;  %v7932_v25 = vpop.f32.mrb[35].mxu0  ;;  %v8224_v11 = vpop.f32.mrb[35].mxu1  ;;  %v9889_v4 = vcombine.high %v5009_v60, %v5013_v34  ;;  %v5018_v18 = vld [vmem:[#allocation8 + $0xe58] sm:$0xff]  ;;  %v5029_v46 = vld [vmem:[#allocation8 + $0xeb0] sm:$0xff] }
 0x453   :  { %8842 = vst [vmem:[#allocation11 + $0x8] sm:$0xff] %v10013_v44  ;;  %8844 = vst [vmem:[#allocation11 + $0x18] sm:$0xff] %v10029_v6  ;;  %v10015_v40 = vadd.f32 %v7932_v25, %v11369_v30  ;;  %v10031_v59 = vadd.f32 %v8224_v11, %v11374_v56  ;;  %v5022_v8 = vld [vmem:[#allocation8 + $0xe78] sm:$0xff]  ;;  %v9888_v51 = vcombine.low %v5009_v60, %v5013_v34  ;;  %v5025_v6 = vld [vmem:[#allocation8 + $0xe90] sm:$0xff] }
 0x454   :  { %8849 = vst [vmem:[#allocation11 + $0x40] sm:$0xff] %v10014_v36  ;;  %8851 = vst [vmem:[#allocation11 + $0x50] sm:$0xff] %v10030_v23  ;;  %8487 = vmatpush1.bf16.msra.mxu0 %v9864_v24  ;;  %v5021_v24 = vld [vmem:[#allocation8 + $0xe70] sm:$0xff]  ;;  %v9890_v2 = vcombine.low %v5010_v55, %v5014_v37  ;;  %v9899_v44 = vcombine.high %v5018_v18, %v5022_v8  ;;  %v5026_v36 = vld [vmem:[#allocation8 + $0xe98] sm:$0xff] }
 0x455   :  { %8779 = vmatpush1.bf16.msra.mxu1 %v9866_v50  ;;  %8850 = vst [vmem:[#allocation11 + $0x48] sm:$0xff] %v10015_v40  ;;  %8852 = vst [vmem:[#allocation11 + $0x58] sm:$0xff] %v10031_v59  ;;  %8488 = vmatprep.subr.bf16.mxu0 %v9873_v53  ;;  %v9897_v50 = vcombine.high %v5017_v5, %v5021_v24  ;;  %v5030_v23 = vld [vmem:[#allocation8 + $0xeb8] sm:$0xff]  ;;  %v9896_v15 = vcombine.low %v5017_v5, %v5021_v24 }
 0x456   :  { %8466 = vmatmul.mubr.bf16.gmra.mrb[60].mxu0 %v11284_v42  ;;  %8780 = vmatprep.subr.bf16.mxu1 %v9875_v20  ;;  %v9898_v40 = vcombine.low %v5018_v18, %v5022_v8 }
 0x457   :  { %8758 = vmatmul.mubr.bf16.gmra.mrb[60].mxu1 %v11284_v42  ;;  %8508 = vmatprep.mubr.bf16.mxu0 %v11170_v26  ;;  %v7936_v49 = vpop.f32.mrb[36].mxu0  ;;  %v8228_v38 = vpop.f32.mrb[36].mxu1 }
 0x458   :  { %8489 = vmatpush1.bf16.msra.mxu0 %v9872_v54  ;;  %8800 = vmatprep.mubr.bf16.mxu1 %v11170_v26  ;;  %v10016_v62 = vadd.f32 %v7936_v49, %v11359_v32  ;;  %v10032_v61 = vadd.f32 %v8228_v38, %v11364_v52  ;;  %v7938_v13 = vpop.f32.mrb[37].mxu0  ;;  %v8230_v48 = vpop.f32.mrb[37].mxu1  ;;  %v9907_v49 = vcombine.high %v5026_v36, %v5030_v23  ;;  %v5033_v38 = vld [vmem:[#allocation8 + $0xed0] sm:$0xff] }
 0x459   :  { %8781 = vmatpush1.bf16.msra.mxu1 %v9874_v39  ;;  %v10017_v42 = vadd.f32 %v7938_v13, %v11369_v30  ;;  %v10033_v63 = vadd.f32 %v8230_v48, %v11374_v56  ;;  %8490 = vmatprep.subr.bf16.mxu0 %v9881_v9  ;;  %v7940_v19 = vpop.f32.mrb[38].mxu0  ;;  %v8232_v28 = vpop.f32.mrb[38].mxu1  ;;  %v9905_v39 = vcombine.high %v5025_v6, %v5029_v46 }
 0x45a   :  { %8857 = vst [vmem:[#allocation11 + $0x80] sm:$0xff] %v10016_v62  ;;  %8859 = vst [vmem:[#allocation11 + $0x90] sm:$0xff] %v10032_v61  ;;  %8782 = vmatprep.subr.bf16.mxu1 %v9883_v33  ;;  %v10018_v26 = vadd.f32 %v7940_v19, %v11359_v32  ;;  %v10034_v21 = vadd.f32 %v8232_v28, %v11364_v52  ;;  %v7942_v1 = vpop.f32.mrb[39].mxu0  ;;  %v8234_v43 = vpop.f32.mrb[39].mxu1  ;;  %v5034_v62 = vld [vmem:[#allocation8 + $0xed8] sm:$0xff]  ;;  %v9904_v13 = vcombine.low %v5025_v6, %v5029_v46  ;;  %v5045_v19 = vld [vmem:[#allocation8 + $0xf30] sm:$0xff] }
 0x45b   :  { %8858 = vst [vmem:[#allocation11 + $0x88] sm:$0xff] %v10017_v42  ;;  %8860 = vst [vmem:[#allocation11 + $0x98] sm:$0xff] %v10033_v63  ;;  %v10019_v47 = vadd.f32 %v7942_v1, %v11369_v30  ;;  %v10035_v31 = vadd.f32 %v8234_v43, %v11374_v56  ;;  %v5038_v61 = vld [vmem:[#allocation8 + $0xef8] sm:$0xff]  ;;  %v9906_v48 = vcombine.low %v5026_v36, %v5030_v23  ;;  %v5041_v63 = vld [vmem:[#allocation8 + $0xf10] sm:$0xff] }
 0x45c   :  { %8865 = vst [vmem:[#allocation11 + $0xc0] sm:$0xff] %v10018_v26  ;;  %8867 = vst [vmem:[#allocation11 + $0xd0] sm:$0xff] %v10034_v21  ;;  %8491 = vmatpush1.bf16.msra.mxu0 %v9880_v3  ;;  %v5037_v3 = vld [vmem:[#allocation8 + $0xef0] sm:$0xff]  ;;  %v9915_v42 = vcombine.high %v5034_v62, %v5038_v61  ;;  %v5042_v26 = vld [vmem:[#allocation8 + $0xf18] sm:$0xff] }
 0x45d   :  { %8783 = vmatpush1.bf16.msra.mxu1 %v9882_v22  ;;  %8866 = vst [vmem:[#allocation11 + $0xc8] sm:$0xff] %v10019_v47  ;;  %8868 = vst [vmem:[#allocation11 + $0xd8] sm:$0xff] %v10035_v31  ;;  %8492 = vmatprep.subr.bf16.mxu0 %v9889_v4  ;;  %v9913_v22 = vcombine.high %v5033_v38, %v5037_v3  ;;  %v5046_v21 = vld [vmem:[#allocation8 + $0xf38] sm:$0xff]  ;;  %v9912_v24 = vcombine.low %v5033_v38, %v5037_v3  ;;  %v5053_v36 = vld [vmem:[#allocation8 + $0xf70] sm:$0xff] }
 0x45e   :  { %8784 = vmatprep.subr.bf16.mxu1 %v9891_v45  ;;  %v9914_v47 = vcombine.low %v5034_v62, %v5038_v61 }
 0x45f   :  { %v7946_v29 = vpop.f32.mrb[40].mxu0  ;;  %v8238_v53 = vpop.f32.mrb[40].mxu1 }
 0x460   :  { %8493 = vmatpush1.bf16.msra.mxu0 %v9888_v51  ;;  %v10020_v25 = vadd.f32 %v7946_v29, %v11359_v32  ;;  %v10036_v11 = vadd.f32 %v8238_v53, %v11364_v52  ;;  %v7948_v20 = vpop.f32.mrb[41].mxu0  ;;  %v8240_v16 = vpop.f32.mrb[41].mxu1  ;;  %v9923_v29 = vcombine.high %v5042_v26, %v5046_v21  ;;  %v5049_v53 = vld [vmem:[#allocation8 + $0xf50] sm:$0xff] }
 0x461   :  { %8785 = vmatpush1.bf16.msra.mxu1 %v9890_v2  ;;  %v10021_v59 = vadd.f32 %v7948_v20, %v11369_v30  ;;  %v10037_v58 = vadd.f32 %v8240_v16, %v11374_v56  ;;  %8494 = vmatprep.subr.bf16.mxu0 %v9897_v50  ;;  %v7950_v14 = vpop.f32.mrb[42].mxu0  ;;  %v8242_v54 = vpop.f32.mrb[42].mxu1  ;;  %v9921_v2 = vcombine.high %v5041_v63, %v5045_v19  ;;  %v5054_v20 = vld [vmem:[#allocation8 + $0xf78] sm:$0xff] }
 0x462   :  { %8873 = vst [vmem:[#allocation11 + $0x100] sm:$0xff] %v10020_v25  ;;  %8875 = vst [vmem:[#allocation11 + $0x110] sm:$0xff] %v10036_v11  ;;  %8786 = vmatprep.subr.bf16.mxu1 %v9899_v44  ;;  %v10022_v9 = vadd.f32 %v7950_v14, %v11359_v32  ;;  %v10038_v33 = vadd.f32 %v8242_v54, %v11364_v52  ;;  %v7952_v60 = vpop.f32.mrb[43].mxu0  ;;  %v8244_v34 = vpop.f32.mrb[43].mxu1  ;;  %v5050_v11 = vld [vmem:[#allocation8 + $0xf58] sm:$0xff]  ;;  %v9920_v16 = vcombine.low %v5041_v63, %v5045_v19 }
 0x463   :  { %8874 = vst [vmem:[#allocation11 + $0x108] sm:$0xff] %v10021_v59  ;;  %8876 = vst [vmem:[#allocation11 + $0x118] sm:$0xff] %v10037_v58  ;;  %v10023_v55 = vadd.f32 %v7952_v60, %v11369_v30  ;;  %v10039_v37 = vadd.f32 %v8244_v34, %v11374_v56  ;;  %v5061_v59 = vld [vmem:[#allocation8 + $0xfb0] sm:$0xff]  ;;  %v5058_v58 = vld [vmem:[#allocation8 + $0xf98] sm:$0xff]  ;;  %v9930_v14 = vcombine.low %v5050_v11, %v5054_v20 }
 0x464   :  { %8881 = vst [vmem:[#allocation11 + $0x140] sm:$0xff] %v10022_v9  ;;  %8883 = vst [vmem:[#allocation11 + $0x150] sm:$0xff] %v10038_v33  ;;  %8495 = vmatpush1.bf16.msra.mxu0 %v9896_v15  ;;  %v9931_v15 = vcombine.high %v5050_v11, %v5054_v20  ;;  %v5065_v9 = vld [vmem:[#allocation8 + $0xfd0] sm:$0xff]  ;;  %v5066_v60 = vld [vmem:[#allocation8 + $0xfd8] sm:$0xff] }
 0x465   :  { %8787 = vmatpush1.bf16.msra.mxu1 %v9898_v40  ;;  %8882 = vst [vmem:[#allocation11 + $0x148] sm:$0xff] %v10023_v55  ;;  %8884 = vst [vmem:[#allocation11 + $0x158] sm:$0xff] %v10039_v37  ;;  %8496 = vmatprep.subr.bf16.mxu0 %v9905_v39  ;;  %v5057_v40 = vld [vmem:[#allocation8 + $0xf90] sm:$0xff]  ;;  %v5070_v34 = vld [vmem:[#allocation8 + $0xff8] sm:$0xff] }
 0x466   :  { %8788 = vmatprep.subr.bf16.mxu1 %v9907_v49  ;;  %v9937_v54 = vcombine.high %v5057_v40, %v5061_v59  ;;  %v5069_v33 = vld [vmem:[#allocation8 + $0xff0] sm:$0xff]  ;;  %v9936_v49 = vcombine.low %v5057_v40, %v5061_v59  ;;  %v9947_v55 = vcombine.high %v5066_v60, %v5070_v34  ;;  %v9946_v62 = vcombine.low %v5066_v60, %v5070_v34 }
 0x467   :  { %v7956_v28 = vpop.f32.mrb[44].mxu0  ;;  %v8248_v4 = vpop.f32.mrb[44].mxu1  ;;  %v9945_v3 = vcombine.high %v5065_v9, %v5069_v33  ;;  %v9944_v37 = vcombine.low %v5065_v9, %v5069_v33 }
 0x468   :  { %8497 = vmatpush1.bf16.msra.mxu0 %v9904_v13  ;;  %v10024_v1 = vadd.f32 %v7956_v28, %v11359_v32  ;;  %v10040_v43 = vadd.f32 %v8248_v4, %v11364_v52  ;;  %v7958_v45 = vpop.f32.mrb[45].mxu0  ;;  %v8250_v5 = vpop.f32.mrb[45].mxu1 }
 0x469   :  { %8789 = vmatpush1.bf16.msra.mxu1 %v9906_v48  ;;  %v10025_v31 = vadd.f32 %v7958_v45, %v11369_v30  ;;  %v10041_v18 = vadd.f32 %v8250_v5, %v11374_v56  ;;  %8498 = vmatprep.subr.bf16.mxu0 %v9913_v22  ;;  %v7960_v8 = vpop.f32.mrb[46].mxu0  ;;  %v8252_v51 = vpop.f32.mrb[46].mxu1 }
 0x46a   :  { %8889 = vst [vmem:[#allocation11 + $0x180] sm:$0xff] %v10024_v1  ;;  %8891 = vst [vmem:[#allocation11 + $0x190] sm:$0xff] %v10040_v43  ;;  %8790 = vmatprep.subr.bf16.mxu1 %v9915_v42  ;;  %v10026_v50 = vadd.f32 %v7960_v8, %v11359_v32  ;;  %v10042_v44 = vadd.f32 %v8252_v51, %v11364_v52  ;;  %v7962_v6 = vpop.f32.mrb[47].mxu0  ;;  %v8254_v46 = vpop.f32.mrb[47].mxu1  ;;  %v9922_v32 = vcombine.low %v5042_v26, %v5046_v21 }
 0x46b   :  { %8890 = vst [vmem:[#allocation11 + $0x188] sm:$0xff] %v10025_v31  ;;  %8892 = vst [vmem:[#allocation11 + $0x198] sm:$0xff] %v10041_v18  ;;  %v10027_v23 = vadd.f32 %v7962_v6, %v11369_v30  ;;  %v10043_v25 = vadd.f32 %v8254_v46, %v11374_v56  ;;  %v9929_v52 = vcombine.high %v5049_v53, %v5053_v36  ;;  %v5062_v30 = vld [vmem:[#allocation8 + $0xfb8] sm:$0xff] }
 0x46c   :  { %8897 = vst [vmem:[#allocation11 + $0x1c0] sm:$0xff] %v10026_v50  ;;  %8899 = vst [vmem:[#allocation11 + $0x1d0] sm:$0xff] %v10042_v44  ;;  %8499 = vmatpush1.bf16.msra.mxu0 %v9912_v24  ;;  %v9928_v56 = vcombine.low %v5049_v53, %v5053_v36  ;;  %v9939_v39 = vcombine.high %v5058_v58, %v5062_v30  ;;  %v9938_v38 = vcombine.low %v5058_v58, %v5062_v30 }
 0x46d   :  { %8791 = vmatpush1.bf16.msra.mxu1 %v9914_v47  ;;  %8898 = vst [vmem:[#allocation11 + $0x1c8] sm:$0xff] %v10027_v23  ;;  %8900 = vst [vmem:[#allocation11 + $0x1d8] sm:$0xff] %v10043_v25  ;;  %8500 = vmatprep.subr.bf16.mxu0 %v9921_v2 }
 0x46e   :  { %8792 = vmatprep.subr.bf16.mxu1 %v9923_v29 }
 0x470   :  { %8501 = vmatpush1.bf16.msra.mxu0 %v9920_v16 }
 0x471   :  { %8793 = vmatpush1.bf16.msra.mxu1 %v9922_v32  ;;  %8502 = vmatprep.subr.bf16.mxu0 %v9929_v52 }
 0x472   :  { %8794 = vmatprep.subr.bf16.mxu1 %v9931_v15 }
 0x474   :  { %8503 = vmatpush1.bf16.msra.mxu0 %v9928_v56 }
 0x475   :  { %8795 = vmatpush1.bf16.msra.mxu1 %v9930_v14  ;;  %8504 = vmatprep.subr.bf16.mxu0 %v9937_v54 }
 0x476   :  { %8796 = vmatprep.subr.bf16.mxu1 %v9939_v39 }
 0x478   :  { %8505 = vmatpush1.bf16.msra.mxu0 %v9936_v49 }
 0x479   :  { %8797 = vmatpush1.bf16.msra.mxu1 %v9938_v38  ;;  %8506 = vmatprep.subr.bf16.mxu0 %v9945_v3 }
 0x47a   :  { %8798 = vmatprep.subr.bf16.mxu1 %v9947_v55 }
 0x47c   :  { %8507 = vmatpush1.bf16.msra.mxu0 %v9944_v37 }
 0x47d   :  { %8799 = vmatpush1.bf16.msra.mxu1 %v9946_v62 }
 0x47f   :  { %8509 = vmatmul.mubr.bf16.vlgmr.msra.gmra.mrb[48].mxu0 %v11162_v7 }
 0x480   :  { %8801 = vmatmul.mubr.bf16.vlgmr.msra.gmra.mrb[48].mxu1 %v11162_v7  ;;  %8518 = vmatprep.mubr.bf16.mxu0 %v11218_v57  ;;  %v11513_v7 = vsub.s32 4, %v10880_v12 }
 0x481   :  { %8810 = vmatprep.mubr.bf16.mxu1 %v11218_v57  ;;  %v11514_v57 = vsub.s32 6, %v10880_v12 }
 0x487   :  { %8519 = vmatmul.mubr.bf16.gmra.mrb[52].mxu0 %v11208_v41 }
 0x488   :  { %8811 = vmatmul.mubr.bf16.gmra.mrb[52].mxu1 %v11208_v41  ;;  %8528 = vmatprep.mubr.bf16.mxu0 %v11264_v27  ;;  %v11433_v41 = vrot.slane %v11354_v17, %v11513_v7 }
 0x489   :  { %8820 = vmatprep.mubr.bf16.mxu1 %v11264_v27  ;;  %v11438_v27 = vrot.slane %v11354_v17, %v11514_v57 }
 0x48f   :  { %8529 = vmatmul.mubr.bf16.gmra.mrb[56].mxu0 %v11258_v0 }
 0x490   :  { %8821 = vmatmul.mubr.bf16.gmra.mrb[56].mxu1 %v11258_v0  ;;  %8538 = vmatprep.mubr.bf16.mxu0 %v11290_v10  ;;  %v11515_v0 = vsub.s32 5, %v10880_v12 }
 0x491   :  { %8830 = vmatprep.mubr.bf16.mxu1 %v11290_v10  ;;  %v11516_v10 = vsub.s32 7, %v10880_v12 }
 0x492   :  { %v11443_v61 = vrot.slane %v11354_v17, %v11515_v0 }
 0x493   :  { %v11448_v13 = vrot.slane %v11354_v17, %v11516_v10 }
 0x497   :  { %8539 = vmatmul.mubr.bf16.gmra.mrb[60].mxu0 %v11286_v35 }
 0x498   :  { %8831 = vmatmul.mubr.bf16.gmra.mrb[60].mxu1 %v11286_v35 }
 0x552   :  { %v8510_v35 = vpop.f32.mrb[48].mxu0 }
 0x553   :  { %v10044_v48 = vadd.f32 %v8510_v35, %v11433_v41  ;;  %v8802_v22 = vpop.f32.mrb[48].mxu1  ;;  %v8512_v42 = vpop.f32.mrb[49].mxu0 }
 0x554   :  { %v10060_v63 = vadd.f32 %v8802_v22, %v11438_v27  ;;  %v10045_v19 = vadd.f32 %v8512_v42, %v11443_v61  ;;  %v8804_v28 = vpop.f32.mrb[49].mxu1  ;;  %v8514_v4 = vpop.f32.mrb[50].mxu0 }
 0x555   :  { %8845 = vst [vmem:[#allocation11 + $0x20] sm:$0xff] %v10044_v48  ;;  %v10061_v26 = vadd.f32 %v8804_v28, %v11448_v13  ;;  %v10046_v21 = vadd.f32 %v8514_v4, %v11433_v41  ;;  %v8806_v12 = vpop.f32.mrb[50].mxu1  ;;  %v8516_v1 = vpop.f32.mrb[51].mxu0 }
 0x556   :  { %8847 = vst [vmem:[#allocation11 + $0x30] sm:$0xff] %v10060_v63  ;;  %8846 = vst [vmem:[#allocation11 + $0x28] sm:$0xff] %v10045_v19  ;;  %v10062_v17 = vadd.f32 %v8806_v12, %v11438_v27  ;;  %v10047_v43 = vadd.f32 %v8516_v1, %v11443_v61  ;;  %v8808_v45 = vpop.f32.mrb[51].mxu1 }
 0x557   :  { %8848 = vst [vmem:[#allocation11 + $0x38] sm:$0xff] %v10061_v26  ;;  %8853 = vst [vmem:[#allocation11 + $0x60] sm:$0xff] %v10046_v21  ;;  %v10063_v5 = vadd.f32 %v8808_v45, %v11448_v13 }
 0x558   :  { %8855 = vst [vmem:[#allocation11 + $0x70] sm:$0xff] %v10062_v17  ;;  %8854 = vst [vmem:[#allocation11 + $0x68] sm:$0xff] %v10047_v43 }
 0x559   :  { %8856 = vst [vmem:[#allocation11 + $0x78] sm:$0xff] %v10063_v5 }
 0x55a   :  { %v8520_v24 = vpop.f32.mrb[52].mxu0 }
 0x55b   :  { %v10048_v47 = vadd.f32 %v8520_v24, %v11433_v41  ;;  %v8812_v31 = vpop.f32.mrb[52].mxu1  ;;  %v8522_v18 = vpop.f32.mrb[53].mxu0 }
 0x55c   :  { %v10064_v8 = vadd.f32 %v8812_v31, %v11438_v27  ;;  %v10049_v51 = vadd.f32 %v8522_v18, %v11443_v61  ;;  %v8814_v2 = vpop.f32.mrb[53].mxu1  ;;  %v8524_v50 = vpop.f32.mrb[54].mxu0 }
 0x55d   :  { %8861 = vst [vmem:[#allocation11 + $0xa0] sm:$0xff] %v10048_v47  ;;  %v10065_v44 = vadd.f32 %v8814_v2, %v11448_v13  ;;  %v10050_v6 = vadd.f32 %v8524_v50, %v11433_v41  ;;  %v8816_v46 = vpop.f32.mrb[54].mxu1  ;;  %v8526_v29 = vpop.f32.mrb[55].mxu0 }
 0x55e   :  { %8863 = vst [vmem:[#allocation11 + $0xb0] sm:$0xff] %v10064_v8  ;;  %8862 = vst [vmem:[#allocation11 + $0xa8] sm:$0xff] %v10049_v51  ;;  %v10066_v53 = vadd.f32 %v8816_v46, %v11438_v27  ;;  %v10051_v36 = vadd.f32 %v8526_v29, %v11443_v61  ;;  %v8818_v23 = vpop.f32.mrb[55].mxu1 }
 0x55f   :  { %8864 = vst [vmem:[#allocation11 + $0xb8] sm:$0xff] %v10065_v44  ;;  %8869 = vst [vmem:[#allocation11 + $0xe0] sm:$0xff] %v10050_v6  ;;  %v10067_v25 = vadd.f32 %v8818_v23, %v11448_v13 }
 0x560   :  { %8871 = vst [vmem:[#allocation11 + $0xf0] sm:$0xff] %v10066_v53  ;;  %8870 = vst [vmem:[#allocation11 + $0xe8] sm:$0xff] %v10051_v36 }
 0x561   :  { %8872 = vst [vmem:[#allocation11 + $0xf8] sm:$0xff] %v10067_v25 }
 0x562   :  { %v8530_v11 = vpop.f32.mrb[56].mxu0 }
 0x563   :  { %v10052_v20 = vadd.f32 %v8530_v11, %v11433_v41  ;;  %v8822_v16 = vpop.f32.mrb[56].mxu1  ;;  %v8532_v32 = vpop.f32.mrb[57].mxu0 }
 0x564   :  { %v10068_v52 = vadd.f32 %v8822_v16, %v11438_v27  ;;  %v10053_v15 = vadd.f32 %v8532_v32, %v11443_v61  ;;  %v8824_v40 = vpop.f32.mrb[57].mxu1  ;;  %v8534_v59 = vpop.f32.mrb[58].mxu0 }
 0x565   :  { %8877 = vst [vmem:[#allocation11 + $0x120] sm:$0xff] %v10052_v20  ;;  %v10069_v58 = vadd.f32 %v8824_v40, %v11448_v13  ;;  %v10054_v30 = vadd.f32 %v8534_v59, %v11433_v41  ;;  %v8826_v56 = vpop.f32.mrb[58].mxu1  ;;  %v8536_v14 = vpop.f32.mrb[59].mxu0 }
 0x566   :  { %8879 = vst [vmem:[#allocation11 + $0x130] sm:$0xff] %v10068_v52  ;;  %8878 = vst [vmem:[#allocation11 + $0x128] sm:$0xff] %v10053_v15  ;;  %v10070_v54 = vadd.f32 %v8826_v56, %v11438_v27  ;;  %v10055_v39 = vadd.f32 %v8536_v14, %v11443_v61  ;;  %v8828_v9 = vpop.f32.mrb[59].mxu1 }
 0x567   :  { %8880 = vst [vmem:[#allocation11 + $0x138] sm:$0xff] %v10069_v58  ;;  %8885 = vst [vmem:[#allocation11 + $0x160] sm:$0xff] %v10054_v30  ;;  %v10071_v33 = vadd.f32 %v8828_v9, %v11448_v13 }
 0x568   :  { %8887 = vst [vmem:[#allocation11 + $0x170] sm:$0xff] %v10070_v54  ;;  %8886 = vst [vmem:[#allocation11 + $0x168] sm:$0xff] %v10055_v39 }
 0x569   :  { %8888 = vst [vmem:[#allocation11 + $0x178] sm:$0xff] %v10071_v33 }
 0x56a   :  { %v8540_v60 = vpop.f32.mrb[60].mxu0 }
 0x56b   :  { %v10056_v34 = vadd.f32 %v8540_v60, %v11433_v41  ;;  %v8832_v49 = vpop.f32.mrb[60].mxu1  ;;  %v8542_v38 = vpop.f32.mrb[61].mxu0 }
 0x56c   :  { %v10072_v3 = vadd.f32 %v8832_v49, %v11438_v27  ;;  %v10057_v55 = vadd.f32 %v8542_v38, %v11443_v61  ;;  %v8834_v37 = vpop.f32.mrb[61].mxu1  ;;  %v8544_v62 = vpop.f32.mrb[62].mxu0 }
 0x56d   :  { %8893 = vst [vmem:[#allocation11 + $0x1a0] sm:$0xff] %v10056_v34  ;;  %v10073_v7 = vadd.f32 %v8834_v37, %v11448_v13  ;;  %v10058_v57 = vadd.f32 %v8544_v62, %v11433_v41  ;;  %v8836_v0 = vpop.f32.mrb[62].mxu1  ;;  %v8546_v10 = vpop.f32.mrb[63].mxu0 }
 0x56e   :  { %8895 = vst [vmem:[#allocation11 + $0x1b0] sm:$0xff] %v10072_v3  ;;  %8894 = vst [vmem:[#allocation11 + $0x1a8] sm:$0xff] %v10057_v55  ;;  %v10074_v35 = vadd.f32 %v8836_v0, %v11438_v27  ;;  %v10059_v48 = vadd.f32 %v8546_v10, %v11443_v61  ;;  %v8838_v22 = vpop.f32.mrb[63].mxu1 }
 0x56f   :  { %8896 = vst [vmem:[#allocation11 + $0x1b8] sm:$0xff] %v10073_v7  ;;  %8901 = vst [vmem:[#allocation11 + $0x1e0] sm:$0xff] %v10058_v57  ;;  %v10075_v42 = vadd.f32 %v8838_v22, %v11448_v13 }
 0x570   :  { %8903 = vst [vmem:[#allocation11 + $0x1f0] sm:$0xff] %v10074_v35  ;;  %8902 = vst [vmem:[#allocation11 + $0x1e8] sm:$0xff] %v10059_v48 }
 0x571   :  { %8904 = vst [vmem:[#allocation11 + $0x1f8] sm:$0xff] %v10075_v42 }
 0x572   :  { %10592 = shalt.err (!%p10589_p2)
}
 0x573   :  { %s10593_s7 = scalar_lea.hbm %s11502_s5, 8192 }
 0x574   :  { %p10594_p3 = scmp.ne.s32.totalorder %s11502_s5, %s10593_s7  ;;  %p10597_p4 = scmp.lt.u32.totalorder %s10593_s7, %s11502_s5 }
 0x576   :  { %p10599_p5 = pnand %p10597_p4, %p10594_p3 }
 0x578   :  { %10602 = shalt.err (!%p10599_p5)
}
 0x579   :  { %8916 = dma.vmem_to_hbm [thread:$0]  %s8911_s27, 8192, %s11502_s5, [#allocation4], %s10616_s3, %s10616_s3, %s10617_s28  }
 0x57a   :  { %10609 = dma.done.wait [#allocation4], 8192  }
 0x57b   :  { %10610 = vsyncadd [#allocation4], 4294959104 }
 0x57c   :  { %8920 = vsyncpa [#allocation3], 1 }
 0x57d   :  { %8921 = vsyncpa [#allocation6], 1 }
 0x57e   :  { %8922 = vsyncpa [#allocation9], 1 }
 0x57f   :  { %8923 = vsyncpa [#allocation4], 1 }

</bundles_post_ra>
